<compile_context>
chip_gen: v5e
topology: v5e:2x2
jax: 0.10.0
libtpu: 0.0.40
codegen_flags: <defaults>
</compile_context>

<pallas_src>
import functools

import jax
import jax.numpy as jnp
from jax import lax
from jax.experimental import pallas as pl
from jax.experimental.pallas import tpu as pltpu

_SUB = 16  # sublane pitch (packed bf16 tile height); also fine for f32 (8)


def _round_up(x, m):
    return (x + m - 1) // m * m


def _plan(h, w):
    ho = (h - 1) // 2 + 1          # conv output height  (k=3, s=2, p=1)
    wo = (w - 1) // 2 + 1          # conv output width
    ws = _round_up(wo + 1, _SUB)   # padded row pitch -> aligned tap offsets
    hs = ho + 1                    # one junk row-group per image (spill target)
    return ho, wo, hs, ws


# ---------------------------------------------------------------------------
# Pallas kernel: 3x3 / stride-2 / pad-1 conv as 9 tap matmuls over the whole
# batch-folded M dimension, register-accumulated per M tile.
# ---------------------------------------------------------------------------
def _conv3x3s2_kernel(x_ref, w_ref, b_ref, o_ref, *, ws, tile_rows):
    # x_ref : (6, R, cin_p)        parity planes (bf16), R = n*hs*ws + ws
    # w_ref : (9, cin_p, cout_blk) per-tap weights (bf16), tap = kh*3 + kw
    # b_ref : (1, cout_blk)        bias (f32)
    # o_ref : (m, cout_blk)        flattened padded outputs (f32), m = n*hs*ws
    m = o_ref.shape[0]
    bias = b_ref[...].astype(jnp.float32)          # hoisted out of the tile loop

    # Static tap table: (weight index, plane index, sublane-aligned row offset).
    # kw in {0,1} -> base planes 2*(kh%2)+kw; kw==2 -> column-shifted planes 4/5.
    taps = []
    for kh in range(3):
        for kw in range(3):
            a = kh % 2
            plane = (2 * a + kw) if kw < 2 else (4 + a)
            taps.append((kh * 3 + kw, plane, (kh // 2) * ws))

    r0 = 0
    while r0 < m:                                   # static tiling loop
        rows = min(tile_rows, m - r0)               # multiple of ws (>= 16)
        acc = None
        for t, plane, off in taps:
            lhs = x_ref[plane, pl.ds(r0 + off, rows), :]        # aligned slice
            contrib = jnp.dot(lhs, w_ref[t],
                              preferred_element_type=jnp.float32)
            acc = contrib if acc is None else acc + contrib
        o_ref[pl.ds(r0, rows), :] = (acc + bias).astype(o_ref.dtype)
        r0 += rows


# ---------------------------------------------------------------------------
# XLA glue: pad=1 + stride-2 space-to-depth into 6 sublane-aligned planes
# (4 even/odd parity planes + 2 column-shifted planes for the kw==2 taps).
# Batch is folded into the plane row dimension (one ~1x-ish copy of the input).
# ---------------------------------------------------------------------------
def _make_planes(x_nhwc, cin_p, compute_dtype):
    n, h, w, c = x_nhwc.shape
    ho, wo, hs, ws = _plan(h, w)
    L = hs * ws

    xe = jnp.pad(
        x_nhwc.astype(compute_dtype),
        ((0, 0),
         (1, 2 * hs - h - 1),               # conv top pad + halo/junk rows
         (1, 2 * (ws + 1) - w - 1),         # conv left pad + halo/junk cols
         (0, cin_p - c)),
    )                                        # (n, 2*hs, 2*(ws+1), cin_p)
    xs = xe.reshape(n, hs, 2, ws + 1, 2, cin_p)

    # Base planes: plane 2a+b holds xe[2i+a, 2j+b].
    base = xs[:, :, :, :ws, :, :].transpose(0, 2, 4, 1, 3, 5)
    base = base.reshape(n, 4, L, cin_p)
    # Column-shifted planes (kw==2 taps): plane 4+a holds xe[2i+a, 2j+2].
    shift = xs[:, :, :, 1:, 0, :].transpose(0, 2, 1, 3, 4)
    shift = shift.reshape(n, 2, L, cin_p)

    planes = jnp.concatenate([base, shift], axis=1)          # (n, 6, L, cin_p)
    planes = planes.transpose(1, 0, 2, 3).reshape(6, n * L, cin_p)
    planes = jnp.pad(planes, ((0, 0), (0, ws), (0, 0)))      # spill tail (zeros)
    return planes, ho, wo, hs, ws


def _conv3x3_s2(x_nhwc, weight_oihw, bias, *,
                compute_dtype=jnp.bfloat16, out_dtype=jnp.float32):
    """3x3 stride-2 pad-1 conv (NHWC in) -> padded (n, hs, ws, cout_p) slab."""
    n, h, w, c = x_nhwc.shape
    cout, cin_w = weight_oihw.shape[0], weight_oihw.shape[1]
    cin_p = _round_up(c, 128)
    cout_p = _round_up(cout, 128)

    planes, ho, wo, hs, ws = _make_planes(x_nhwc, cin_p, compute_dtype)
    L = hs * ws
    m = n * L                       # batch folded into the matmul M dimension
    R = planes.shape[1]             # m + ws

    # (Cout, Cin, 3, 3) -> (9, Cin_p, Cout_p); tap index = kh*3 + kw.
    w9 = jnp.transpose(weight_oihw, (2, 3, 1, 0)).reshape(9, cin_w, cout)
    w9 = jnp.pad(w9, ((0, 0), (0, cin_p - cin_w), (0, cout_p - cout)))
    w9 = w9.astype(compute_dtype)
    b2 = jnp.pad(bias.reshape(1, cout), ((0, 0), (0, cout_p - cout)))
    b2 = b2.astype(jnp.float32)

    # Cout split: 2 lane-dense tiles when possible (keeps both v7x TCs busy).
    n_cblk = 2 if (cout_p >= 256 and cout_p % 256 == 0) else 1
    cout_blk = cout_p // n_cblk

    # In-kernel M tile: ~32K f32 accumulator elements, multiple of ws.
    tile_rows = min(m, max(ws, (32768 // cout_blk) // ws * ws))

    kernel = functools.partial(_conv3x3s2_kernel, ws=ws, tile_rows=tile_rows)

    # VMEM budget sized from the actual (double-buffered) block footprint.
    esz = jnp.dtype(compute_dtype).itemsize
    vmem_need = (2 * 6 * R * cin_p * esz            # planes block
                 + 2 * 9 * cin_p * cout_blk * esz   # weights block
                 + 2 * 1 * cout_blk * 4             # bias block
                 + 2 * m * cout_blk * 4             # output block (f32)
                 + 4 * tile_rows * max(cin_p, cout_blk) * 4)  # in-kernel temps
    vmem_limit = min(2 * vmem_need + (4 << 20), 64 * 1024 * 1024)

    y = pl.pallas_call(
        kernel,
        out_shape=jax.ShapeDtypeStruct((m, cout_p), out_dtype),
        grid_spec=pltpu.PrefetchScalarGridSpec(
            num_scalar_prefetch=0,
            grid=(n_cblk,),
            in_specs=[
                pl.BlockSpec((6, R, cin_p), lambda j: (0, 0, 0)),
                pl.BlockSpec((9, cin_p, cout_blk), lambda j: (0, 0, j)),
                pl.BlockSpec((1, cout_blk), lambda j: (0, j)),
            ],
            out_specs=pl.BlockSpec((m, cout_blk), lambda j: (0, j)),
        ),
        compiler_params=pltpu.CompilerParams(
            dimension_semantics=("parallel",),
            vmem_limit_bytes=vmem_limit,
        ),
    )(planes, w9, b2)

    y = y.reshape(n, hs, ws, cout_p)
    return y, ho, wo, cout


# ---------------------------------------------------------------------------
# Module equivalent of maskrcnn_benchmark LastLevelP6P7
# ---------------------------------------------------------------------------
class LastLevelP6P7:
    def __init__(self, in_channels, out_channels, key):
        self.use_P5 = in_channels == out_channels
        k1, k2 = jax.random.split(key)

        def kaiming_uniform(k, shape):
            # kaiming_uniform_ with a=1: gain = 1, bound = sqrt(3 / fan_in)
            fan_in = shape[1] * shape[2] * shape[3]
            bound = (3.0 / fan_in) ** 0.5
            return jax.random.uniform(
                k, shape, dtype=jnp.float32, minval=-bound, maxval=bound
            )

        self.p6_w = kaiming_uniform(k1, (out_channels, in_channels, 3, 3))
        self.p6_b = jnp.zeros((out_channels,), jnp.float32)
        self.p7_w = kaiming_uniform(k2, (out_channels, out_channels, 3, 3))
        self.p7_b = jnp.zeros((out_channels,), jnp.float32)

    def __call__(self, c5, p5):
        # c5, p5: NCHW (PyTorch convention); outputs are NCHW too.
        x = p5 if self.use_P5 else c5
        x_nhwc = jnp.transpose(x, (0, 2, 3, 1))

        # P6: conv3x3 s2 p1
        y6, ho6, wo6, cout = _conv3x3_s2(x_nhwc, self.p6_w, self.p6_b)
        p6_nhwc = y6[:, :ho6, :wo6, :cout]

        # P7 input: relu(P6), junk rows/cols dropped; padded Cout channels of
        # y6 are exactly zero (zero-padded weights + zero-padded bias), so they
        # serve directly as P7's input-channel zero padding.
        p7_in = jnp.maximum(y6[:, :ho6, :wo6, :], 0.0)
        y7, ho7, wo7, _ = _conv3x3_s2(p7_in, self.p7_w, self.p7_b)
        p7_nhwc = y7[:, :ho7, :wo7, :cout]

        p6 = jnp.transpose(p6_nhwc, (0, 3, 1, 2))
        p7 = jnp.transpose(p7_nhwc, (0, 3, 1, 2))
        return [p6, p7]


# ---------------------------------------------------------------------------
# Reference (pure JAX, bf16 operands / f32 accumulation to match the kernel)
# ---------------------------------------------------------------------------
def _ref_forward(mod, c5, p5, compute_dtype=jnp.bfloat16):
    x = p5 if mod.use_P5 else c5

    def conv(inp, w, b):
        dn = lax.conv_dimension_numbers(inp.shape, w.shape,
                                        ("NCHW", "OIHW", "NCHW"))
        y = lax.conv_general_dilated(
            inp.astype(compute_dtype), w.astype(compute_dtype),
            window_strides=(2, 2), padding=((1, 1), (1, 1)),
            dimension_numbers=dn, preferred_element_type=jnp.float32)
        return y + b.reshape(1, -1, 1, 1)

    p6 = conv(x, mod.p6_w, mod.p6_b)
    p7 = conv(jnp.maximum(p6, 0.0), mod.p7_w, mod.p7_b)
    return [p6, p7]


if __name__ == "__main__":
    key = jax.random.PRNGKey(0)
    k_c5, k_p5, k_mod = jax.random.split(key, 3)

    N, C, H, W = 2, 4, 16, 16           # in_channels == out_channels -> use_P5
    c5 = jax.random.normal(k_c5, (N, C, H, W), dtype=jnp.float32)
    p5 = jax.random.normal(k_p5, (N, C, H, W), dtype=jnp.float32)

    mod = LastLevelP6P7(in_channels=C, out_channels=C, key=k_mod)

    fwd = jax.jit(lambda a, b: tuple(mod(a, b)))
    p6, p7 = fwd(c5, p5)
    jax.block_until_ready(p6)
    jax.block_until_ready(p7)

    # Correctness check against an XLA conv reference using the same bf16
    # operand / f32 accumulation numerics as the kernel.
    p6_ref, p7_ref = _ref_forward(mod, c5, p5)
    assert p6.shape == (N, C, H // 2, W // 2), p6.shape
    assert p7.shape == (N, C, H // 4, W // 4), p7.shape
    assert jnp.allclose(p6, p6_ref, atol=2e-2, rtol=2e-2)
    assert jnp.allclose(p7, p7_ref, atol=2e-2, rtol=2e-2)

    print("KERNEL_OK")
</pallas_src>

<mosaic_0001>
module attributes {stable_mosaic.version = 11 : i64} {
  func.func @_conv3x3s2_kernel(%arg0: i32, %arg1: memref<6x304x128xbf16, #tpu.memory_space<vmem>>, %arg2: memref<9x128x128xbf16, #tpu.memory_space<vmem>>, %arg3: memref<1x128xf32, #tpu.memory_space<vmem>>, %arg4: memref<288x128xf32, #tpu.memory_space<vmem>>) attributes {dimension_semantics = [#tpu.dimension_semantics<parallel>], iteration_bounds = array<i64: 1>, scalar_prefetch = 0 : i64, scratch_operands = 0 : i64, tpu.core_type = #tpu.core_type<tc>, window_params = [{pipeline_mode = #tpu.pipeline_mode<synchronous>, transform_indices = @transform_0, window_bounds = array<i64: 6, 304, 128>}, {transform_indices = @transform_1, window_bounds = array<i64: 9, 128, 128>}, {transform_indices = @transform_2, window_bounds = array<i64: 1, 128>}, {transform_indices = @transform_3, window_bounds = array<i64: 288, 128>}]} {
    %c0 = arith.constant 0 : index
    %c0_0 = arith.constant 0 : index
    %0 = vector.load %arg3[%c0, %c0_0] : memref<1x128xf32, #tpu.memory_space<vmem>>, vector<1x128xf32>
    %c0_1 = arith.constant 0 : index
    %c0_2 = arith.constant 0 : index
    %c0_3 = arith.constant 0 : index
    %1 = vector.load %arg1[%c0_1, %c0_2, %c0_3] : memref<6x304x128xbf16, #tpu.memory_space<vmem>>, vector<1x256x128xbf16>
    %2 = vector.shape_cast %1 : vector<1x256x128xbf16> to vector<256x128xbf16>
    %c0_4 = arith.constant 0 : index
    %c0_5 = arith.constant 0 : index
    %c0_6 = arith.constant 0 : index
    %3 = vector.load %arg2[%c0_4, %c0_5, %c0_6] : memref<9x128x128xbf16, #tpu.memory_space<vmem>>, vector<1x128x128xbf16>
    %4 = vector.shape_cast %3 : vector<1x128x128xbf16> to vector<128x128xbf16>
    %cst = arith.constant dense<0.000000e+00> : vector<256x128xf32>
    %5 = tpu.matmul %2, %4, %cst {dimension_numbers = #tpu.dot_dimension_numbers<[1], [0], [0], [1], [0, 0, 1, 1], [], []>} : vector<256x128xbf16>, vector<128x128xbf16>, vector<256x128xf32> -> vector<256x128xf32>
    %c1 = arith.constant 1 : index
    %c0_7 = arith.constant 0 : index
    %c0_8 = arith.constant 0 : index
    %6 = vector.load %arg1[%c1, %c0_7, %c0_8] : memref<6x304x128xbf16, #tpu.memory_space<vmem>>, vector<1x256x128xbf16>
    %7 = vector.shape_cast %6 : vector<1x256x128xbf16> to vector<256x128xbf16>
    %c1_9 = arith.constant 1 : index
    %c0_10 = arith.constant 0 : index
    %c0_11 = arith.constant 0 : index
    %8 = vector.load %arg2[%c1_9, %c0_10, %c0_11] : memref<9x128x128xbf16, #tpu.memory_space<vmem>>, vector<1x128x128xbf16>
    %9 = vector.shape_cast %8 : vector<1x128x128xbf16> to vector<128x128xbf16>
    %cst_12 = arith.constant dense<0.000000e+00> : vector<256x128xf32>
    %10 = tpu.matmul %7, %9, %cst_12 {dimension_numbers = #tpu.dot_dimension_numbers<[1], [0], [0], [1], [0, 0, 1, 1], [], []>} : vector<256x128xbf16>, vector<128x128xbf16>, vector<256x128xf32> -> vector<256x128xf32>
    %11 = arith.addf %5, %10 : vector<256x128xf32>
    %c4 = arith.constant 4 : index
    %c0_13 = arith.constant 0 : index
    %c0_14 = arith.constant 0 : index
    %12 = vector.load %arg1[%c4, %c0_13, %c0_14] : memref<6x304x128xbf16, #tpu.memory_space<vmem>>, vector<1x256x128xbf16>
    %13 = vector.shape_cast %12 : vector<1x256x128xbf16> to vector<256x128xbf16>
    %c2 = arith.constant 2 : index
    %c0_15 = arith.constant 0 : index
    %c0_16 = arith.constant 0 : index
    %14 = vector.load %arg2[%c2, %c0_15, %c0_16] : memref<9x128x128xbf16, #tpu.memory_space<vmem>>, vector<1x128x128xbf16>
    %15 = vector.shape_cast %14 : vector<1x128x128xbf16> to vector<128x128xbf16>
    %cst_17 = arith.constant dense<0.000000e+00> : vector<256x128xf32>
    %16 = tpu.matmul %13, %15, %cst_17 {dimension_numbers = #tpu.dot_dimension_numbers<[1], [0], [0], [1], [0, 0, 1, 1], [], []>} : vector<256x128xbf16>, vector<128x128xbf16>, vector<256x128xf32> -> vector<256x128xf32>
    %17 = arith.addf %11, %16 : vector<256x128xf32>
    %c2_18 = arith.constant 2 : index
    %c0_19 = arith.constant 0 : index
    %c0_20 = arith.constant 0 : index
    %18 = vector.load %arg1[%c2_18, %c0_19, %c0_20] : memref<6x304x128xbf16, #tpu.memory_space<vmem>>, vector<1x256x128xbf16>
    %19 = vector.shape_cast %18 : vector<1x256x128xbf16> to vector<256x128xbf16>
    %c3 = arith.constant 3 : index
    %c0_21 = arith.constant 0 : index
    %c0_22 = arith.constant 0 : index
    %20 = vector.load %arg2[%c3, %c0_21, %c0_22] : memref<9x128x128xbf16, #tpu.memory_space<vmem>>, vector<1x128x128xbf16>
    %21 = vector.shape_cast %20 : vector<1x128x128xbf16> to vector<128x128xbf16>
    %cst_23 = arith.constant dense<0.000000e+00> : vector<256x128xf32>
    %22 = tpu.matmul %19, %21, %cst_23 {dimension_numbers = #tpu.dot_dimension_numbers<[1], [0], [0], [1], [0, 0, 1, 1], [], []>} : vector<256x128xbf16>, vector<128x128xbf16>, vector<256x128xf32> -> vector<256x128xf32>
    %23 = arith.addf %17, %22 : vector<256x128xf32>
    %c3_24 = arith.constant 3 : index
    %c0_25 = arith.constant 0 : index
    %c0_26 = arith.constant 0 : index
    %24 = vector.load %arg1[%c3_24, %c0_25, %c0_26] : memref<6x304x128xbf16, #tpu.memory_space<vmem>>, vector<1x256x128xbf16>
    %25 = vector.shape_cast %24 : vector<1x256x128xbf16> to vector<256x128xbf16>
    %c4_27 = arith.constant 4 : index
    %c0_28 = arith.constant 0 : index
    %c0_29 = arith.constant 0 : index
    %26 = vector.load %arg2[%c4_27, %c0_28, %c0_29] : memref<9x128x128xbf16, #tpu.memory_space<vmem>>, vector<1x128x128xbf16>
    %27 = vector.shape_cast %26 : vector<1x128x128xbf16> to vector<128x128xbf16>
    %cst_30 = arith.constant dense<0.000000e+00> : vector<256x128xf32>
    %28 = tpu.matmul %25, %27, %cst_30 {dimension_numbers = #tpu.dot_dimension_numbers<[1], [0], [0], [1], [0, 0, 1, 1], [], []>} : vector<256x128xbf16>, vector<128x128xbf16>, vector<256x128xf32> -> vector<256x128xf32>
    %29 = arith.addf %23, %28 : vector<256x128xf32>
    %c5 = arith.constant 5 : index
    %c0_31 = arith.constant 0 : index
    %c0_32 = arith.constant 0 : index
    %30 = vector.load %arg1[%c5, %c0_31, %c0_32] : memref<6x304x128xbf16, #tpu.memory_space<vmem>>, vector<1x256x128xbf16>
    %31 = vector.shape_cast %30 : vector<1x256x128xbf16> to vector<256x128xbf16>
    %c5_33 = arith.constant 5 : index
    %c0_34 = arith.constant 0 : index
    %c0_35 = arith.constant 0 : index
    %32 = vector.load %arg2[%c5_33, %c0_34, %c0_35] : memref<9x128x128xbf16, #tpu.memory_space<vmem>>, vector<1x128x128xbf16>
    %33 = vector.shape_cast %32 : vector<1x128x128xbf16> to vector<128x128xbf16>
    %cst_36 = arith.constant dense<0.000000e+00> : vector<256x128xf32>
    %34 = tpu.matmul %31, %33, %cst_36 {dimension_numbers = #tpu.dot_dimension_numbers<[1], [0], [0], [1], [0, 0, 1, 1], [], []>} : vector<256x128xbf16>, vector<128x128xbf16>, vector<256x128xf32> -> vector<256x128xf32>
    %35 = arith.addf %29, %34 : vector<256x128xf32>
    %c0_37 = arith.constant 0 : index
    %c16 = arith.constant 16 : index
    %c0_38 = arith.constant 0 : index
    %36 = vector.load %arg1[%c0_37, %c16, %c0_38] : memref<6x304x128xbf16, #tpu.memory_space<vmem>>, vector<1x256x128xbf16>
    %37 = vector.shape_cast %36 : vector<1x256x128xbf16> to vector<256x128xbf16>
    %c6 = arith.constant 6 : index
    %c0_39 = arith.constant 0 : index
    %c0_40 = arith.constant 0 : index
    %38 = vector.load %arg2[%c6, %c0_39, %c0_40] : memref<9x128x128xbf16, #tpu.memory_space<vmem>>, vector<1x128x128xbf16>
    %39 = vector.shape_cast %38 : vector<1x128x128xbf16> to vector<128x128xbf16>
    %cst_41 = arith.constant dense<0.000000e+00> : vector<256x128xf32>
    %40 = tpu.matmul %37, %39, %cst_41 {dimension_numbers = #tpu.dot_dimension_numbers<[1], [0], [0], [1], [0, 0, 1, 1], [], []>} : vector<256x128xbf16>, vector<128x128xbf16>, vector<256x128xf32> -> vector<256x128xf32>
    %41 = arith.addf %35, %40 : vector<256x128xf32>
    %c1_42 = arith.constant 1 : index
    %c16_43 = arith.constant 16 : index
    %c0_44 = arith.constant 0 : index
    %42 = vector.load %arg1[%c1_42, %c16_43, %c0_44] : memref<6x304x128xbf16, #tpu.memory_space<vmem>>, vector<1x256x128xbf16>
    %43 = vector.shape_cast %42 : vector<1x256x128xbf16> to vector<256x128xbf16>
    %c7 = arith.constant 7 : index
    %c0_45 = arith.constant 0 : index
    %c0_46 = arith.constant 0 : index
    %44 = vector.load %arg2[%c7, %c0_45, %c0_46] : memref<9x128x128xbf16, #tpu.memory_space<vmem>>, vector<1x128x128xbf16>
    %45 = vector.shape_cast %44 : vector<1x128x128xbf16> to vector<128x128xbf16>
    %cst_47 = arith.constant dense<0.000000e+00> : vector<256x128xf32>
    %46 = tpu.matmul %43, %45, %cst_47 {dimension_numbers = #tpu.dot_dimension_numbers<[1], [0], [0], [1], [0, 0, 1, 1], [], []>} : vector<256x128xbf16>, vector<128x128xbf16>, vector<256x128xf32> -> vector<256x128xf32>
    %47 = arith.addf %41, %46 : vector<256x128xf32>
    %c4_48 = arith.constant 4 : index
    %c16_49 = arith.constant 16 : index
    %c0_50 = arith.constant 0 : index
    %48 = vector.load %arg1[%c4_48, %c16_49, %c0_50] : memref<6x304x128xbf16, #tpu.memory_space<vmem>>, vector<1x256x128xbf16>
    %49 = vector.shape_cast %48 : vector<1x256x128xbf16> to vector<256x128xbf16>
    %c8 = arith.constant 8 : index
    %c0_51 = arith.constant 0 : index
    %c0_52 = arith.constant 0 : index
    %50 = vector.load %arg2[%c8, %c0_51, %c0_52] : memref<9x128x128xbf16, #tpu.memory_space<vmem>>, vector<1x128x128xbf16>
    %51 = vector.shape_cast %50 : vector<1x128x128xbf16> to vector<128x128xbf16>
    %cst_53 = arith.constant dense<0.000000e+00> : vector<256x128xf32>
    %52 = tpu.matmul %49, %51, %cst_53 {dimension_numbers = #tpu.dot_dimension_numbers<[1], [0], [0], [1], [0, 0, 1, 1], [], []>} : vector<256x128xbf16>, vector<128x128xbf16>, vector<256x128xf32> -> vector<256x128xf32>
    %53 = arith.addf %47, %52 : vector<256x128xf32>
    %54 = vector.broadcast %0 : vector<1x128xf32> to vector<256x128xf32>
    %55 = arith.addf %53, %54 : vector<256x128xf32>
    %c0_54 = arith.constant 0 : index
    %c0_55 = arith.constant 0 : index
    %56 = vector.load %arg4[%c0_54, %c0_55] : memref<288x128xf32, #tpu.memory_space<vmem>>, vector<256x128xf32>
    tpu.vector_store %arg4[%c0_54, %c0_55], %55 {strides = array<i32>} : memref<288x128xf32, #tpu.memory_space<vmem>>, vector<256x128xf32>,
    %c0_56 = arith.constant 0 : index
    %c256 = arith.constant 256 : index
    %c0_57 = arith.constant 0 : index
    %57 = vector.load %arg1[%c0_56, %c256, %c0_57] : memref<6x304x128xbf16, #tpu.memory_space<vmem>>, vector<1x32x128xbf16>
    %58 = vector.shape_cast %57 : vector<1x32x128xbf16> to vector<32x128xbf16>
    %c0_58 = arith.constant 0 : index
    %c0_59 = arith.constant 0 : index
    %c0_60 = arith.constant 0 : index
    %59 = vector.load %arg2[%c0_58, %c0_59, %c0_60] : memref<9x128x128xbf16, #tpu.memory_space<vmem>>, vector<1x128x128xbf16>
    %60 = vector.shape_cast %59 : vector<1x128x128xbf16> to vector<128x128xbf16>
    %cst_61 = arith.constant dense<0.000000e+00> : vector<32x128xf32>
    %61 = tpu.matmul %58, %60, %cst_61 {dimension_numbers = #tpu.dot_dimension_numbers<[1], [0], [0], [1], [0, 0, 1, 1], [], []>} : vector<32x128xbf16>, vector<128x128xbf16>, vector<32x128xf32> -> vector<32x128xf32>
    %c1_62 = arith.constant 1 : index
    %c256_63 = arith.constant 256 : index
    %c0_64 = arith.constant 0 : index
    %62 = vector.load %arg1[%c1_62, %c256_63, %c0_64] : memref<6x304x128xbf16, #tpu.memory_space<vmem>>, vector<1x32x128xbf16>
    %63 = vector.shape_cast %62 : vector<1x32x128xbf16> to vector<32x128xbf16>
    %c1_65 = arith.constant 1 : index
    %c0_66 = arith.constant 0 : index
    %c0_67 = arith.constant 0 : index
    %64 = vector.load %arg2[%c1_65, %c0_66, %c0_67] : memref<9x128x128xbf16, #tpu.memory_space<vmem>>, vector<1x128x128xbf16>
    %65 = vector.shape_cast %64 : vector<1x128x128xbf16> to vector<128x128xbf16>
    %cst_68 = arith.constant dense<0.000000e+00> : vector<32x128xf32>
    %66 = tpu.matmul %63, %65, %cst_68 {dimension_numbers = #tpu.dot_dimension_numbers<[1], [0], [0], [1], [0, 0, 1, 1], [], []>} : vector<32x128xbf16>, vector<128x128xbf16>, vector<32x128xf32> -> vector<32x128xf32>
    %67 = arith.addf %61, %66 : vector<32x128xf32>
    %c4_69 = arith.constant 4 : index
    %c256_70 = arith.constant 256 : index
    %c0_71 = arith.constant 0 : index
    %68 = vector.load %arg1[%c4_69, %c256_70, %c0_71] : memref<6x304x128xbf16, #tpu.memory_space<vmem>>, vector<1x32x128xbf16>
    %69 = vector.shape_cast %68 : vector<1x32x128xbf16> to vector<32x128xbf16>
    %c2_72 = arith.constant 2 : index
    %c0_73 = arith.constant 0 : index
    %c0_74 = arith.constant 0 : index
    %70 = vector.load %arg2[%c2_72, %c0_73, %c0_74] : memref<9x128x128xbf16, #tpu.memory_space<vmem>>, vector<1x128x128xbf16>
    %71 = vector.shape_cast %70 : vector<1x128x128xbf16> to vector<128x128xbf16>
    %cst_75 = arith.constant dense<0.000000e+00> : vector<32x128xf32>
    %72 = tpu.matmul %69, %71, %cst_75 {dimension_numbers = #tpu.dot_dimension_numbers<[1], [0], [0], [1], [0, 0, 1, 1], [], []>} : vector<32x128xbf16>, vector<128x128xbf16>, vector<32x128xf32> -> vector<32x128xf32>
    %73 = arith.addf %67, %72 : vector<32x128xf32>
    %c2_76 = arith.constant 2 : index
    %c256_77 = arith.constant 256 : index
    %c0_78 = arith.constant 0 : index
    %74 = vector.load %arg1[%c2_76, %c256_77, %c0_78] : memref<6x304x128xbf16, #tpu.memory_space<vmem>>, vector<1x32x128xbf16>
    %75 = vector.shape_cast %74 : vector<1x32x128xbf16> to vector<32x128xbf16>
    %c3_79 = arith.constant 3 : index
    %c0_80 = arith.constant 0 : index
    %c0_81 = arith.constant 0 : index
    %76 = vector.load %arg2[%c3_79, %c0_80, %c0_81] : memref<9x128x128xbf16, #tpu.memory_space<vmem>>, vector<1x128x128xbf16>
    %77 = vector.shape_cast %76 : vector<1x128x128xbf16> to vector<128x128xbf16>
    %cst_82 = arith.constant dense<0.000000e+00> : vector<32x128xf32>
    %78 = tpu.matmul %75, %77, %cst_82 {dimension_numbers = #tpu.dot_dimension_numbers<[1], [0], [0], [1], [0, 0, 1, 1], [], []>} : vector<32x128xbf16>, vector<128x128xbf16>, vector<32x128xf32> -> vector<32x128xf32>
    %79 = arith.addf %73, %78 : vector<32x128xf32>
    %c3_83 = arith.constant 3 : index
    %c256_84 = arith.constant 256 : index
    %c0_85 = arith.constant 0 : index
    %80 = vector.load %arg1[%c3_83, %c256_84, %c0_85] : memref<6x304x128xbf16, #tpu.memory_space<vmem>>, vector<1x32x128xbf16>
    %81 = vector.shape_cast %80 : vector<1x32x128xbf16> to vector<32x128xbf16>
    %c4_86 = arith.constant 4 : index
    %c0_87 = arith.constant 0 : index
    %c0_88 = arith.constant 0 : index
    %82 = vector.load %arg2[%c4_86, %c0_87, %c0_88] : memref<9x128x128xbf16, #tpu.memory_space<vmem>>, vector<1x128x128xbf16>
    %83 = vector.shape_cast %82 : vector<1x128x128xbf16> to vector<128x128xbf16>
    %cst_89 = arith.constant dense<0.000000e+00> : vector<32x128xf32>
    %84 = tpu.matmul %81, %83, %cst_89 {dimension_numbers = #tpu.dot_dimension_numbers<[1], [0], [0], [1], [0, 0, 1, 1], [], []>} : vector<32x128xbf16>, vector<128x128xbf16>, vector<32x128xf32> -> vector<32x128xf32>
    %85 = arith.addf %79, %84 : vector<32x128xf32>
    %c5_90 = arith.constant 5 : index
    %c256_91 = arith.constant 256 : index
    %c0_92 = arith.constant 0 : index
    %86 = vector.load %arg1[%c5_90, %c256_91, %c0_92] : memref<6x304x128xbf16, #tpu.memory_space<vmem>>, vector<1x32x128xbf16>
    %87 = vector.shape_cast %86 : vector<1x32x128xbf16> to vector<32x128xbf16>
    %c5_93 = arith.constant 5 : index
    %c0_94 = arith.constant 0 : index
    %c0_95 = arith.constant 0 : index
    %88 = vector.load %arg2[%c5_93, %c0_94, %c0_95] : memref<9x128x128xbf16, #tpu.memory_space<vmem>>, vector<1x128x128xbf16>
    %89 = vector.shape_cast %88 : vector<1x128x128xbf16> to vector<128x128xbf16>
    %cst_96 = arith.constant dense<0.000000e+00> : vector<32x128xf32>
    %90 = tpu.matmul %87, %89, %cst_96 {dimension_numbers = #tpu.dot_dimension_numbers<[1], [0], [0], [1], [0, 0, 1, 1], [], []>} : vector<32x128xbf16>, vector<128x128xbf16>, vector<32x128xf32> -> vector<32x128xf32>
    %91 = arith.addf %85, %90 : vector<32x128xf32>
    %c0_97 = arith.constant 0 : index
    %c272 = arith.constant 272 : index
    %c0_98 = arith.constant 0 : index
    %92 = vector.load %arg1[%c0_97, %c272, %c0_98] : memref<6x304x128xbf16, #tpu.memory_space<vmem>>, vector<1x32x128xbf16>
    %93 = vector.shape_cast %92 : vector<1x32x128xbf16> to vector<32x128xbf16>
    %c6_99 = arith.constant 6 : index
    %c0_100 = arith.constant 0 : index
    %c0_101 = arith.constant 0 : index
    %94 = vector.load %arg2[%c6_99, %c0_100, %c0_101] : memref<9x128x128xbf16, #tpu.memory_space<vmem>>, vector<1x128x128xbf16>
    %95 = vector.shape_cast %94 : vector<1x128x128xbf16> to vector<128x128xbf16>
    %cst_102 = arith.constant dense<0.000000e+00> : vector<32x128xf32>
    %96 = tpu.matmul %93, %95, %cst_102 {dimension_numbers = #tpu.dot_dimension_numbers<[1], [0], [0], [1], [0, 0, 1, 1], [], []>} : vector<32x128xbf16>, vector<128x128xbf16>, vector<32x128xf32> -> vector<32x128xf32>
    %97 = arith.addf %91, %96 : vector<32x128xf32>
    %c1_103 = arith.constant 1 : index
    %c272_104 = arith.constant 272 : index
    %c0_105 = arith.constant 0 : index
    %98 = vector.load %arg1[%c1_103, %c272_104, %c0_105] : memref<6x304x128xbf16, #tpu.memory_space<vmem>>, vector<1x32x128xbf16>
    %99 = vector.shape_cast %98 : vector<1x32x128xbf16> to vector<32x128xbf16>
    %c7_106 = arith.constant 7 : index
    %c0_107 = arith.constant 0 : index
    %c0_108 = arith.constant 0 : index
    %100 = vector.load %arg2[%c7_106, %c0_107, %c0_108] : memref<9x128x128xbf16, #tpu.memory_space<vmem>>, vector<1x128x128xbf16>
    %101 = vector.shape_cast %100 : vector<1x128x128xbf16> to vector<128x128xbf16>
    %cst_109 = arith.constant dense<0.000000e+00> : vector<32x128xf32>
    %102 = tpu.matmul %99, %101, %cst_109 {dimension_numbers = #tpu.dot_dimension_numbers<[1], [0], [0], [1], [0, 0, 1, 1], [], []>} : vector<32x128xbf16>, vector<128x128xbf16>, vector<32x128xf32> -> vector<32x128xf32>
    %103 = arith.addf %97, %102 : vector<32x128xf32>
    %c4_110 = arith.constant 4 : index
    %c272_111 = arith.constant 272 : index
    %c0_112 = arith.constant 0 : index
    %104 = vector.load %arg1[%c4_110, %c272_111, %c0_112] : memref<6x304x128xbf16, #tpu.memory_space<vmem>>, vector<1x32x128xbf16>
    %105 = vector.shape_cast %104 : vector<1x32x128xbf16> to vector<32x128xbf16>
    %c8_113 = arith.constant 8 : index
    %c0_114 = arith.constant 0 : index
    %c0_115 = arith.constant 0 : index
    %106 = vector.load %arg2[%c8_113, %c0_114, %c0_115] : memref<9x128x128xbf16, #tpu.memory_space<vmem>>, vector<1x128x128xbf16>
    %107 = vector.shape_cast %106 : vector<1x128x128xbf16> to vector<128x128xbf16>
    %cst_116 = arith.constant dense<0.000000e+00> : vector<32x128xf32>
    %108 = tpu.matmul %105, %107, %cst_116 {dimension_numbers = #tpu.dot_dimension_numbers<[1], [0], [0], [1], [0, 0, 1, 1], [], []>} : vector<32x128xbf16>, vector<128x128xbf16>, vector<32x128xf32> -> vector<32x128xf32>
    %109 = arith.addf %103, %108 : vector<32x128xf32>
    %110 = vector.broadcast %0 : vector<1x128xf32> to vector<32x128xf32>
    %111 = arith.addf %109, %110 : vector<32x128xf32>
    %c256_117 = arith.constant 256 : index
    %c0_118 = arith.constant 0 : index
    %112 = vector.load %arg4[%c256_117, %c0_118] : memref<288x128xf32, #tpu.memory_space<vmem>>, vector<32x128xf32>
    tpu.vector_store %arg4[%c256_117, %c0_118], %111 {strides = array<i32>} : memref<288x128xf32, #tpu.memory_space<vmem>>, vector<32x128xf32>,
    return
  }
  func.func @transform_0(%arg0: i32) -> (i32, i32, i32) {
    %c0_i32 = arith.constant 0 : i32
    %c0_i32_0 = arith.constant 0 : i32
    %c0_i32_1 = arith.constant 0 : i32
    %c0_i32_2 = arith.constant 0 : i32
    return %c0_i32, %c0_i32_0, %c0_i32_1 : i32, i32, i32
  }
  func.func @transform_1(%arg0: i32) -> (i32, i32, i32) {
    %c0_i32 = arith.constant 0 : i32
    %c0_i32_0 = arith.constant 0 : i32
    %c0_i32_1 = arith.constant 0 : i32
    return %c0_i32, %c0_i32_0, %arg0 : i32, i32, i32
  }
  func.func @transform_2(%arg0: i32) -> (i32, i32) {
    %c0_i32 = arith.constant 0 : i32
    %c0_i32_0 = arith.constant 0 : i32
    return %c0_i32, %arg0 : i32, i32
  }
  func.func @transform_3(%arg0: i32) -> (i32, i32) {
    %c0_i32 = arith.constant 0 : i32
    %c0_i32_0 = arith.constant 0 : i32
    return %c0_i32, %arg0 : i32, i32
  }
}

module attributes {stable_mosaic.version = 11 : i64} {
  func.func @_conv3x3s2_kernel(%arg0: i32, %arg1: memref<6x176x128xbf16, #tpu.memory_space<vmem>>, %arg2: memref<9x128x128xbf16, #tpu.memory_space<vmem>>, %arg3: memref<1x128xf32, #tpu.memory_space<vmem>>, %arg4: memref<160x128xf32, #tpu.memory_space<vmem>>) attributes {dimension_semantics = [#tpu.dimension_semantics<parallel>], iteration_bounds = array<i64: 1>, scalar_prefetch = 0 : i64, scratch_operands = 0 : i64, tpu.core_type = #tpu.core_type<tc>, window_params = [{pipeline_mode = #tpu.pipeline_mode<synchronous>, transform_indices = @transform_0, window_bounds = array<i64: 6, 176, 128>}, {transform_indices = @transform_1, window_bounds = array<i64: 9, 128, 128>}, {transform_indices = @transform_2, window_bounds = array<i64: 1, 128>}, {transform_indices = @transform_3, window_bounds = array<i64: 160, 128>}]} {
    %c0 = arith.constant 0 : index
    %c0_0 = arith.constant 0 : index
    %0 = vector.load %arg3[%c0, %c0_0] : memref<1x128xf32, #tpu.memory_space<vmem>>, vector<1x128xf32>
    %c0_1 = arith.constant 0 : index
    %c0_2 = arith.constant 0 : index
    %c0_3 = arith.constant 0 : index
    %1 = vector.load %arg1[%c0_1, %c0_2, %c0_3] : memref<6x176x128xbf16, #tpu.memory_space<vmem>>, vector<1x160x128xbf16>
    %2 = vector.shape_cast %1 : vector<1x160x128xbf16> to vector<160x128xbf16>
    %c0_4 = arith.constant 0 : index
    %c0_5 = arith.constant 0 : index
    %c0_6 = arith.constant 0 : index
    %3 = vector.load %arg2[%c0_4, %c0_5, %c0_6] : memref<9x128x128xbf16, #tpu.memory_space<vmem>>, vector<1x128x128xbf16>
    %4 = vector.shape_cast %3 : vector<1x128x128xbf16> to vector<128x128xbf16>
    %cst = arith.constant dense<0.000000e+00> : vector<160x128xf32>
    %5 = tpu.matmul %2, %4, %cst {dimension_numbers = #tpu.dot_dimension_numbers<[1], [0], [0], [1], [0, 0, 1, 1], [], []>} : vector<160x128xbf16>, vector<128x128xbf16>, vector<160x128xf32> -> vector<160x128xf32>
    %c1 = arith.constant 1 : index
    %c0_7 = arith.constant 0 : index
    %c0_8 = arith.constant 0 : index
    %6 = vector.load %arg1[%c1, %c0_7, %c0_8] : memref<6x176x128xbf16, #tpu.memory_space<vmem>>, vector<1x160x128xbf16>
    %7 = vector.shape_cast %6 : vector<1x160x128xbf16> to vector<160x128xbf16>
    %c1_9 = arith.constant 1 : index
    %c0_10 = arith.constant 0 : index
    %c0_11 = arith.constant 0 : index
    %8 = vector.load %arg2[%c1_9, %c0_10, %c0_11] : memref<9x128x128xbf16, #tpu.memory_space<vmem>>, vector<1x128x128xbf16>
    %9 = vector.shape_cast %8 : vector<1x128x128xbf16> to vector<128x128xbf16>
    %cst_12 = arith.constant dense<0.000000e+00> : vector<160x128xf32>
    %10 = tpu.matmul %7, %9, %cst_12 {dimension_numbers = #tpu.dot_dimension_numbers<[1], [0], [0], [1], [0, 0, 1, 1], [], []>} : vector<160x128xbf16>, vector<128x128xbf16>, vector<160x128xf32> -> vector<160x128xf32>
    %11 = arith.addf %5, %10 : vector<160x128xf32>
    %c4 = arith.constant 4 : index
    %c0_13 = arith.constant 0 : index
    %c0_14 = arith.constant 0 : index
    %12 = vector.load %arg1[%c4, %c0_13, %c0_14] : memref<6x176x128xbf16, #tpu.memory_space<vmem>>, vector<1x160x128xbf16>
    %13 = vector.shape_cast %12 : vector<1x160x128xbf16> to vector<160x128xbf16>
    %c2 = arith.constant 2 : index
    %c0_15 = arith.constant 0 : index
    %c0_16 = arith.constant 0 : index
    %14 = vector.load %arg2[%c2, %c0_15, %c0_16] : memref<9x128x128xbf16, #tpu.memory_space<vmem>>, vector<1x128x128xbf16>
    %15 = vector.shape_cast %14 : vector<1x128x128xbf16> to vector<128x128xbf16>
    %cst_17 = arith.constant dense<0.000000e+00> : vector<160x128xf32>
    %16 = tpu.matmul %13, %15, %cst_17 {dimension_numbers = #tpu.dot_dimension_numbers<[1], [0], [0], [1], [0, 0, 1, 1], [], []>} : vector<160x128xbf16>, vector<128x128xbf16>, vector<160x128xf32> -> vector<160x128xf32>
    %17 = arith.addf %11, %16 : vector<160x128xf32>
    %c2_18 = arith.constant 2 : index
    %c0_19 = arith.constant 0 : index
    %c0_20 = arith.constant 0 : index
    %18 = vector.load %arg1[%c2_18, %c0_19, %c0_20] : memref<6x176x128xbf16, #tpu.memory_space<vmem>>, vector<1x160x128xbf16>
    %19 = vector.shape_cast %18 : vector<1x160x128xbf16> to vector<160x128xbf16>
    %c3 = arith.constant 3 : index
    %c0_21 = arith.constant 0 : index
    %c0_22 = arith.constant 0 : index
    %20 = vector.load %arg2[%c3, %c0_21, %c0_22] : memref<9x128x128xbf16, #tpu.memory_space<vmem>>, vector<1x128x128xbf16>
    %21 = vector.shape_cast %20 : vector<1x128x128xbf16> to vector<128x128xbf16>
    %cst_23 = arith.constant dense<0.000000e+00> : vector<160x128xf32>
    %22 = tpu.matmul %19, %21, %cst_23 {dimension_numbers = #tpu.dot_dimension_numbers<[1], [0], [0], [1], [0, 0, 1, 1], [], []>} : vector<160x128xbf16>, vector<128x128xbf16>, vector<160x128xf32> -> vector<160x128xf32>
    %23 = arith.addf %17, %22 : vector<160x128xf32>
    %c3_24 = arith.constant 3 : index
    %c0_25 = arith.constant 0 : index
    %c0_26 = arith.constant 0 : index
    %24 = vector.load %arg1[%c3_24, %c0_25, %c0_26] : memref<6x176x128xbf16, #tpu.memory_space<vmem>>, vector<1x160x128xbf16>
    %25 = vector.shape_cast %24 : vector<1x160x128xbf16> to vector<160x128xbf16>
    %c4_27 = arith.constant 4 : index
    %c0_28 = arith.constant 0 : index
    %c0_29 = arith.constant 0 : index
    %26 = vector.load %arg2[%c4_27, %c0_28, %c0_29] : memref<9x128x128xbf16, #tpu.memory_space<vmem>>, vector<1x128x128xbf16>
    %27 = vector.shape_cast %26 : vector<1x128x128xbf16> to vector<128x128xbf16>
    %cst_30 = arith.constant dense<0.000000e+00> : vector<160x128xf32>
    %28 = tpu.matmul %25, %27, %cst_30 {dimension_numbers = #tpu.dot_dimension_numbers<[1], [0], [0], [1], [0, 0, 1, 1], [], []>} : vector<160x128xbf16>, vector<128x128xbf16>, vector<160x128xf32> -> vector<160x128xf32>
    %29 = arith.addf %23, %28 : vector<160x128xf32>
    %c5 = arith.constant 5 : index
    %c0_31 = arith.constant 0 : index
    %c0_32 = arith.constant 0 : index
    %30 = vector.load %arg1[%c5, %c0_31, %c0_32] : memref<6x176x128xbf16, #tpu.memory_space<vmem>>, vector<1x160x128xbf16>
    %31 = vector.shape_cast %30 : vector<1x160x128xbf16> to vector<160x128xbf16>
    %c5_33 = arith.constant 5 : index
    %c0_34 = arith.constant 0 : index
    %c0_35 = arith.constant 0 : index
    %32 = vector.load %arg2[%c5_33, %c0_34, %c0_35] : memref<9x128x128xbf16, #tpu.memory_space<vmem>>, vector<1x128x128xbf16>
    %33 = vector.shape_cast %32 : vector<1x128x128xbf16> to vector<128x128xbf16>
    %cst_36 = arith.constant dense<0.000000e+00> : vector<160x128xf32>
    %34 = tpu.matmul %31, %33, %cst_36 {dimension_numbers = #tpu.dot_dimension_numbers<[1], [0], [0], [1], [0, 0, 1, 1], [], []>} : vector<160x128xbf16>, vector<128x128xbf16>, vector<160x128xf32> -> vector<160x128xf32>
    %35 = arith.addf %29, %34 : vector<160x128xf32>
    %c0_37 = arith.constant 0 : index
    %c16 = arith.constant 16 : index
    %c0_38 = arith.constant 0 : index
    %36 = vector.load %arg1[%c0_37, %c16, %c0_38] : memref<6x176x128xbf16, #tpu.memory_space<vmem>>, vector<1x160x128xbf16>
    %37 = vector.shape_cast %36 : vector<1x160x128xbf16> to vector<160x128xbf16>
    %c6 = arith.constant 6 : index
    %c0_39 = arith.constant 0 : index
    %c0_40 = arith.constant 0 : index
    %38 = vector.load %arg2[%c6, %c0_39, %c0_40] : memref<9x128x128xbf16, #tpu.memory_space<vmem>>, vector<1x128x128xbf16>
    %39 = vector.shape_cast %38 : vector<1x128x128xbf16> to vector<128x128xbf16>
    %cst_41 = arith.constant dense<0.000000e+00> : vector<160x128xf32>
    %40 = tpu.matmul %37, %39, %cst_41 {dimension_numbers = #tpu.dot_dimension_numbers<[1], [0], [0], [1], [0, 0, 1, 1], [], []>} : vector<160x128xbf16>, vector<128x128xbf16>, vector<160x128xf32> -> vector<160x128xf32>
    %41 = arith.addf %35, %40 : vector<160x128xf32>
    %c1_42 = arith.constant 1 : index
    %c16_43 = arith.constant 16 : index
    %c0_44 = arith.constant 0 : index
    %42 = vector.load %arg1[%c1_42, %c16_43, %c0_44] : memref<6x176x128xbf16, #tpu.memory_space<vmem>>, vector<1x160x128xbf16>
    %43 = vector.shape_cast %42 : vector<1x160x128xbf16> to vector<160x128xbf16>
    %c7 = arith.constant 7 : index
    %c0_45 = arith.constant 0 : index
    %c0_46 = arith.constant 0 : index
    %44 = vector.load %arg2[%c7, %c0_45, %c0_46] : memref<9x128x128xbf16, #tpu.memory_space<vmem>>, vector<1x128x128xbf16>
    %45 = vector.shape_cast %44 : vector<1x128x128xbf16> to vector<128x128xbf16>
    %cst_47 = arith.constant dense<0.000000e+00> : vector<160x128xf32>
    %46 = tpu.matmul %43, %45, %cst_47 {dimension_numbers = #tpu.dot_dimension_numbers<[1], [0], [0], [1], [0, 0, 1, 1], [], []>} : vector<160x128xbf16>, vector<128x128xbf16>, vector<160x128xf32> -> vector<160x128xf32>
    %47 = arith.addf %41, %46 : vector<160x128xf32>
    %c4_48 = arith.constant 4 : index
    %c16_49 = arith.constant 16 : index
    %c0_50 = arith.constant 0 : index
    %48 = vector.load %arg1[%c4_48, %c16_49, %c0_50] : memref<6x176x128xbf16, #tpu.memory_space<vmem>>, vector<1x160x128xbf16>
    %49 = vector.shape_cast %48 : vector<1x160x128xbf16> to vector<160x128xbf16>
    %c8 = arith.constant 8 : index
    %c0_51 = arith.constant 0 : index
    %c0_52 = arith.constant 0 : index
    %50 = vector.load %arg2[%c8, %c0_51, %c0_52] : memref<9x128x128xbf16, #tpu.memory_space<vmem>>, vector<1x128x128xbf16>
    %51 = vector.shape_cast %50 : vector<1x128x128xbf16> to vector<128x128xbf16>
    %cst_53 = arith.constant dense<0.000000e+00> : vector<160x128xf32>
    %52 = tpu.matmul %49, %51, %cst_53 {dimension_numbers = #tpu.dot_dimension_numbers<[1], [0], [0], [1], [0, 0, 1, 1], [], []>} : vector<160x128xbf16>, vector<128x128xbf16>, vector<160x128xf32> -> vector<160x128xf32>
    %53 = arith.addf %47, %52 : vector<160x128xf32>
    %54 = vector.broadcast %0 : vector<1x128xf32> to vector<160x128xf32>
    %55 = arith.addf %53, %54 : vector<160x128xf32>
    %c0_54 = arith.constant 0 : index
    %c0_55 = arith.constant 0 : index
    %56 = vector.load %arg4[%c0_54, %c0_55] : memref<160x128xf32, #tpu.memory_space<vmem>>, vector<160x128xf32>
    tpu.vector_store %arg4[%c0_54, %c0_55], %55 {strides = array<i32>} : memref<160x128xf32, #tpu.memory_space<vmem>>, vector<160x128xf32>,
    return
  }
  func.func @transform_0(%arg0: i32) -> (i32, i32, i32) {
    %c0_i32 = arith.constant 0 : i32
    %c0_i32_0 = arith.constant 0 : i32
    %c0_i32_1 = arith.constant 0 : i32
    %c0_i32_2 = arith.constant 0 : i32
    return %c0_i32, %c0_i32_0, %c0_i32_1 : i32, i32, i32
  }
  func.func @transform_1(%arg0: i32) -> (i32, i32, i32) {
    %c0_i32 = arith.constant 0 : i32
    %c0_i32_0 = arith.constant 0 : i32
    %c0_i32_1 = arith.constant 0 : i32
    return %c0_i32, %c0_i32_0, %arg0 : i32, i32, i32
  }
  func.func @transform_2(%arg0: i32) -> (i32, i32) {
    %c0_i32 = arith.constant 0 : i32
    %c0_i32_0 = arith.constant 0 : i32
    return %c0_i32, %arg0 : i32, i32
  }
  func.func @transform_3(%arg0: i32) -> (i32, i32) {
    %c0_i32 = arith.constant 0 : i32
    %c0_i32_0 = arith.constant 0 : i32
    return %c0_i32, %arg0 : i32, i32
  }
}

</mosaic_0001>

<bundles_post_ra>
// kernel: _lambda_.3
= control target key start
LH: loop header
LB: loop body
LE: loop exit
PB: predicated region body
PF: predicated region fallthrough
CT: control target
= control target key end

     0   :  { %s3856_s1 = inlined_call_operand.vmem [shape: bf16[9,128,128], index: 1, kind: input, shape index: {}]   ;;  %s3857_s0 = inlined_call_operand.vmem [shape: bf16[6,176,128], index: 0, kind: input, shape index: {}]   ;;  %s3858_s2 = inlined_call_operand.vmem [shape: f32[1,128], index: 2, kind: input, shape index: {}]   ;;  %s3859_s3 = inlined_call_operand.vmem [shape: f32[160,128], index: 3, kind: output, shape index: {}]  }
   0x1   :  { %v2993_v0 = vld [vmem:[%s3856_s1 + $0x78] sm:$0xff]  ;;  %v2992_v1 = vld [vmem:[%s3856_s1 + $0x70] sm:$0xff]  ;;  %v2991_v2 = vld [vmem:[%s3856_s1 + $0x68] sm:$0xff] }
   0x2   :  { %197 = vmatpush.bf16.msra.mxu0 %v2993_v0  ;;  %3120 = vmatpush.bf16.msra.mxu1 %v2993_v0  ;;  %v2990_v3 = vld [vmem:[%s3856_s1 + $0x60] sm:$0xff]  ;;  %v2989_v4 = vld [vmem:[%s3856_s1 + $0x58] sm:$0xff]  ;;  %v2988_v5 = vld [vmem:[%s3856_s1 + $0x50] sm:$0xff] }
   0x3   :  { %3121 = vmatpush.bf16.msra.mxu2 %v2993_v0  ;;  %3122 = vmatpush.bf16.msra.mxu3 %v2993_v0  ;;  %v2987_v6 = vld [vmem:[%s3856_s1 + $0x48] sm:$0xff]  ;;  %v2986_v7 = vld [vmem:[%s3856_s1 + $0x40] sm:$0xff]  ;;  %v2975_v8 = vld [vmem:[%s3856_s1 + $0x38] sm:$0xff] }
   0x4   :  { %v3011_v9 = vld [vmem:[%s3856_s1 + $0xb8] sm:$0xff]  ;;  %v2979_v11 = vld [vmem:[%s3857_s0 + $0x70] sm:$0xff]  ;;  %v2982_v12 = vld [vmem:[%s3857_s0 + $0x88] sm:$0xff] }
   0x5   :  { %v2976_v10 = vld [vmem:[%s3857_s0 + $0x58] sm:$0xff]  ;;  %v2974_v15 = vld [vmem:[%s3856_s1 + $0x30] sm:$0xff]  ;;  %v2973_v19 = vld [vmem:[%s3856_s1 + $0x28] sm:$0xff] }
   0x6   :  { %198 = vmatpush.bf16.msra.mxu0 %v2992_v1  ;;  %3123 = vmatpush.bf16.msra.mxu1 %v2992_v1  ;;  %v3047_v13 = vld [vmem:[%s3856_s1 + $0x138] sm:$0xff]  ;;  %v3010_v17 = vld [vmem:[%s3856_s1 + $0xb0] sm:$0xff]  ;;  %v3009_v21 = vld [vmem:[%s3856_s1 + $0xa8] sm:$0xff] }
   0x7   :  { %3124 = vmatpush.bf16.msra.mxu2 %v2992_v1  ;;  %3125 = vmatpush.bf16.msra.mxu3 %v2992_v1  ;;  %v2984_v14 = vld [vmem:[%s3857_s0 + $0x98] sm:$0xff]  ;;  %v3046_v18 = vld [vmem:[%s3856_s1 + $0x130] sm:$0xff]  ;;  %v3045_v22 = vld [vmem:[%s3856_s1 + $0x128] sm:$0xff] }
   0x8   :  { %v3029_v16 = vld [vmem:[%s3856_s1 + $0xf8] sm:$0xff]  ;;  %v3028_v20 = vld [vmem:[%s3856_s1 + $0xf0] sm:$0xff]  ;;  %v2972_v23 = vld [vmem:[%s3856_s1 + $0x20] sm:$0xff] }
   0x9   :  { %v3027_v24 = vld [vmem:[%s3856_s1 + $0xe8] sm:$0xff]  ;;  %v3008_v25 = vld [vmem:[%s3856_s1 + $0xa0] sm:$0xff]  ;;  %v2971_v27 = vld [vmem:[%s3856_s1 + $0x18] sm:$0xff] }
   0xa   :  { %199 = vmatpush.bf16.msra.mxu0 %v2991_v2  ;;  %3126 = vmatpush.bf16.msra.mxu1 %v2991_v2  ;;  %v3044_v26 = vld [vmem:[%s3856_s1 + $0x120] sm:$0xff]  ;;  %v3007_v29 = vld [vmem:[%s3856_s1 + $0x98] sm:$0xff]  ;;  %v2983_v32 = vld [vmem:[%s3857_s0 + $0x90] sm:$0xff] }
   0xb   :  { %3127 = vmatpush.bf16.msra.mxu2 %v2991_v2  ;;  %3128 = vmatpush.bf16.msra.mxu3 %v2991_v2  ;;  %v3026_v28 = vld [vmem:[%s3856_s1 + $0xe0] sm:$0xff]  ;;  %v2980_v31 = vld [vmem:[%s3857_s0 + $0x78] sm:$0xff]  ;;  %v2970_v35 = vld [vmem:[%s3856_s1 + $0x10] sm:$0xff] }
   0xc   :  { %v2977_v30 = vld [vmem:[%s3857_s0 + $0x60] sm:$0xff]  ;;  %v3043_v33 = vld [vmem:[%s3856_s1 + $0x118] sm:$0xff]  ;;  %v3006_v37 = vld [vmem:[%s3856_s1 + $0x90] sm:$0xff] }
   0xd   :  { %v2985_v34 = vld [vmem:[%s3857_s0 + $0xa0] sm:$0xff]  ;;  %v3025_v36 = vld [vmem:[%s3856_s1 + $0xd8] sm:$0xff]  ;;  %v3042_v38 = vld [vmem:[%s3856_s1 + $0x110] sm:$0xff] }
   0xe   :  { %200 = vmatpush.bf16.msra.mxu0 %v2990_v3  ;;  %3129 = vmatpush.bf16.msra.mxu1 %v2990_v3  ;;  %v2969_v39 = vld [vmem:[%s3856_s1 + $0x8] sm:$0xff]  ;;  %v3024_v40 = vld [vmem:[%s3856_s1 + $0xd0] sm:$0xff]  ;;  %v2968_v43 = vld [vmem:[%s3856_s1] sm:$0xff] }
   0xf   :  { %3130 = vmatpush.bf16.msra.mxu2 %v2990_v3  ;;  %3131 = vmatpush.bf16.msra.mxu3 %v2990_v3  ;;  %v3005_v41 = vld [vmem:[%s3856_s1 + $0x88] sm:$0xff]  ;;  %v3004_v45 = vld [vmem:[%s3856_s1 + $0x80] sm:$0xff]  ;;  %v3083_v46 = vld [vmem:[%s3856_s1 + $0x1b8] sm:$0xff] }
  0x10   :  { %v3041_v42 = vld [vmem:[%s3856_s1 + $0x108] sm:$0xff]  ;;  %v3065_v47 = vld [vmem:[%s3856_s1 + $0x178] sm:$0xff]  ;;  %v3040_v48 = vld [vmem:[%s3856_s1 + $0x100] sm:$0xff] }
  0x11   :  { %v3023_v44 = vld [vmem:[%s3856_s1 + $0xc8] sm:$0xff]  ;;  %v3119_v49 = vld [vmem:[%s3856_s1 + $0x238] sm:$0xff]  ;;  %v3022_v50 = vld [vmem:[%s3856_s1 + $0xc0] sm:$0xff] }
  0x12   :  { %201 = vmatpush.bf16.msra.mxu0 %v2989_v4  ;;  %3132 = vmatpush.bf16.msra.mxu1 %v2989_v4  ;;  %v2978_v51 = vld [vmem:[%s3857_s0 + $0x68] sm:$0xff]  ;;  %v2981_v52 = vld [vmem:[%s3857_s0 + $0x80] sm:$0xff]  ;;  %v3101_v54 = vld [vmem:[%s3856_s1 + $0x1f8] sm:$0xff] }
  0x13   :  { %3133 = vmatpush.bf16.msra.mxu2 %v2989_v4  ;;  %3134 = vmatpush.bf16.msra.mxu3 %v2989_v4  ;;  %v2994_v53 = vld [vmem:[%s3857_s0 + $0x160] sm:$0xff]  ;;  %v3012_v55 = vld [vmem:[%s3857_s0 + $0xb0] sm:$0xff]  ;;  %v3030_v61 = vld [vmem:[%s3857_s0 + $0x108] sm:$0xff] }
  0x14   :  { %v3082_v56 = vld [vmem:[%s3856_s1 + $0x1b0] sm:$0xff]  ;;  %v2958_v60 = vld [vmem:[%s3857_s0] sm:$0xff]  ;;  %v2995_v62 = vld [vmem:[%s3857_s0 + $0x168] sm:$0xff] }
  0x15   :  { %v3100_v57 = vld [vmem:[%s3856_s1 + $0x1f0] sm:$0xff]  ;;  %v3013_v63 = vld [vmem:[%s3857_s0 + $0xb8] sm:$0xff]  ;;  %v3081_v0 = vld [vmem:[%s3856_s1 + $0x1a8] sm:$0xff] }
  0x16   :  { %202 = vmatpush.bf16.msra.mxu0 %v2988_v5  ;;  %3135 = vmatpush.bf16.msra.mxu1 %v2988_v5  ;;  %v3064_v58 = vld [vmem:[%s3856_s1 + $0x170] sm:$0xff]  ;;  %v3099_v1 = vld [vmem:[%s3856_s1 + $0x1e8] sm:$0xff] }
  0x17   :  { %3136 = vmatpush.bf16.msra.mxu2 %v2988_v5  ;;  %3137 = vmatpush.bf16.msra.mxu3 %v2988_v5  ;;  %v3118_v59 = vld [vmem:[%s3856_s1 + $0x230] sm:$0xff]  ;;  %v3063_v2 = vld [vmem:[%s3856_s1 + $0x168] sm:$0xff] }
  0x18   :  { %v3117_v3 = vld [vmem:[%s3856_s1 + $0x228] sm:$0xff]  ;;  %v3031_v5 = vld [vmem:[%s3857_s0 + $0x110] sm:$0xff] }
  0x19   :  { %v2959_v4 = vld [vmem:[%s3857_s0 + $0x8] sm:$0xff] }
  0x1a   :  { %203 = vmatpush.bf16.msra.mxu0 %v2987_v6  ;;  %3138 = vmatpush.bf16.msra.mxu1 %v2987_v6 }
  0x1b   :  { %3139 = vmatpush.bf16.msra.mxu2 %v2987_v6  ;;  %3140 = vmatpush.bf16.msra.mxu3 %v2987_v6  ;;  %v2996_v6 = vld [vmem:[%s3857_s0 + $0x170] sm:$0xff] }
  0x1e   :  { %204 = vmatpush.bf16.msra.mxu0 %v2986_v7  ;;  %3141 = vmatpush.bf16.msra.mxu1 %v2986_v7 }
  0x1f   :  { %3142 = vmatpush.bf16.msra.mxu2 %v2986_v7  ;;  %3143 = vmatpush.bf16.msra.mxu3 %v2986_v7  ;;  %v3014_v7 = vld [vmem:[%s3857_s0 + $0xc0] sm:$0xff] }
  0x21   :  { %205 = vmatmul.bf16.vlgmr.msra.gmra.mxu0 %v2976_v10  ;;  %220 = vmatmul.bf16.vlgmr.msra.gmra.mxu1 %v2979_v11  ;;  %v3062_v10 = vld [vmem:[%s3856_s1 + $0x160] sm:$0xff]  ;;  %v2960_v11 = vld [vmem:[%s3857_s0 + $0x10] sm:$0xff] }
  0x22   :  { %364 = vmatpush.bf16.msrb.mxu1 %v2975_v8  ;;  %235 = vmatmul.bf16.vlgmr.msra.gmra.mxu2 %v2982_v12  ;;  %v3080_v8 = vld [vmem:[%s3856_s1 + $0x1a0] sm:$0xff]  ;;  %v3032_v12 = vld [vmem:[%s3857_s0 + $0x118] sm:$0xff] }
  0x23   :  { %569 = vmatpush.bf16.msrb.mxu2 %v3011_v9  ;;  %1019 = vmatpush.bf16.msrb.mxu0 %v3047_v13  ;;  %v3098_v9 = vld [vmem:[%s3856_s1 + $0x1e0] sm:$0xff]  ;;  %v2997_v13 = vld [vmem:[%s3857_s0 + $0x178] sm:$0xff] }
  0x24   :  { %245 = vmatmul.bf16.vlgmr.msra.gmra.mxu3 %v2984_v14  ;;  %v3015_v14 = vld [vmem:[%s3857_s0 + $0xc8] sm:$0xff] }
  0x25   :  { %794 = vmatpush.bf16.msrb.mxu3 %v3029_v16  ;;  %v3079_v16 = vld [vmem:[%s3856_s1 + $0x198] sm:$0xff] }
  0x26   :  { %365 = vmatpush.bf16.msrb.mxu1 %v2974_v15  ;;  %v3116_v15 = vld [vmem:[%s3856_s1 + $0x220] sm:$0xff] }
  0x27   :  { %570 = vmatpush.bf16.msrb.mxu2 %v3010_v17  ;;  %1020 = vmatpush.bf16.msrb.mxu0 %v3046_v18  ;;  %v2961_v17 = vld [vmem:[%s3857_s0 + $0x18] sm:$0xff]  ;;  %v3033_v18 = vld [vmem:[%s3857_s0 + $0x120] sm:$0xff] }
  0x29   :  { %795 = vmatpush.bf16.msrb.mxu3 %v3028_v20  ;;  %v3097_v20 = vld [vmem:[%s3856_s1 + $0x1d8] sm:$0xff] }
  0x2a   :  { %366 = vmatpush.bf16.msrb.mxu1 %v2973_v19  ;;  %v2998_v19 = vld [vmem:[%s3857_s0 + $0x180] sm:$0xff] }
  0x2b   :  { %571 = vmatpush.bf16.msrb.mxu2 %v3009_v21  ;;  %1021 = vmatpush.bf16.msrb.mxu0 %v3045_v22  ;;  %v3016_v21 = vld [vmem:[%s3857_s0 + $0xd0] sm:$0xff]  ;;  %v3061_v22 = vld [vmem:[%s3856_s1 + $0x158] sm:$0xff] }
  0x2d   :  { %796 = vmatpush.bf16.msrb.mxu3 %v3027_v24  ;;  %v2962_v24 = vld [vmem:[%s3857_s0 + $0x20] sm:$0xff] }
  0x2e   :  { %367 = vmatpush.bf16.msrb.mxu1 %v2972_v23  ;;  %v3115_v23 = vld [vmem:[%s3856_s1 + $0x218] sm:$0xff] }
  0x2f   :  { %572 = vmatpush.bf16.msrb.mxu2 %v3008_v25  ;;  %1022 = vmatpush.bf16.msrb.mxu0 %v3044_v26  ;;  %v3034_v25 = vld [vmem:[%s3857_s0 + $0x128] sm:$0xff] }
  0x30   :  { %v2999_v26 = vld [vmem:[%s3857_s0 + $0x188] sm:$0xff] }
  0x31   :  { %797 = vmatpush.bf16.msrb.mxu3 %v3026_v28  ;;  %210 = vmatmul.bf16.gmra.mxu0 %v2977_v30  ;;  %v3078_v28 = vld [vmem:[%s3856_s1 + $0x190] sm:$0xff] }
  0x32   :  { %368 = vmatpush.bf16.msrb.mxu1 %v2971_v27  ;;  %240 = vmatmul.bf16.gmra.mxu2 %v2983_v32  ;;  %v3017_v27 = vld [vmem:[%s3857_s0 + $0xd8] sm:$0xff]  ;;  %v3060_v30 = vld [vmem:[%s3856_s1 + $0x150] sm:$0xff]  ;;  %v2963_v32 = vld [vmem:[%s3857_s0 + $0x28] sm:$0xff] }
  0x33   :  { %573 = vmatpush.bf16.msrb.mxu2 %v3007_v29  ;;  %225 = vmatmul.bf16.gmra.mxu1 %v2980_v31  ;;  %v3096_v29 = vld [vmem:[%s3856_s1 + $0x1d0] sm:$0xff] }
  0x34   :  { %1023 = vmatpush.bf16.msrb.mxu0 %v3043_v33  ;;  %250 = vmatmul.bf16.gmra.mxu3 %v2985_v34  ;;  %v3114_v31 = vld [vmem:[%s3856_s1 + $0x210] sm:$0xff] }
  0x35   :  { %798 = vmatpush.bf16.msrb.mxu3 %v3025_v36  ;;  %v3035_v33 = vld [vmem:[%s3857_s0 + $0x130] sm:$0xff] }
  0x36   :  { %369 = vmatpush.bf16.msrb.mxu1 %v2970_v35  ;;  %v3000_v36 = vld [vmem:[%s3857_s0 + $0x190] sm:$0xff] }
  0x37   :  { %574 = vmatpush.bf16.msrb.mxu2 %v3006_v37  ;;  %v3018_v37 = vld [vmem:[%s3857_s0 + $0xe0] sm:$0xff] }
  0x38   :  { %1024 = vmatpush.bf16.msrb.mxu0 %v3042_v38  ;;  %v3077_v38 = vld [vmem:[%s3856_s1 + $0x188] sm:$0xff] }
  0x39   :  { %799 = vmatpush.bf16.msrb.mxu3 %v3024_v40 }
  0x3a   :  { %370 = vmatpush.bf16.msrb.mxu1 %v2969_v39 }
  0x3b   :  { %575 = vmatpush.bf16.msrb.mxu2 %v3005_v41 }
  0x3c   :  { %1025 = vmatpush.bf16.msrb.mxu0 %v3041_v42  ;;  %v3095_v42 = vld [vmem:[%s3856_s1 + $0x1c8] sm:$0xff] }
  0x3d   :  { %800 = vmatpush.bf16.msrb.mxu3 %v3023_v44 }
  0x3e   :  { %371 = vmatpush.bf16.msrb.mxu1 %v2968_v43  ;;  %v3059_v43 = vld [vmem:[%s3856_s1 + $0x148] sm:$0xff] }
  0x3f   :  { %576 = vmatpush.bf16.msrb.mxu2 %v3004_v45 }
  0x40   :  { %1026 = vmatpush.bf16.msrb.mxu0 %v3040_v48 }
  0x41   :  { %801 = vmatpush.bf16.msrb.mxu3 %v3022_v50  ;;  %215 = vmatmul.bf16.gmra.mxu0 %v2978_v51  ;;  %v3001_v50 = vld [vmem:[%s3857_s0 + $0x198] sm:$0xff] }
  0x42   :  { %1244 = vmatpush.bf16.msra.mxu1 %v3065_v47  ;;  %577 = vmatmul.bf16.vlgmr.msrb.gmra.mxu2 %v2994_v53  ;;  %v3036_v47 = vld [vmem:[%s3857_s0 + $0x138] sm:$0xff] }
  0x43   :  { %1468 = vmatpush.bf16.msra.mxu2 %v3083_v46  ;;  %230 = vmatmul.bf16.gmra.mxu1 %v2981_v52  ;;  %v2964_v46 = vld [vmem:[%s3857_s0 + $0x30] sm:$0xff]  ;;  %v3019_v52 = vld [vmem:[%s3857_s0 + $0xe8] sm:$0xff] }
  0x44   :  { %1916 = vmatpush.bf16.msra.mxu0 %v3119_v49  ;;  %802 = vmatmul.bf16.vlgmr.msrb.gmra.mxu3 %v3012_v55 }
  0x45   :  { %1692 = vmatpush.bf16.msra.mxu3 %v3101_v54  ;;  %v3113_v54 = vld [vmem:[%s3856_s1 + $0x208] sm:$0xff] }
  0x46   :  { %1245 = vmatpush.bf16.msra.mxu1 %v3064_v58  ;;  %v2965_v58 = vld [vmem:[%s3857_s0 + $0x38] sm:$0xff] }
  0x47   :  { %1469 = vmatpush.bf16.msra.mxu2 %v3082_v56 }
  0x48   :  { %1917 = vmatpush.bf16.msra.mxu0 %v3118_v59  ;;  %v3037_v59 = vld [vmem:[%s3857_s0 + $0x140] sm:$0xff] }
  0x49   :  { %1693 = vmatpush.bf16.msra.mxu3 %v3100_v57 }
  0x4a   :  { %1246 = vmatpush.bf16.msra.mxu1 %v3063_v2  ;;  %v3002_v2 = vld [vmem:[%s3857_s0 + $0x1a0] sm:$0xff] }
  0x4b   :  { %1470 = vmatpush.bf16.msra.mxu2 %v3081_v0 }
  0x4c   :  { %1918 = vmatpush.bf16.msra.mxu0 %v3117_v3 }
  0x4d   :  { %1694 = vmatpush.bf16.msra.mxu3 %v3099_v1 }
  0x4e   :  { %1247 = vmatpush.bf16.msra.mxu1 %v3062_v10 }
  0x4f   :  { %1471 = vmatpush.bf16.msra.mxu2 %v3080_v8 }
  0x50   :  { %1919 = vmatpush.bf16.msra.mxu0 %v3116_v15  ;;  %v3003_v15 = vld [vmem:[%s3857_s0 + $0x1a8] sm:$0xff] }
  0x51   :  { %1027 = vmatmul.bf16.vlgmr.msrb.gmra.mxu0 %v3030_v61  ;;  %1695 = vmatpush.bf16.msra.mxu3 %v3098_v9  ;;  %v3076_v61 = vld [vmem:[%s3856_s1 + $0x180] sm:$0xff] }
  0x52   :  { %582 = vmatmul.bf16.gmra.mxu2 %v2995_v62  ;;  %1248 = vmatpush.bf16.msra.mxu1 %v3061_v22  ;;  %v3094_v62 = vld [vmem:[%s3856_s1 + $0x1c0] sm:$0xff] }
  0x53   :  { %372 = vmatmul.bf16.vlgmr.msrb.gmra.mxu1 %v2958_v60  ;;  %1472 = vmatpush.bf16.msra.mxu2 %v3079_v16 }
  0x54   :  { %807 = vmatmul.bf16.gmra.mxu3 %v3013_v63  ;;  %1920 = vmatpush.bf16.msra.mxu0 %v3115_v23  ;;  %v3058_v63 = vld [vmem:[%s3856_s1 + $0x140] sm:$0xff] }
  0x55   :  { %1696 = vmatpush.bf16.msra.mxu3 %v3097_v20 }
  0x56   :  { %1249 = vmatpush.bf16.msra.mxu1 %v3060_v30 }
  0x57   :  { %1473 = vmatpush.bf16.msra.mxu2 %v3078_v28 }
  0x58   :  { %1921 = vmatpush.bf16.msra.mxu0 %v3114_v31  ;;  %v2967_v31 = vld [vmem:[%s3857_s0 + $0x48] sm:$0xff] }
  0x59   :  { %1697 = vmatpush.bf16.msra.mxu3 %v3096_v29 }
  0x5a   :  { %1250 = vmatpush.bf16.msra.mxu1 %v3059_v43 }
  0x5b   :  { %1474 = vmatpush.bf16.msra.mxu2 %v3077_v38 }
  0x5c   :  { %1922 = vmatpush.bf16.msra.mxu0 %v3113_v54 }
  0x5d   :  { %1698 = vmatpush.bf16.msra.mxu3 %v3095_v42 }
  0x5e   :  { %1251 = vmatpush.bf16.msra.mxu1 %v3058_v63  ;;  %v3048_v63 = vld [vmem:[%s3857_s0 + $0x1b8] sm:$0xff] }
  0x5f   :  { %1475 = vmatpush.bf16.msra.mxu2 %v3076_v61 }
  0x61   :  { %1032 = vmatmul.bf16.gmra.mxu0 %v3031_v5  ;;  %1699 = vmatpush.bf16.msra.mxu3 %v3094_v62 }
  0x62   :  { %587 = vmatmul.bf16.gmra.mxu2 %v2996_v6  ;;  %v3112_v6 = vld [vmem:[%s3856_s1 + $0x200] sm:$0xff] }
  0x63   :  { %377 = vmatmul.bf16.gmra.mxu1 %v2959_v4  ;;  %v3020_v4 = vld [vmem:[%s3857_s0 + $0xf0] sm:$0xff]  ;;  %1923 = vmatpush.bf16.msra.mxu0 %v3112_v6 }
  0x64   :  { %812 = vmatmul.bf16.gmra.mxu3 %v3014_v7 }
  0x71   :  { %1037 = vmatmul.bf16.gmra.mxu0 %v3032_v12  ;;  %v3038_v12 = vld [vmem:[%s3857_s0 + $0x148] sm:$0xff] }
  0x72   :  { %592 = vmatmul.bf16.gmra.mxu2 %v2997_v13 }
  0x73   :  { %382 = vmatmul.bf16.gmra.mxu1 %v2960_v11  ;;  %v2966_v11 = vld [vmem:[%s3857_s0 + $0x40] sm:$0xff] }
  0x74   :  { %817 = vmatmul.bf16.gmra.mxu3 %v3015_v14 }
  0x81   :  { %1042 = vmatmul.bf16.gmra.mxu0 %v3033_v18  ;;  %v3021_v18 = vld [vmem:[%s3857_s0 + $0xf8] sm:$0xff] }
  0x82   :  { %597 = vmatmul.bf16.gmra.mxu2 %v2998_v19 }
  0x83   :  { %387 = vmatmul.bf16.gmra.mxu1 %v2961_v17 }
  0x84   :  { %822 = vmatmul.bf16.gmra.mxu3 %v3016_v21 }
  0x91   :  { %1047 = vmatmul.bf16.gmra.mxu0 %v3034_v25 }
  0x92   :  { %602 = vmatmul.bf16.gmra.mxu2 %v2999_v26 }
  0x93   :  { %392 = vmatmul.bf16.gmra.mxu1 %v2962_v24 }
  0x94   :  { %827 = vmatmul.bf16.gmra.mxu3 %v3017_v27 }
  0x9e   :  { %v3459_v34 = vpop.f32.mrf.mxu0  ;;  %v3461_v35 = vpop.f32.mrf.mxu1 }
  0xa1   :  { %1052 = vmatmul.bf16.gmra.mxu0 %v3035_v33 }
  0xa2   :  { %607 = vmatmul.bf16.gmra.mxu2 %v3000_v36  ;;  %v3066_v36 = vld [vmem:[%s3857_s0 + $0x8] sm:$0xff] }
  0xa3   :  { %397 = vmatmul.bf16.gmra.mxu1 %v2963_v32  ;;  %v3039_v32 = vld [vmem:[%s3857_s0 + $0x150] sm:$0xff] }
  0xa4   :  { %832 = vmatmul.bf16.gmra.mxu3 %v3018_v37 }
  0xa5   :  { %v3472_v39 = vpop.f32.mrf.mxu2 }
  0xa6   :  { %v3474_v40 = vpop.f32.mrf.mxu0  ;;  %v3476_v41 = vpop.f32.mrf.mxu1 }
  0xa7   :  { %v3484_v44 = vpop.f32.mrf.mxu3 }
  0xad   :  { %v3486_v45 = vpop.f32.mrf.mxu2 }
  0xae   :  { %v3494_v48 = vpop.f32.mrf.mxu0 }
  0xaf   :  { %v3501_v51 = vpop.f32.mrf.mxu3 }
  0xb0   :  { %v3496_v49 = vpop.f32.mrf.mxu1 }
  0xb1   :  { %1057 = vmatmul.bf16.gmra.mxu0 %v3036_v47 }
  0xb2   :  { %612 = vmatmul.bf16.gmra.mxu2 %v3001_v50 }
  0xb3   :  { %402 = vmatmul.bf16.gmra.mxu1 %v2964_v46 }
  0xb4   :  { %837 = vmatmul.bf16.gmra.mxu3 %v3019_v52 }
  0xb5   :  { %v3506_v53 = vpop.f32.mrf.mxu2 }
  0xb6   :  { %v3511_v55 = vpop.f32.mrf.mxu0 }
  0xb7   :  { %v3515_v57 = vpop.f32.mrf.mxu3 }
  0xb8   :  { %v3513_v56 = vpop.f32.mrf.mxu1 }
  0xbd   :  { %v3523_v60 = vpop.f32.mrf.mxu2 }
  0xbe   :  { %v3534_v0 = vpop.f32.mrf.mxu0 }
  0xbf   :  { %v3541_v3 = vpop.f32.mrf.mxu3 }
  0xc0   :  { %v3536_v1 = vpop.f32.mrf.mxu1 }
  0xc1   :  { %1062 = vmatmul.bf16.gmra.mxu0 %v3037_v59 }
  0xc2   :  { %617 = vmatmul.bf16.gmra.mxu2 %v3002_v2  ;;  %v3102_v2 = vld [vmem:[%s3857_s0 + $0x168] sm:$0xff] }
  0xc3   :  { %407 = vmatmul.bf16.gmra.mxu1 %v2965_v58 }
  0xc4   :  { %842 = vmatmul.bf16.gmra.mxu3 %v3020_v4 }
  0xc5   :  { %v578_v5 = vpop.f32.mrf.mxu2 }
  0xc6   :  { %v3549_v7 = vpop.f32.mrf.mxu0 }
  0xc7   :  { %v803_v9 = vpop.f32.mrf.mxu3 }
  0xc8   :  { %v3551_v8 = vpop.f32.mrf.mxu1 }
  0xcd   :  { %v580_v10 = vpop.f32.mrf.mxu2 }
  0xce   :  { %v1028_v14 = vpop.f32.mrf.mxu0 }
  0xcf   :  { %v805_v17 = vpop.f32.mrf.mxu3 }
  0xd0   :  { %v373_v13 = vpop.f32.mrf.mxu1 }
  0xd1   :  { %v374_v16 = vadd.f32 %v373_v13, %v3459_v34  ;;  %1067 = vmatmul.bf16.gmra.mxu0 %v3038_v12 }
  0xd2   :  { %622 = vmatmul.bf16.gmra.mxu2 %v3003_v15 }
  0xd3   :  { %v628_v19 = vadd.f32 %v578_v5, %v374_v16  ;;  %412 = vmatmul.bf16.gmra.mxu1 %v2966_v11 }
  0xd4   :  { %847 = vmatmul.bf16.gmra.mxu3 %v3021_v18 }
  0xd5   :  { %v853_v20 = vadd.f32 %v803_v9, %v628_v19  ;;  %v583_v22 = vpop.f32.mrf.mxu2 }
  0xd6   :  { %v1030_v24 = vpop.f32.mrf.mxu0 }
  0xd7   :  { %v3566_v21 = vadd.f32 %v1028_v14, %v853_v20  ;;  %v808_v26 = vpop.f32.mrf.mxu3 }
  0xd8   :  { %v375_v23 = vpop.f32.mrf.mxu1 }
  0xd9   :  { %v376_v25 = vadd.f32 %v375_v23, %v3474_v40  ;;  %v3084_v40 = vld [vmem:[%s3857_s0 + $0x60] sm:$0xff] }
  0xda   :  { %v3049_v23 = vld [vmem:[%s3857_s0 + $0x1c0] sm:$0xff] }
  0xdb   :  { %v629_v27 = vadd.f32 %v580_v10, %v376_v25  ;;  %v3085_v10 = vld [vmem:[%s3857_s0 + $0x68] sm:$0xff] }
  0xdd   :  { %v854_v28 = vadd.f32 %v805_v17, %v629_v27  ;;  %v585_v30 = vpop.f32.mrf.mxu2 }
  0xde   :  { %v1033_v34 = vpop.f32.mrf.mxu0 }
  0xdf   :  { %v3569_v29 = vadd.f32 %v1030_v24, %v854_v28  ;;  %v810_v38 = vpop.f32.mrf.mxu3  ;;  %v3103_v24 = vld [vmem:[%s3857_s0 + $0x170] sm:$0xff] }
  0xe0   :  { %v378_v33 = vpop.f32.mrf.mxu1 }
  0xe1   :  { %v379_v37 = vadd.f32 %v378_v33, %v3494_v48  ;;  %1072 = vmatmul.bf16.gmra.mxu0 %v3039_v32 }
  0xe2   :  { %1476 = vmatmul.bf16.vlgmr.msra.gmra.mxu2 %v3066_v36 }
  0xe3   :  { %v630_v42 = vadd.f32 %v583_v22, %v379_v37  ;;  %417 = vmatmul.bf16.gmra.mxu1 %v2967_v31 }
  0xe4   :  { %1700 = vmatmul.bf16.vlgmr.msra.gmra.mxu3 %v3084_v40 }
  0xe5   :  { %v855_v43 = vadd.f32 %v808_v26, %v630_v42  ;;  %v588_v47 = vpop.f32.mrf.mxu2 }
  0xe6   :  { %v1035_v52 = vpop.f32.mrf.mxu0 }
  0xe7   :  { %v3584_v46 = vadd.f32 %v1033_v34, %v855_v43  ;;  %v813_v58 = vpop.f32.mrf.mxu3 }
  0xe8   :  { %v380_v50 = vpop.f32.mrf.mxu1 }
  0xe9   :  { %v381_v54 = vadd.f32 %v380_v50, %v3511_v55  ;;  %v3067_v55 = vld [vmem:[%s3857_s0 + $0x10] sm:$0xff]  ;;  %v3050_v50 = vld [vmem:[%s3857_s0 + $0x1c8] sm:$0xff] }
  0xeb   :  { %v631_v48 = vadd.f32 %v585_v30, %v381_v54  ;;  %v3086_v30 = vld [vmem:[%s3857_s0 + $0x70] sm:$0xff] }
  0xed   :  { %v856_v59 = vadd.f32 %v810_v38, %v631_v48  ;;  %v590_v62 = vpop.f32.mrf.mxu2 }
  0xee   :  { %v1038_v5 = vpop.f32.mrf.mxu0 }
  0xef   :  { %v3587_v61 = vadd.f32 %v1035_v52, %v856_v59  ;;  %v815_v9 = vpop.f32.mrf.mxu3  ;;  %v3104_v52 = vld [vmem:[%s3857_s0 + $0x178] sm:$0xff] }
  0xf0   :  { %v383_v4 = vpop.f32.mrf.mxu1 }
  0xf1   :  { %v384_v6 = vadd.f32 %v383_v4, %v3534_v0  ;;  %1924 = vmatmul.bf16.vlgmr.msra.gmra.mxu0 %v3102_v2 }
  0xf2   :  { %1481 = vmatmul.bf16.gmra.mxu2 %v3067_v55 }
  0xf3   :  { %v632_v11 = vadd.f32 %v588_v47, %v384_v6  ;;  %1252 = vmatmul.bf16.vlgmr.msra.gmra.mxu1 %v3048_v63 }
  0xf4   :  { %1705 = vmatmul.bf16.gmra.mxu3 %v3085_v10 }
  0xf5   :  { %v857_v12 = vadd.f32 %v813_v58, %v632_v11  ;;  %v593_v14 = vpop.f32.mrf.mxu2 }
  0xf6   :  { %v1040_v16 = vpop.f32.mrf.mxu0 }
  0xf7   :  { %v3602_v13 = vadd.f32 %v1038_v5, %v857_v12  ;;  %v818_v18 = vpop.f32.mrf.mxu3 }
  0xf8   :  { %v385_v15 = vpop.f32.mrf.mxu1 }
  0xf9   :  { %v386_v17 = vadd.f32 %v385_v15, %v3549_v7  ;;  %v3068_v7 = vld [vmem:[%s3857_s0 + $0x18] sm:$0xff]  ;;  %v3051_v15 = vld [vmem:[%s3857_s0 + $0x1d0] sm:$0xff] }
  0xfb   :  { %v633_v0 = vadd.f32 %v590_v62, %v386_v17  ;;  %v3087_v62 = vld [vmem:[%s3857_s0 + $0x78] sm:$0xff] }
  0xfd   :  { %v858_v19 = vadd.f32 %v815_v9, %v633_v0  ;;  %v595_v22 = vpop.f32.mrf.mxu2 }
  0xfe   :  { %v1043_v26 = vpop.f32.mrf.mxu0 }
  0xff   :  { %v3605_v20 = vadd.f32 %v1040_v16, %v858_v19  ;;  %v820_v28 = vpop.f32.mrf.mxu3  ;;  %v3105_v16 = vld [vmem:[%s3857_s0 + $0x180] sm:$0xff] }
 0x100   :  { %v388_v25 = vpop.f32.mrf.mxu1 }
 0x101   :  { %v389_v27 = vadd.f32 %v388_v25, %v3461_v35  ;;  %1929 = vmatmul.bf16.gmra.mxu0 %v3103_v24 }
 0x102   :  { %1486 = vmatmul.bf16.gmra.mxu2 %v3068_v7 }
 0x103   :  { %v634_v31 = vadd.f32 %v593_v14, %v389_v27  ;;  %1257 = vmatmul.bf16.gmra.mxu1 %v3049_v23 }
 0x104   :  { %1710 = vmatmul.bf16.gmra.mxu3 %v3086_v30 }
 0x105   :  { %v859_v32 = vadd.f32 %v818_v18, %v634_v31  ;;  %v598_v34 = vpop.f32.mrf.mxu2 }
 0x106   :  { %v1045_v37 = vpop.f32.mrf.mxu0 }
 0x107   :  { %v3620_v33 = vadd.f32 %v1043_v26, %v859_v32  ;;  %v823_v40 = vpop.f32.mrf.mxu3 }
 0x108   :  { %v390_v36 = vpop.f32.mrf.mxu1 }
 0x109   :  { %v391_v38 = vadd.f32 %v390_v36, %v3476_v41  ;;  %v3069_v41 = vld [vmem:[%s3857_s0 + $0x20] sm:$0xff]  ;;  %v3052_v36 = vld [vmem:[%s3857_s0 + $0x1d8] sm:$0xff] }
 0x10b   :  { %v635_v35 = vadd.f32 %v595_v22, %v391_v38  ;;  %v3088_v22 = vld [vmem:[%s3857_s0 + $0x80] sm:$0xff] }
 0x10d   :  { %v860_v42 = vadd.f32 %v820_v28, %v635_v35  ;;  %v600_v47 = vpop.f32.mrf.mxu2 }
 0x10e   :  { %v1048_v58 = vpop.f32.mrf.mxu0 }
 0x10f   :  { %v3623_v43 = vadd.f32 %v1045_v37, %v860_v42  ;;  %v825_v59 = vpop.f32.mrf.mxu3  ;;  %v3106_v37 = vld [vmem:[%s3857_s0 + $0x188] sm:$0xff] }
 0x110   :  { %v393_v54 = vpop.f32.mrf.mxu1 }
 0x111   :  { %v394_v48 = vadd.f32 %v393_v54, %v3496_v49  ;;  %1934 = vmatmul.bf16.gmra.mxu0 %v3104_v52 }
 0x112   :  { %1491 = vmatmul.bf16.gmra.mxu2 %v3069_v41 }
 0x113   :  { %v636_v63 = vadd.f32 %v598_v34, %v394_v48  ;;  %1262 = vmatmul.bf16.gmra.mxu1 %v3050_v50 }
 0x114   :  { %1715 = vmatmul.bf16.gmra.mxu3 %v3087_v62 }
 0x115   :  { %v861_v2 = vadd.f32 %v823_v40, %v636_v63  ;;  %v603_v5 = vpop.f32.mrf.mxu2 }
 0x116   :  { %v1050_v6 = vpop.f32.mrf.mxu0 }
 0x117   :  { %v3638_v4 = vadd.f32 %v1048_v58, %v861_v2  ;;  %v828_v10 = vpop.f32.mrf.mxu3 }
 0x118   :  { %v395_v55 = vpop.f32.mrf.mxu1 }
 0x119   :  { %v396_v9 = vadd.f32 %v395_v55, %v3513_v56  ;;  %v3070_v56 = vld [vmem:[%s3857_s0 + $0x28] sm:$0xff]  ;;  %v3053_v55 = vld [vmem:[%s3857_s0 + $0x1e0] sm:$0xff] }
 0x11b   :  { %v637_v49 = vadd.f32 %v600_v47, %v396_v9  ;;  %v3089_v47 = vld [vmem:[%s3857_s0 + $0x88] sm:$0xff] }
 0x11d   :  { %v862_v11 = vadd.f32 %v825_v59, %v637_v49  ;;  %v605_v14 = vpop.f32.mrf.mxu2 }
 0x11e   :  { %v1053_v18 = vpop.f32.mrf.mxu0 }
 0x11f   :  { %v3641_v12 = vadd.f32 %v1050_v6, %v862_v11  ;;  %v830_v19 = vpop.f32.mrf.mxu3  ;;  %v3107_v6 = vld [vmem:[%s3857_s0 + $0x190] sm:$0xff] }
 0x120   :  { %v398_v17 = vpop.f32.mrf.mxu1 }
 0x121   :  { %v399_v0 = vadd.f32 %v398_v17, %v3536_v1  ;;  %1939 = vmatmul.bf16.gmra.mxu0 %v3105_v16 }
 0x122   :  { %1496 = vmatmul.bf16.gmra.mxu2 %v3070_v56 }
 0x123   :  { %v638_v23 = vadd.f32 %v603_v5, %v399_v0  ;;  %1267 = vmatmul.bf16.gmra.mxu1 %v3051_v15 }
 0x124   :  { %1720 = vmatmul.bf16.gmra.mxu3 %v3088_v22 }
 0x125   :  { %v863_v24 = vadd.f32 %v828_v10, %v638_v23  ;;  %v608_v26 = vpop.f32.mrf.mxu2 }
 0x126   :  { %v1055_v27 = vpop.f32.mrf.mxu0 }
 0x127   :  { %v3656_v25 = vadd.f32 %v1053_v18, %v863_v24  ;;  %v833_v30 = vpop.f32.mrf.mxu3 }
 0x128   :  { %v400_v7 = vpop.f32.mrf.mxu1 }
 0x129   :  { %v401_v28 = vadd.f32 %v400_v7, %v3551_v8  ;;  %v3071_v8 = vld [vmem:[%s3857_s0 + $0x30] sm:$0xff]  ;;  %v3054_v7 = vld [vmem:[%s3857_s0 + $0x1e8] sm:$0xff] }
 0x12b   :  { %v639_v1 = vadd.f32 %v605_v14, %v401_v28  ;;  %v3090_v14 = vld [vmem:[%s3857_s0 + $0x90] sm:$0xff] }
 0x12d   :  { %v864_v31 = vadd.f32 %v830_v19, %v639_v1  ;;  %v610_v34 = vpop.f32.mrf.mxu2 }
 0x12e   :  { %v1058_v40 = vpop.f32.mrf.mxu0 }
 0x12f   :  { %v3659_v32 = vadd.f32 %v1055_v27, %v864_v31  ;;  %v835_v42 = vpop.f32.mrf.mxu3  ;;  %v3108_v27 = vld [vmem:[%s3857_s0 + $0x198] sm:$0xff] }
 0x130   :  { %v403_v38 = vpop.f32.mrf.mxu1 }
 0x131   :  { %v404_v35 = vadd.f32 %v403_v38, %v3472_v39  ;;  %1944 = vmatmul.bf16.gmra.mxu0 %v3106_v37 }
 0x132   :  { %1501 = vmatmul.bf16.gmra.mxu2 %v3071_v8 }
 0x133   :  { %v640_v50 = vadd.f32 %v608_v26, %v404_v35  ;;  %1272 = vmatmul.bf16.gmra.mxu1 %v3052_v36 }
 0x134   :  { %1725 = vmatmul.bf16.gmra.mxu3 %v3089_v47 }
 0x135   :  { %v865_v52 = vadd.f32 %v833_v30, %v640_v50  ;;  %v613_v58 = vpop.f32.mrf.mxu2 }
 0x136   :  { %v1060_v48 = vpop.f32.mrf.mxu0 }
 0x137   :  { %v3674_v54 = vadd.f32 %v1058_v40, %v865_v52  ;;  %v838_v62 = vpop.f32.mrf.mxu3 }
 0x138   :  { %v405_v41 = vpop.f32.mrf.mxu1 }
 0x139   :  { %v406_v59 = vadd.f32 %v405_v41, %v3486_v45  ;;  %v3072_v45 = vld [vmem:[%s3857_s0 + $0x38] sm:$0xff]  ;;  %v3055_v41 = vld [vmem:[%s3857_s0 + $0x1f0] sm:$0xff] }
 0x13b   :  { %v641_v39 = vadd.f32 %v610_v34, %v406_v59  ;;  %v3091_v34 = vld [vmem:[%s3857_s0 + $0x98] sm:$0xff] }
 0x13d   :  { %v866_v63 = vadd.f32 %v835_v42, %v641_v39  ;;  %v615_v5 = vpop.f32.mrf.mxu2 }
 0x13e   :  { %v1063_v10 = vpop.f32.mrf.mxu0 }
 0x13f   :  { %v3677_v2 = vadd.f32 %v1060_v48, %v866_v63  ;;  %v840_v11 = vpop.f32.mrf.mxu3  ;;  %v3109_v48 = vld [vmem:[%s3857_s0 + $0x1a0] sm:$0xff] }
 0x140   :  { %v408_v9 = vpop.f32.mrf.mxu1 }
 0x141   :  { %v409_v49 = vadd.f32 %v408_v9, %v3506_v53  ;;  %1949 = vmatmul.bf16.gmra.mxu0 %v3107_v6 }
 0x142   :  { %1506 = vmatmul.bf16.gmra.mxu2 %v3072_v45 }
 0x143   :  { %v642_v15 = vadd.f32 %v613_v58, %v409_v49  ;;  %1277 = vmatmul.bf16.gmra.mxu1 %v3053_v55 }
 0x144   :  { %1730 = vmatmul.bf16.gmra.mxu3 %v3090_v14 }
 0x145   :  { %v867_v16 = vadd.f32 %v838_v62, %v642_v15  ;;  %v618_v18 = vpop.f32.mrf.mxu2 }
 0x146   :  { %v1065_v0 = vpop.f32.mrf.mxu0 }
 0x147   :  { %v3692_v17 = vadd.f32 %v1063_v10, %v867_v16  ;;  %v843_v22 = vpop.f32.mrf.mxu3 }
 0x148   :  { %v410_v56 = vpop.f32.mrf.mxu1 }
 0x149   :  { %v411_v19 = vadd.f32 %v410_v56, %v3523_v60  ;;  %v3073_v60 = vld [vmem:[%s3857_s0 + $0x40] sm:$0xff]  ;;  %v3056_v56 = vld [vmem:[%s3857_s0 + $0x1f8] sm:$0xff] }
 0x14b   :  { %v643_v53 = vadd.f32 %v615_v5, %v411_v19  ;;  %v3092_v5 = vld [vmem:[%s3857_s0 + $0xa0] sm:$0xff] }
 0x14d   :  { %v868_v23 = vadd.f32 %v840_v11, %v643_v53  ;;  %v620_v26 = vpop.f32.mrf.mxu2 }
 0x14e   :  { %v1068_v30 = vpop.f32.mrf.mxu0 }
 0x14f   :  { %v3695_v24 = vadd.f32 %v1065_v0, %v868_v23  ;;  %v845_v31 = vpop.f32.mrf.mxu3  ;;  %v3110_v0 = vld [vmem:[%s3857_s0 + $0x1a8] sm:$0xff] }
 0x150   :  { %v413_v28 = vpop.f32.mrf.mxu1 }
 0x151   :  { %v414_v1 = vadd.f32 %v413_v28, %v3484_v44  ;;  %1954 = vmatmul.bf16.gmra.mxu0 %v3108_v27  ;;  %v3749_v28 = vld [vmem:[%s3858_s2] ss:$0 sm:$0xff] }
 0x152   :  { %1511 = vmatmul.bf16.gmra.mxu2 %v3073_v60 }
 0x153   :  { %v644_v36 = vadd.f32 %v618_v18, %v414_v1  ;;  %1282 = vmatmul.bf16.gmra.mxu1 %v3054_v7 }
 0x154   :  { %1735 = vmatmul.bf16.gmra.mxu3 %v3091_v34 }
 0x155   :  { %v869_v37 = vadd.f32 %v843_v22, %v644_v36  ;;  %v623_v40 = vpop.f32.mrf.mxu2 }
 0x156   :  { %v1070_v35 = vpop.f32.mrf.mxu0 }
 0x157   :  { %v3710_v38 = vadd.f32 %v1068_v30, %v869_v37  ;;  %v848_v47 = vpop.f32.mrf.mxu3 }
 0x158   :  { %v415_v8 = vpop.f32.mrf.mxu1 }
 0x159   :  { %v416_v42 = vadd.f32 %v415_v8, %v3501_v51  ;;  %v3074_v51 = vld [vmem:[%s3857_s0 + $0x48] sm:$0xff] }
 0x15b   :  { %v645_v44 = vadd.f32 %v620_v26, %v416_v42  ;;  %v3093_v26 = vld [vmem:[%s3857_s0 + $0xa8] sm:$0xff]  ;;  %v3057_v42 = vld [vmem:[%s3857_s0 + $0x200] sm:$0xff] }
 0x15d   :  { %v870_v50 = vadd.f32 %v845_v31, %v645_v44  ;;  %v625_v58 = vpop.f32.mrf.mxu2 }
 0x15e   :  { %v1073_v62 = vpop.f32.mrf.mxu0 }
 0x15f   :  { %v3713_v52 = vadd.f32 %v1070_v35, %v870_v50  ;;  %v850_v63 = vpop.f32.mrf.mxu3 }
 0x160   :  { %v418_v59 = vpop.f32.mrf.mxu1 }
 0x161   :  { %v419_v39 = vadd.f32 %v418_v59, %v3515_v57  ;;  %1959 = vmatmul.bf16.gmra.mxu0 %v3109_v48 }
 0x162   :  { %1516 = vmatmul.bf16.gmra.mxu2 %v3074_v51 }
 0x163   :  { %v646_v55 = vadd.f32 %v623_v40, %v419_v39  ;;  %1287 = vmatmul.bf16.gmra.mxu1 %v3055_v41 }
 0x164   :  { %1740 = vmatmul.bf16.gmra.mxu3 %v3092_v5 }
 0x165   :  { %v871_v6 = vadd.f32 %v848_v47, %v646_v55  ;;  %v1477_v10 = vpop.f32.mrf.mxu2  ;;  %v3111_v47 = vld [vmem:[%s3857_s0 + $0x1b0] sm:$0xff] }
 0x166   :  { %v1075_v49 = vpop.f32.mrf.mxu0 }
 0x167   :  { %v3728_v9 = vadd.f32 %v1073_v62, %v871_v6  ;;  %v1701_v14 = vpop.f32.mrf.mxu3 }
 0x168   :  { %v420_v45 = vpop.f32.mrf.mxu1 }
 0x169   :  { %v421_v11 = vadd.f32 %v420_v45, %v3541_v3  ;;  %v3075_v3 = vld [vmem:[%s3857_s0 + $0x50] sm:$0xff] }
 0x16b   :  { %v647_v57 = vadd.f32 %v625_v58, %v421_v11 }
 0x16d   :  { %v872_v15 = vadd.f32 %v850_v63, %v647_v57  ;;  %v1479_v18 = vpop.f32.mrf.mxu2 }
 0x16e   :  { %v1925_v22 = vpop.f32.mrf.mxu0 }
 0x16f   :  { %v3731_v16 = vadd.f32 %v1075_v49, %v872_v15  ;;  %v1703_v23 = vpop.f32.mrf.mxu3 }
 0x170   :  { %v1253_v19 = vpop.f32.mrf.mxu1 }
 0x171   :  { %v1303_v53 = vadd.f32 %v1253_v19, %v3566_v21  ;;  %1964 = vmatmul.bf16.gmra.mxu0 %v3110_v0 }
 0x172   :  { %1521 = vmatmul.bf16.gmra.mxu2 %v3075_v3 }
 0x173   :  { %v1527_v7 = vadd.f32 %v1477_v10, %v1303_v53  ;;  %1292 = vmatmul.bf16.gmra.mxu1 %v3056_v56 }
 0x174   :  { %1745 = vmatmul.bf16.gmra.mxu3 %v3093_v26 }
 0x175   :  { %v1751_v27 = vadd.f32 %v1701_v14, %v1527_v7  ;;  %v1482_v60 = vpop.f32.mrf.mxu2 }
 0x176   :  { %v1927_v21 = vpop.f32.mrf.mxu0 }
 0x177   :  { %v1975_v30 = vadd.f32 %v1925_v22, %v1751_v27  ;;  %v1706_v36 = vpop.f32.mrf.mxu3 }
 0x178   :  { %v1255_v1 = vpop.f32.mrf.mxu1 }
 0x179   :  { %v1998_v31 = vadd.f32 %v3749_v28, %v1975_v30  ;;  %v1304_v34 = vadd.f32 %v1255_v1, %v3569_v29 }
 0x17b   :  { %2018 = vst [vmem:[%s3859_s3] sm:$0xff] %v1998_v31  ;;  %v1528_v37 = vadd.f32 %v1479_v18, %v1304_v34 }
 0x17d   :  { %v1752_v40 = vadd.f32 %v1703_v23, %v1528_v37  ;;  %v1484_v35 = vpop.f32.mrf.mxu2 }
 0x17e   :  { %v1930_v50 = vpop.f32.mrf.mxu0 }
 0x17f   :  { %v1976_v8 = vadd.f32 %v1927_v21, %v1752_v40  ;;  %v1708_v41 = vpop.f32.mrf.mxu3 }
 0x180   :  { %v1258_v44 = vpop.f32.mrf.mxu1 }
 0x181   :  { %v1999_v29 = vadd.f32 %v3749_v28, %v1976_v8  ;;  %v1305_v58 = vadd.f32 %v1258_v44, %v3584_v46  ;;  %1969 = vmatmul.bf16.gmra.mxu0 %v3111_v47 }
 0x183   :  { %2019 = vst [vmem:[%s3859_s3 + $0x8] sm:$0xff] %v1999_v29  ;;  %v1529_v48 = vadd.f32 %v1482_v60, %v1305_v58  ;;  %1297 = vmatmul.bf16.gmra.mxu1 %v3057_v42 }
 0x185   :  { %v1753_v59 = vadd.f32 %v1706_v36, %v1529_v48  ;;  %v1487_v51 = vpop.f32.mrf.mxu2 }
 0x186   :  { %v1932_v63 = vpop.f32.mrf.mxu0 }
 0x187   :  { %v1977_v62 = vadd.f32 %v1930_v50, %v1753_v59  ;;  %v1711_v6 = vpop.f32.mrf.mxu3 }
 0x188   :  { %v1260_v39 = vpop.f32.mrf.mxu1 }
 0x189   :  { %v2000_v5 = vadd.f32 %v3749_v28, %v1977_v62  ;;  %v1306_v55 = vadd.f32 %v1260_v39, %v3587_v61 }
 0x18b   :  { %2020 = vst [vmem:[%s3859_s3 + $0x10] sm:$0xff] %v2000_v5  ;;  %v1530_v46 = vadd.f32 %v1484_v35, %v1306_v55 }
 0x18d   :  { %v1754_v10 = vadd.f32 %v1708_v41, %v1530_v46  ;;  %v1489_v49 = vpop.f32.mrf.mxu2 }
 0x18e   :  { %v1935_v14 = vpop.f32.mrf.mxu0 }
 0x18f   :  { %v1978_v45 = vadd.f32 %v1932_v63, %v1754_v10  ;;  %v1713_v18 = vpop.f32.mrf.mxu3 }
 0x190   :  { %v1263_v11 = vpop.f32.mrf.mxu1 }
 0x191   :  { %v2001_v57 = vadd.f32 %v3749_v28, %v1978_v45  ;;  %v1307_v15 = vadd.f32 %v1263_v11, %v3602_v13 }
 0x193   :  { %2021 = vst [vmem:[%s3859_s3 + $0x18] sm:$0xff] %v2001_v57  ;;  %v1531_v61 = vadd.f32 %v1487_v51, %v1307_v15 }
 0x195   :  { %v1755_v56 = vadd.f32 %v1711_v6, %v1531_v61  ;;  %v1492_v19 = vpop.f32.mrf.mxu2 }
 0x196   :  { %v1937_v3 = vpop.f32.mrf.mxu0 }
 0x197   :  { %v1979_v0 = vadd.f32 %v1935_v14, %v1755_v56  ;;  %v1716_v26 = vpop.f32.mrf.mxu3 }
 0x198   :  { %v1265_v22 = vpop.f32.mrf.mxu1 }
 0x199   :  { %v2002_v53 = vadd.f32 %v3749_v28, %v1979_v0  ;;  %v1308_v23 = vadd.f32 %v1265_v22, %v3605_v20 }
 0x19b   :  { %2022 = vst [vmem:[%s3859_s3 + $0x20] sm:$0xff] %v2002_v53  ;;  %v1532_v13 = vadd.f32 %v1489_v49, %v1308_v23 }
 0x19d   :  { %v1756_v7 = vadd.f32 %v1713_v18, %v1532_v13  ;;  %v1494_v30 = vpop.f32.mrf.mxu2 }
 0x19e   :  { %v1940_v1 = vpop.f32.mrf.mxu0 }
 0x19f   :  { %v1980_v27 = vadd.f32 %v1937_v3, %v1756_v7  ;;  %v1718_v34 = vpop.f32.mrf.mxu3 }
 0x1a0   :  { %v1268_v60 = vpop.f32.mrf.mxu1 }
 0x1a1   :  { %v2003_v21 = vadd.f32 %v3749_v28, %v1980_v27  ;;  %v1309_v31 = vadd.f32 %v1268_v60, %v3620_v33 }
 0x1a3   :  { %2023 = vst [vmem:[%s3859_s3 + $0x28] sm:$0xff] %v2003_v21  ;;  %v1533_v20 = vadd.f32 %v1492_v19, %v1309_v31 }
 0x1a5   :  { %v1757_v36 = vadd.f32 %v1716_v26, %v1533_v20  ;;  %v1497_v40 = vpop.f32.mrf.mxu2 }
 0x1a6   :  { %v1942_v35 = vpop.f32.mrf.mxu0 }
 0x1a7   :  { %v1981_v37 = vadd.f32 %v1940_v1, %v1757_v36  ;;  %v1721_v44 = vpop.f32.mrf.mxu3 }
 0x1a8   :  { %v1270_v8 = vpop.f32.mrf.mxu1 }
 0x1a9   :  { %v2004_v42 = vadd.f32 %v3749_v28, %v1981_v37  ;;  %v1310_v47 = vadd.f32 %v1270_v8, %v3623_v43 }
 0x1ab   :  { %2024 = vst [vmem:[%s3859_s3 + $0x30] sm:$0xff] %v2004_v42  ;;  %v1534_v33 = vadd.f32 %v1494_v30, %v1310_v47 }
 0x1ad   :  { %v1758_v50 = vadd.f32 %v1718_v34, %v1534_v33  ;;  %v1499_v58 = vpop.f32.mrf.mxu2 }
 0x1ae   :  { %v1945_v48 = vpop.f32.mrf.mxu0 }
 0x1af   :  { %v1982_v29 = vadd.f32 %v1942_v35, %v1758_v50  ;;  %v1723_v51 = vpop.f32.mrf.mxu3 }
 0x1b0   :  { %v1273_v41 = vpop.f32.mrf.mxu1 }
 0x1b1   :  { %v2005_v59 = vadd.f32 %v3749_v28, %v1982_v29  ;;  %v1311_v62 = vadd.f32 %v1273_v41, %v3638_v4 }
 0x1b3   :  { %2025 = vst [vmem:[%s3859_s3 + $0x38] sm:$0xff] %v2005_v59  ;;  %v1535_v43 = vadd.f32 %v1497_v40, %v1311_v62 }
 0x1b5   :  { %v1759_v39 = vadd.f32 %v1721_v44, %v1535_v43  ;;  %v1502_v5 = vpop.f32.mrf.mxu2 }
 0x1b6   :  { %v1947_v6 = vpop.f32.mrf.mxu0 }
 0x1b7   :  { %v1983_v63 = vadd.f32 %v1945_v48, %v1759_v39  ;;  %v1726_v45 = vpop.f32.mrf.mxu3 }
 0x1b8   :  { %v1275_v55 = vpop.f32.mrf.mxu1 }
 0x1b9   :  { %v2006_v46 = vadd.f32 %v3749_v28, %v1983_v63  ;;  %v1312_v10 = vadd.f32 %v1275_v55, %v3641_v12 }
 0x1bb   :  { %2026 = vst [vmem:[%s3859_s3 + $0x40] sm:$0xff] %v2006_v46  ;;  %v1536_v4 = vadd.f32 %v1499_v58, %v1312_v10 }
 0x1bd   :  { %v1760_v49 = vadd.f32 %v1723_v51, %v1536_v4  ;;  %v1504_v14 = vpop.f32.mrf.mxu2 }
 0x1be   :  { %v1950_v15 = vpop.f32.mrf.mxu0 }
 0x1bf   :  { %v1984_v11 = vadd.f32 %v1947_v6, %v1760_v49  ;;  %v1728_v56 = vpop.f32.mrf.mxu3 }
 0x1c0   :  { %v1278_v57 = vpop.f32.mrf.mxu1 }
 0x1c1   :  { %v2007_v18 = vadd.f32 %v3749_v28, %v1984_v11  ;;  %v1313_v61 = vadd.f32 %v1278_v57, %v3656_v25 }
 0x1c3   :  { %2027 = vst [vmem:[%s3859_s3 + $0x48] sm:$0xff] %v2007_v18  ;;  %v1537_v12 = vadd.f32 %v1502_v5, %v1313_v61 }
 0x1c5   :  { %v1761_v0 = vadd.f32 %v1726_v45, %v1537_v12  ;;  %v1507_v22 = vpop.f32.mrf.mxu2 }
 0x1c6   :  { %v1952_v53 = vpop.f32.mrf.mxu0 }
 0x1c7   :  { %v1985_v19 = vadd.f32 %v1950_v15, %v1761_v0  ;;  %v1731_v13 = vpop.f32.mrf.mxu3 }
 0x1c8   :  { %v1280_v3 = vpop.f32.mrf.mxu1 }
 0x1c9   :  { %v2008_v23 = vadd.f32 %v3749_v28, %v1985_v19  ;;  %v1314_v26 = vadd.f32 %v1280_v3, %v3659_v32 }
 0x1cb   :  { %2028 = vst [vmem:[%s3859_s3 + $0x50] sm:$0xff] %v2008_v23  ;;  %v1538_v25 = vadd.f32 %v1504_v14, %v1314_v26 }
 0x1cd   :  { %v1762_v7 = vadd.f32 %v1728_v56, %v1538_v25  ;;  %v1509_v30 = vpop.f32.mrf.mxu2 }
 0x1ce   :  { %v1955_v1 = vpop.f32.mrf.mxu0 }
 0x1cf   :  { %v1986_v27 = vadd.f32 %v1952_v53, %v1762_v7  ;;  %v1733_v34 = vpop.f32.mrf.mxu3 }
 0x1d0   :  { %v1283_v60 = vpop.f32.mrf.mxu1 }
 0x1d1   :  { %v2009_v21 = vadd.f32 %v3749_v28, %v1986_v27  ;;  %v1315_v31 = vadd.f32 %v1283_v60, %v3674_v54 }
 0x1d3   :  { %2029 = vst [vmem:[%s3859_s3 + $0x58] sm:$0xff] %v2009_v21  ;;  %v1539_v32 = vadd.f32 %v1507_v22, %v1315_v31 }
 0x1d5   :  { %v1763_v20 = vadd.f32 %v1731_v13, %v1539_v32  ;;  %v1512_v37 = vpop.f32.mrf.mxu2 }
 0x1d6   :  { %v1957_v8 = vpop.f32.mrf.mxu0 }
 0x1d7   :  { %v1987_v36 = vadd.f32 %v1955_v1, %v1763_v20  ;;  %v1736_v47 = vpop.f32.mrf.mxu3 }
 0x1d8   :  { %v1285_v40 = vpop.f32.mrf.mxu1 }
 0x1d9   :  { %v2010_v35 = vadd.f32 %v3749_v28, %v1987_v36  ;;  %v1316_v42 = vadd.f32 %v1285_v40, %v3677_v2 }
 0x1db   :  { %2030 = vst [vmem:[%s3859_s3 + $0x60] sm:$0xff] %v2010_v35  ;;  %v1540_v54 = vadd.f32 %v1509_v30, %v1316_v42 }
 0x1dd   :  { %v1764_v44 = vadd.f32 %v1733_v34, %v1540_v54  ;;  %v1514_v48 = vpop.f32.mrf.mxu2 }
 0x1de   :  { %v1960_v29 = vpop.f32.mrf.mxu0 }
 0x1df   :  { %v1988_v33 = vadd.f32 %v1957_v8, %v1764_v44  ;;  %v1738_v59 = vpop.f32.mrf.mxu3 }
 0x1e0   :  { %v1288_v50 = vpop.f32.mrf.mxu1 }
 0x1e1   :  { %v2011_v58 = vadd.f32 %v3749_v28, %v1988_v33  ;;  %v1317_v41 = vadd.f32 %v1288_v50, %v3692_v17 }
 0x1e3   :  { %2031 = vst [vmem:[%s3859_s3 + $0x68] sm:$0xff] %v2011_v58  ;;  %v1541_v2 = vadd.f32 %v1512_v37, %v1317_v41 }
 0x1e5   :  { %v1765_v62 = vadd.f32 %v1736_v47, %v1541_v2  ;;  %v1517_v55 = vpop.f32.mrf.mxu2 }
 0x1e6   :  { %v1962_v39 = vpop.f32.mrf.mxu0 }
 0x1e7   :  { %v1989_v51 = vadd.f32 %v1960_v29, %v1765_v62  ;;  %v1741_v46 = vpop.f32.mrf.mxu3 }
 0x1e8   :  { %v1290_v43 = vpop.f32.mrf.mxu1 }
 0x1e9   :  { %v2012_v63 = vadd.f32 %v3749_v28, %v1989_v51  ;;  %v1318_v5 = vadd.f32 %v1290_v43, %v3695_v24 }
 0x1eb   :  { %2032 = vst [vmem:[%s3859_s3 + $0x70] sm:$0xff] %v2012_v63  ;;  %v1542_v17 = vadd.f32 %v1514_v48, %v1318_v5 }
 0x1ed   :  { %v1766_v6 = vadd.f32 %v1738_v59, %v1542_v17  ;;  %v1519_v57 = vpop.f32.mrf.mxu2 }
 0x1ee   :  { %v1965_v4 = vpop.f32.mrf.mxu0 }
 0x1ef   :  { %v1990_v10 = vadd.f32 %v1962_v39, %v1766_v6  ;;  %v1743_v18 = vpop.f32.mrf.mxu3 }
 0x1f0   :  { %v1293_v45 = vpop.f32.mrf.mxu1 }
 0x1f1   :  { %v2013_v49 = vadd.f32 %v3749_v28, %v1990_v10  ;;  %v1319_v11 = vadd.f32 %v1293_v45, %v3710_v38 }
 0x1f3   :  { %2033 = vst [vmem:[%s3859_s3 + $0x78] sm:$0xff] %v2013_v49  ;;  %v1543_v24 = vadd.f32 %v1517_v55, %v1319_v11 }
 0x1f5   :  { %v1767_v14 = vadd.f32 %v1741_v46, %v1543_v24  ;;  %v1522_v3 = vpop.f32.mrf.mxu2 }
 0x1f6   :  { %v1967_v0 = vpop.f32.mrf.mxu0 }
 0x1f7   :  { %v1991_v15 = vadd.f32 %v1965_v4, %v1767_v14  ;;  %v1746_v13 = vpop.f32.mrf.mxu3 }
 0x1f8   :  { %v1295_v61 = vpop.f32.mrf.mxu1 }
 0x1f9   :  { %v2014_v56 = vadd.f32 %v3749_v28, %v1991_v15  ;;  %v1320_v12 = vadd.f32 %v1295_v61, %v3713_v52 }
 0x1fb   :  { %2034 = vst [vmem:[%s3859_s3 + $0x80] sm:$0xff] %v2014_v56  ;;  %v1544_v38 = vadd.f32 %v1519_v57, %v1320_v12 }
 0x1fd   :  { %v1768_v19 = vadd.f32 %v1743_v18, %v1544_v38  ;;  %v1524_v21 = vpop.f32.mrf.mxu2 }
 0x1fe   :  { %v1970_v25 = vpop.f32.mrf.mxu0 }
 0x1ff   :  { %v1992_v22 = vadd.f32 %v1967_v0, %v1768_v19  ;;  %v1748_v31 = vpop.f32.mrf.mxu3 }
 0x200   :  { %v1298_v53 = vpop.f32.mrf.mxu1 }
 0x201   :  { %v2015_v23 = vadd.f32 %v3749_v28, %v1992_v22  ;;  %v1321_v26 = vadd.f32 %v1298_v53, %v3728_v9 }
 0x203   :  { %2035 = vst [vmem:[%s3859_s3 + $0x88] sm:$0xff] %v2015_v23  ;;  %v1545_v52 = vadd.f32 %v1522_v3, %v1321_v26 }
 0x205   :  { %v1769_v7 = vadd.f32 %v1746_v13, %v1545_v52 }
 0x206   :  { %v1972_v32 = vpop.f32.mrf.mxu0 }
 0x207   :  { %v1993_v27 = vadd.f32 %v1970_v25, %v1769_v7 }
 0x208   :  { %v1300_v30 = vpop.f32.mrf.mxu1 }
 0x209   :  { %v2016_v60 = vadd.f32 %v3749_v28, %v1993_v27  ;;  %v1322_v1 = vadd.f32 %v1300_v30, %v3731_v16 }
 0x20b   :  { %2036 = vst [vmem:[%s3859_s3 + $0x90] sm:$0xff] %v2016_v60  ;;  %v1546_v9 = vadd.f32 %v1524_v21, %v1322_v1 }
 0x20d   :  { %v1770_v34 = vadd.f32 %v1748_v31, %v1546_v9 }
 0x20f   :  { %v1994_v20 = vadd.f32 %v1972_v32, %v1770_v34 }
 0x211   :  { %v2017_v36 = vadd.f32 %v3749_v28, %v1994_v20 }
 0x213   :  { %2037 = vst [vmem:[%s3859_s3 + $0x98] sm:$0xff] %v2017_v36 }

// kernel: _lambda_.2
= control target key start
LH: loop header
LB: loop body
LE: loop exit
PB: predicated region body
PF: predicated region fallthrough
CT: control target
= control target key end

     0   :  { %s7316_s1 = inlined_call_operand.vmem [shape: bf16[9,128,128], index: 1, kind: input, shape index: {}]   ;;  %s7317_s0 = inlined_call_operand.vmem [shape: bf16[6,304,128], index: 0, kind: input, shape index: {}]   ;;  %s7318_s2 = inlined_call_operand.vmem [shape: f32[1,128], index: 2, kind: input, shape index: {}]   ;;  %s7319_s3 = inlined_call_operand.vmem [shape: f32[288,128], index: 3, kind: output, shape index: {}]  }
   0x1   :  { %v5558_v0 = vld [vmem:[%s7316_s1 + $0x78] sm:$0xff]  ;;  %v5557_v1 = vld [vmem:[%s7316_s1 + $0x70] sm:$0xff]  ;;  %v5556_v2 = vld [vmem:[%s7316_s1 + $0x68] sm:$0xff] }
   0x2   :  { %257 = vmatpush.bf16.msra.mxu0 %v5558_v0  ;;  %5817 = vmatpush.bf16.msra.mxu1 %v5558_v0  ;;  %v5555_v3 = vld [vmem:[%s7316_s1 + $0x60] sm:$0xff]  ;;  %v5554_v4 = vld [vmem:[%s7316_s1 + $0x58] sm:$0xff]  ;;  %v5553_v5 = vld [vmem:[%s7316_s1 + $0x50] sm:$0xff] }
   0x3   :  { %5818 = vmatpush.bf16.msra.mxu2 %v5558_v0  ;;  %5819 = vmatpush.bf16.msra.mxu3 %v5558_v0  ;;  %v5552_v6 = vld [vmem:[%s7316_s1 + $0x48] sm:$0xff]  ;;  %v5551_v7 = vld [vmem:[%s7316_s1 + $0x40] sm:$0xff]  ;;  %v5534_v8 = vld [vmem:[%s7316_s1 + $0x38] sm:$0xff] }
   0x4   :  { %v5630_v9 = vld [vmem:[%s7316_s1 + $0x138] sm:$0xff]  ;;  %v5544_v11 = vld [vmem:[%s7317_s0 + $0xe0] sm:$0xff]  ;;  %v5549_v15 = vld [vmem:[%s7317_s0 + $0x108] sm:$0xff] }
   0x5   :  { %v5535_v10 = vld [vmem:[%s7317_s0 + $0x98] sm:$0xff]  ;;  %v5533_v16 = vld [vmem:[%s7316_s1 + $0x30] sm:$0xff]  ;;  %v5532_v20 = vld [vmem:[%s7316_s1 + $0x28] sm:$0xff] }
   0x6   :  { %258 = vmatpush.bf16.msra.mxu0 %v5557_v1  ;;  %5820 = vmatpush.bf16.msra.mxu1 %v5557_v1  ;;  %v5547_v12 = vld [vmem:[%s7317_s0 + $0xf8] sm:$0xff]  ;;  %v5629_v17 = vld [vmem:[%s7316_s1 + $0x130] sm:$0xff]  ;;  %v5628_v21 = vld [vmem:[%s7316_s1 + $0x128] sm:$0xff] }
   0x7   :  { %5821 = vmatpush.bf16.msra.mxu2 %v5557_v1  ;;  %5822 = vmatpush.bf16.msra.mxu3 %v5557_v1  ;;  %v5606_v13 = vld [vmem:[%s7316_s1 + $0xf8] sm:$0xff]  ;;  %v5605_v18 = vld [vmem:[%s7316_s1 + $0xf0] sm:$0xff]  ;;  %v5604_v22 = vld [vmem:[%s7316_s1 + $0xe8] sm:$0xff] }
   0x8   :  { %v5582_v14 = vld [vmem:[%s7316_s1 + $0xb8] sm:$0xff]  ;;  %v5581_v19 = vld [vmem:[%s7316_s1 + $0xb0] sm:$0xff]  ;;  %v5580_v23 = vld [vmem:[%s7316_s1 + $0xa8] sm:$0xff] }
   0x9   :  { %v5531_v24 = vld [vmem:[%s7316_s1 + $0x20] sm:$0xff]  ;;  %v5530_v27 = vld [vmem:[%s7316_s1 + $0x18] sm:$0xff]  ;;  %v5545_v29 = vld [vmem:[%s7317_s0 + $0xe8] sm:$0xff] }
   0xa   :  { %259 = vmatpush.bf16.msra.mxu0 %v5556_v2  ;;  %5823 = vmatpush.bf16.msra.mxu1 %v5556_v2  ;;  %v5603_v25 = vld [vmem:[%s7316_s1 + $0xe0] sm:$0xff]  ;;  %v5602_v31 = vld [vmem:[%s7316_s1 + $0xd8] sm:$0xff]  ;;  %v5550_v33 = vld [vmem:[%s7317_s0 + $0x110] sm:$0xff] }
   0xb   :  { %5824 = vmatpush.bf16.msra.mxu2 %v5556_v2  ;;  %5825 = vmatpush.bf16.msra.mxu3 %v5556_v2  ;;  %v5579_v26 = vld [vmem:[%s7316_s1 + $0xa0] sm:$0xff]  ;;  %v5578_v32 = vld [vmem:[%s7316_s1 + $0x98] sm:$0xff]  ;;  %v5529_v34 = vld [vmem:[%s7316_s1 + $0x10] sm:$0xff] }
   0xc   :  { %v5536_v28 = vld [vmem:[%s7317_s0 + $0xa0] sm:$0xff]  ;;  %v5601_v35 = vld [vmem:[%s7316_s1 + $0xd0] sm:$0xff]  ;;  %v5528_v38 = vld [vmem:[%s7316_s1 + $0x8] sm:$0xff] }
   0xd   :  { %v5548_v30 = vld [vmem:[%s7317_s0 + $0x100] sm:$0xff]  ;;  %v5577_v36 = vld [vmem:[%s7316_s1 + $0x90] sm:$0xff]  ;;  %v5600_v39 = vld [vmem:[%s7316_s1 + $0xc8] sm:$0xff] }
   0xe   :  { %260 = vmatpush.bf16.msra.mxu0 %v5555_v3  ;;  %5826 = vmatpush.bf16.msra.mxu1 %v5555_v3  ;;  %v5627_v37 = vld [vmem:[%s7316_s1 + $0x120] sm:$0xff]  ;;  %v5576_v40 = vld [vmem:[%s7316_s1 + $0x88] sm:$0xff]  ;;  %v5654_v42 = vld [vmem:[%s7316_s1 + $0x178] sm:$0xff] }
   0xf   :  { %5827 = vmatpush.bf16.msra.mxu2 %v5555_v3  ;;  %5828 = vmatpush.bf16.msra.mxu3 %v5555_v3  ;;  %v5527_v41 = vld [vmem:[%s7316_s1] sm:$0xff]  ;;  %v5702_v45 = vld [vmem:[%s7316_s1 + $0x1f8] sm:$0xff]  ;;  %v5537_v47 = vld [vmem:[%s7317_s0 + $0xa8] sm:$0xff] }
  0x10   :  { %v5599_v43 = vld [vmem:[%s7316_s1 + $0xc0] sm:$0xff]  ;;  %v5678_v46 = vld [vmem:[%s7316_s1 + $0x1b8] sm:$0xff]  ;;  %v5546_v48 = vld [vmem:[%s7317_s0 + $0xf0] sm:$0xff] }
  0x11   :  { %v5575_v44 = vld [vmem:[%s7316_s1 + $0x80] sm:$0xff]  ;;  %v5583_v50 = vld [vmem:[%s7317_s0 + $0x130] sm:$0xff]  ;;  %v5626_v51 = vld [vmem:[%s7316_s1 + $0x118] sm:$0xff] }
  0x12   :  { %261 = vmatpush.bf16.msra.mxu0 %v5554_v4  ;;  %5829 = vmatpush.bf16.msra.mxu1 %v5554_v4  ;;  %v5559_v49 = vld [vmem:[%s7317_s0 + $0x260] sm:$0xff]  ;;  %v5677_v52 = vld [vmem:[%s7316_s1 + $0x1b0] sm:$0xff]  ;;  %v5560_v56 = vld [vmem:[%s7317_s0 + $0x268] sm:$0xff] }
  0x13   :  { %5830 = vmatpush.bf16.msra.mxu2 %v5554_v4  ;;  %5831 = vmatpush.bf16.msra.mxu3 %v5554_v4  ;;  %v5701_v53 = vld [vmem:[%s7316_s1 + $0x1f0] sm:$0xff]  ;;  %v5511_v55 = vld [vmem:[%s7317_s0] sm:$0xff]  ;;  %v5584_v57 = vld [vmem:[%s7317_s0 + $0x138] sm:$0xff] }
  0x14   :  { %v5538_v54 = vld [vmem:[%s7317_s0 + $0xb0] sm:$0xff]  ;;  %v5539_v60 = vld [vmem:[%s7317_s0 + $0xb8] sm:$0xff]  ;;  %v5512_v61 = vld [vmem:[%s7317_s0 + $0x8] sm:$0xff] }
  0x15   :  { %v5653_v58 = vld [vmem:[%s7316_s1 + $0x170] sm:$0xff]  ;;  %v5585_v63 = vld [vmem:[%s7317_s0 + $0x140] sm:$0xff]  ;;  %v5676_v0 = vld [vmem:[%s7316_s1 + $0x1a8] sm:$0xff] }
  0x16   :  { %262 = vmatpush.bf16.msra.mxu0 %v5553_v5  ;;  %5832 = vmatpush.bf16.msra.mxu1 %v5553_v5  ;;  %v5625_v59 = vld [vmem:[%s7316_s1 + $0x110] sm:$0xff]  ;;  %v5700_v1 = vld [vmem:[%s7316_s1 + $0x1e8] sm:$0xff]  ;;  %v5540_v2 = vld [vmem:[%s7317_s0 + $0xc0] sm:$0xff] }
  0x17   :  { %5833 = vmatpush.bf16.msra.mxu2 %v5553_v5  ;;  %5834 = vmatpush.bf16.msra.mxu3 %v5553_v5  ;;  %v5561_v62 = vld [vmem:[%s7317_s0 + $0x270] sm:$0xff]  ;;  %v5562_v4 = vld [vmem:[%s7317_s0 + $0x278] sm:$0xff]  ;;  %v5586_v5 = vld [vmem:[%s7317_s0 + $0x148] sm:$0xff] }
  0x18   :  { %v5513_v3 = vld [vmem:[%s7317_s0 + $0x10] sm:$0xff] }
  0x1a   :  { %263 = vmatpush.bf16.msra.mxu0 %v5552_v6  ;;  %5835 = vmatpush.bf16.msra.mxu1 %v5552_v6 }
  0x1b   :  { %5836 = vmatpush.bf16.msra.mxu2 %v5552_v6  ;;  %5837 = vmatpush.bf16.msra.mxu3 %v5552_v6  ;;  %v5624_v6 = vld [vmem:[%s7316_s1 + $0x108] sm:$0xff] }
  0x1e   :  { %264 = vmatpush.bf16.msra.mxu0 %v5551_v7  ;;  %5838 = vmatpush.bf16.msra.mxu1 %v5551_v7 }
  0x1f   :  { %5839 = vmatpush.bf16.msra.mxu2 %v5551_v7  ;;  %5840 = vmatpush.bf16.msra.mxu3 %v5551_v7  ;;  %v5652_v7 = vld [vmem:[%s7316_s1 + $0x168] sm:$0xff] }
  0x21   :  { %265 = vmatmul.bf16.vlgmr.msra.gmra.mxu0 %v5535_v10  ;;  %310 = vmatmul.bf16.vlgmr.msra.gmra.mxu1 %v5544_v11  ;;  %v5563_v10 = vld [vmem:[%s7317_s0 + $0x280] sm:$0xff]  ;;  %v5587_v11 = vld [vmem:[%s7317_s0 + $0x150] sm:$0xff] }
  0x22   :  { %490 = vmatpush.bf16.msrb.mxu1 %v5534_v8  ;;  %1403 = vmatpush.bf16.msrb.mxu0 %v5630_v9  ;;  %v5541_v8 = vld [vmem:[%s7317_s0 + $0xc8] sm:$0xff]  ;;  %v5514_v9 = vld [vmem:[%s7317_s0 + $0x18] sm:$0xff] }
  0x23   :  { %325 = vmatmul.bf16.vlgmr.msra.gmra.mxu2 %v5547_v12  ;;  %1088 = vmatpush.bf16.msrb.mxu3 %v5606_v13  ;;  %v5623_v12 = vld [vmem:[%s7316_s1 + $0x100] sm:$0xff] }
  0x24   :  { %773 = vmatpush.bf16.msrb.mxu2 %v5582_v14  ;;  %335 = vmatmul.bf16.vlgmr.msra.gmra.mxu3 %v5549_v15  ;;  %v5675_v13 = vld [vmem:[%s7316_s1 + $0x1a0] sm:$0xff]  ;;  %v5542_v14 = vld [vmem:[%s7317_s0 + $0xd0] sm:$0xff] }
  0x25   :  { %v5515_v15 = vld [vmem:[%s7317_s0 + $0x20] sm:$0xff] }
  0x26   :  { %491 = vmatpush.bf16.msrb.mxu1 %v5533_v16  ;;  %1404 = vmatpush.bf16.msrb.mxu0 %v5629_v17  ;;  %v5564_v16 = vld [vmem:[%s7317_s0 + $0x288] sm:$0xff]  ;;  %v5699_v17 = vld [vmem:[%s7316_s1 + $0x1e0] sm:$0xff] }
  0x27   :  { %1089 = vmatpush.bf16.msrb.mxu3 %v5605_v18  ;;  %v5588_v18 = vld [vmem:[%s7317_s0 + $0x158] sm:$0xff] }
  0x28   :  { %774 = vmatpush.bf16.msrb.mxu2 %v5581_v19  ;;  %v5651_v19 = vld [vmem:[%s7316_s1 + $0x160] sm:$0xff] }
  0x2a   :  { %492 = vmatpush.bf16.msrb.mxu1 %v5532_v20  ;;  %1405 = vmatpush.bf16.msrb.mxu0 %v5628_v21  ;;  %v5726_v20 = vld [vmem:[%s7316_s1 + $0x238] sm:$0xff] }
  0x2b   :  { %1090 = vmatpush.bf16.msrb.mxu3 %v5604_v22  ;;  %v5543_v21 = vld [vmem:[%s7317_s0 + $0xd8] sm:$0xff]  ;;  %v5516_v22 = vld [vmem:[%s7317_s0 + $0x28] sm:$0xff] }
  0x2c   :  { %775 = vmatpush.bf16.msrb.mxu2 %v5580_v23 }
  0x2e   :  { %493 = vmatpush.bf16.msrb.mxu1 %v5531_v24  ;;  %1406 = vmatpush.bf16.msrb.mxu0 %v5627_v37  ;;  %v5566_v37 = vld [vmem:[%s7317_s0 + $0x298] sm:$0xff] }
  0x2f   :  { %1091 = vmatpush.bf16.msrb.mxu3 %v5603_v25  ;;  %v5565_v25 = vld [vmem:[%s7317_s0 + $0x290] sm:$0xff] }
  0x30   :  { %776 = vmatpush.bf16.msrb.mxu2 %v5579_v26  ;;  %v5589_v26 = vld [vmem:[%s7317_s0 + $0x160] sm:$0xff] }
  0x31   :  { %270 = vmatmul.bf16.gmra.mxu0 %v5536_v28  ;;  %315 = vmatmul.bf16.gmra.mxu1 %v5545_v29 }
  0x32   :  { %494 = vmatpush.bf16.msrb.mxu1 %v5530_v27  ;;  %1407 = vmatpush.bf16.msrb.mxu0 %v5626_v51 }
  0x33   :  { %330 = vmatmul.bf16.gmra.mxu2 %v5548_v30  ;;  %1092 = vmatpush.bf16.msrb.mxu3 %v5602_v31  ;;  %v5674_v31 = vld [vmem:[%s7316_s1 + $0x198] sm:$0xff] }
  0x34   :  { %777 = vmatpush.bf16.msrb.mxu2 %v5578_v32  ;;  %340 = vmatmul.bf16.gmra.mxu3 %v5550_v33  ;;  %v5517_v33 = vld [vmem:[%s7317_s0 + $0x30] sm:$0xff] }
  0x36   :  { %495 = vmatpush.bf16.msrb.mxu1 %v5529_v34  ;;  %1408 = vmatpush.bf16.msrb.mxu0 %v5625_v59  ;;  %v5607_v34 = vld [vmem:[%s7317_s0 + $0x1c8] sm:$0xff]  ;;  %v5673_v59 = vld [vmem:[%s7316_s1 + $0x190] sm:$0xff] }
  0x37   :  { %1093 = vmatpush.bf16.msrb.mxu3 %v5601_v35 }
  0x38   :  { %778 = vmatpush.bf16.msrb.mxu2 %v5577_v36 }
  0x3a   :  { %496 = vmatpush.bf16.msrb.mxu1 %v5528_v38  ;;  %1409 = vmatpush.bf16.msrb.mxu0 %v5624_v6  ;;  %v5697_v6 = vld [vmem:[%s7316_s1 + $0x1d0] sm:$0xff] }
  0x3b   :  { %1094 = vmatpush.bf16.msrb.mxu3 %v5600_v39  ;;  %v5590_v39 = vld [vmem:[%s7317_s0 + $0x168] sm:$0xff] }
  0x3c   :  { %779 = vmatpush.bf16.msrb.mxu2 %v5576_v40  ;;  %v5698_v40 = vld [vmem:[%s7316_s1 + $0x1d8] sm:$0xff] }
  0x3e   :  { %497 = vmatpush.bf16.msrb.mxu1 %v5527_v41  ;;  %1410 = vmatpush.bf16.msrb.mxu0 %v5623_v12  ;;  %v5650_v41 = vld [vmem:[%s7316_s1 + $0x158] sm:$0xff] }
  0x3f   :  { %1095 = vmatpush.bf16.msrb.mxu3 %v5599_v43 }
  0x40   :  { %780 = vmatpush.bf16.msrb.mxu2 %v5575_v44 }
  0x41   :  { %275 = vmatmul.bf16.gmra.mxu0 %v5537_v47  ;;  %320 = vmatmul.bf16.gmra.mxu1 %v5546_v48  ;;  %v5518_v48 = vld [vmem:[%s7317_s0 + $0x38] sm:$0xff] }
  0x42   :  { %1718 = vmatpush.bf16.msra.mxu1 %v5654_v42  ;;  %2660 = vmatpush.bf16.msra.mxu0 %v5726_v20  ;;  %v5725_v42 = vld [vmem:[%s7316_s1 + $0x230] sm:$0xff] }
  0x43   :  { %2346 = vmatpush.bf16.msra.mxu3 %v5702_v45  ;;  %781 = vmatmul.bf16.vlgmr.msrb.gmra.mxu2 %v5559_v49  ;;  %v5608_v49 = vld [vmem:[%s7317_s0 + $0x1d0] sm:$0xff] }
  0x44   :  { %2032 = vmatpush.bf16.msra.mxu2 %v5678_v46  ;;  %1096 = vmatmul.bf16.vlgmr.msrb.gmra.mxu3 %v5583_v50 }
  0x46   :  { %1719 = vmatpush.bf16.msra.mxu1 %v5653_v58  ;;  %2661 = vmatpush.bf16.msra.mxu0 %v5725_v42 }
  0x47   :  { %2347 = vmatpush.bf16.msra.mxu3 %v5701_v53 }
  0x48   :  { %2033 = vmatpush.bf16.msra.mxu2 %v5677_v52  ;;  %v5567_v52 = vld [vmem:[%s7317_s0 + $0x2a0] sm:$0xff] }
  0x4a   :  { %1720 = vmatpush.bf16.msra.mxu1 %v5652_v7  ;;  %v5649_v7 = vld [vmem:[%s7316_s1 + $0x150] sm:$0xff] }
  0x4b   :  { %2348 = vmatpush.bf16.msra.mxu3 %v5700_v1  ;;  %v5568_v1 = vld [vmem:[%s7317_s0 + $0x2a8] sm:$0xff] }
  0x4c   :  { %2034 = vmatpush.bf16.msra.mxu2 %v5676_v0 }
  0x4e   :  { %1721 = vmatpush.bf16.msra.mxu1 %v5651_v19  ;;  %v5610_v19 = vld [vmem:[%s7317_s0 + $0x1e0] sm:$0xff] }
  0x4f   :  { %2349 = vmatpush.bf16.msra.mxu3 %v5699_v17 }
  0x50   :  { %2035 = vmatpush.bf16.msra.mxu2 %v5675_v13 }
  0x51   :  { %280 = vmatmul.bf16.gmra.mxu0 %v5538_v54  ;;  %498 = vmatmul.bf16.vlgmr.msrb.gmra.mxu1 %v5511_v55  ;;  %v5591_v54 = vld [vmem:[%s7317_s0 + $0x170] sm:$0xff] }
  0x52   :  { %1722 = vmatpush.bf16.msra.mxu1 %v5650_v41  ;;  %v5672_v41 = vld [vmem:[%s7316_s1 + $0x188] sm:$0xff] }
  0x53   :  { %786 = vmatmul.bf16.gmra.mxu2 %v5560_v56  ;;  %2350 = vmatpush.bf16.msra.mxu3 %v5698_v40 }
  0x54   :  { %1101 = vmatmul.bf16.gmra.mxu3 %v5584_v57  ;;  %2036 = vmatpush.bf16.msra.mxu2 %v5674_v31 }
  0x56   :  { %1723 = vmatpush.bf16.msra.mxu1 %v5649_v7 }
  0x57   :  { %2351 = vmatpush.bf16.msra.mxu3 %v5697_v6 }
  0x58   :  { %2037 = vmatpush.bf16.msra.mxu2 %v5673_v59 }
  0x5c   :  { %2038 = vmatpush.bf16.msra.mxu2 %v5672_v41  ;;  %v5613_v41 = vld [vmem:[%s7317_s0 + $0x1f8] sm:$0xff] }
  0x61   :  { %285 = vmatmul.bf16.gmra.mxu0 %v5539_v60  ;;  %503 = vmatmul.bf16.gmra.mxu1 %v5512_v61  ;;  %v5519_v61 = vld [vmem:[%s7317_s0 + $0x40] sm:$0xff] }
  0x63   :  { %791 = vmatmul.bf16.gmra.mxu2 %v5561_v62  ;;  %v5609_v62 = vld [vmem:[%s7317_s0 + $0x1d8] sm:$0xff] }
  0x64   :  { %1106 = vmatmul.bf16.gmra.mxu3 %v5585_v63 }
  0x71   :  { %290 = vmatmul.bf16.gmra.mxu0 %v5540_v2  ;;  %508 = vmatmul.bf16.gmra.mxu1 %v5513_v3 }
  0x73   :  { %796 = vmatmul.bf16.gmra.mxu2 %v5562_v4  ;;  %v5592_v4 = vld [vmem:[%s7317_s0 + $0x178] sm:$0xff] }
  0x74   :  { %1111 = vmatmul.bf16.gmra.mxu3 %v5586_v5 }
  0x81   :  { %295 = vmatmul.bf16.gmra.mxu0 %v5541_v8  ;;  %513 = vmatmul.bf16.gmra.mxu1 %v5514_v9  ;;  %v5724_v8 = vld [vmem:[%s7316_s1 + $0x228] sm:$0xff] }
  0x82   :  { %2662 = vmatpush.bf16.msra.mxu0 %v5724_v8 }
  0x83   :  { %801 = vmatmul.bf16.gmra.mxu2 %v5563_v10 }
  0x84   :  { %1116 = vmatmul.bf16.gmra.mxu3 %v5587_v11 }
  0x91   :  { %300 = vmatmul.bf16.gmra.mxu0 %v5542_v14  ;;  %518 = vmatmul.bf16.gmra.mxu1 %v5515_v15 }
  0x93   :  { %806 = vmatmul.bf16.gmra.mxu2 %v5564_v16 }
  0x94   :  { %1121 = vmatmul.bf16.gmra.mxu3 %v5588_v18  ;;  %v5520_v18 = vld [vmem:[%s7317_s0 + $0x48] sm:$0xff] }
  0x9e   :  { %v266_v23 = vpop.f32.mrf.mxu0  ;;  %v6123_v24 = vpop.f32.mrf.mxu1 }
  0xa1   :  { %305 = vmatmul.bf16.gmra.mxu0 %v5543_v21  ;;  %523 = vmatmul.bf16.gmra.mxu1 %v5516_v22  ;;  %v5569_v22 = vld [vmem:[%s7317_s0 + $0x2b0] sm:$0xff] }
  0xa3   :  { %811 = vmatmul.bf16.gmra.mxu2 %v5565_v25 }
  0xa4   :  { %1126 = vmatmul.bf16.gmra.mxu3 %v5589_v26  ;;  %v5593_v26 = vld [vmem:[%s7317_s0 + $0x180] sm:$0xff] }
  0xa6   :  { %v6131_v27 = vpop.f32.mrf.mxu2  ;;  %v6133_v28 = vpop.f32.mrf.mxu0 }
  0xa7   :  { %v6135_v29 = vpop.f32.mrf.mxu1  ;;  %v6137_v30 = vpop.f32.mrf.mxu3 }
  0xae   :  { %v6142_v32 = vpop.f32.mrf.mxu2  ;;  %v6150_v35 = vpop.f32.mrf.mxu0 }
  0xaf   :  { %v6152_v36 = vpop.f32.mrf.mxu1  ;;  %v6157_v38 = vpop.f32.mrf.mxu3 }
  0xb1   :  { %528 = vmatmul.bf16.gmra.mxu1 %v5517_v33  ;;  %1411 = vmatmul.bf16.vlgmr.msrb.gmra.mxu0 %v5607_v34 }
  0xb3   :  { %816 = vmatmul.bf16.gmra.mxu2 %v5566_v37 }
  0xb4   :  { %1131 = vmatmul.bf16.gmra.mxu3 %v5590_v39 }
  0xb6   :  { %v6171_v43 = vpop.f32.mrf.mxu2  ;;  %v6173_v44 = vpop.f32.mrf.mxu0 }
  0xb7   :  { %v6175_v45 = vpop.f32.mrf.mxu1  ;;  %v6177_v46 = vpop.f32.mrf.mxu3 }
  0xbe   :  { %v6179_v47 = vpop.f32.mrf.mxu2  ;;  %v6187_v50 = vpop.f32.mrf.mxu0 }
  0xbf   :  { %v6189_v51 = vpop.f32.mrf.mxu1  ;;  %v6194_v53 = vpop.f32.mrf.mxu3 }
  0xc1   :  { %533 = vmatmul.bf16.gmra.mxu1 %v5518_v48  ;;  %1416 = vmatmul.bf16.gmra.mxu0 %v5608_v49  ;;  %v5521_v49 = vld [vmem:[%s7317_s0 + $0x50] sm:$0xff] }
  0xc3   :  { %821 = vmatmul.bf16.gmra.mxu2 %v5567_v52  ;;  %v5611_v52 = vld [vmem:[%s7317_s0 + $0x1e8] sm:$0xff] }
  0xc4   :  { %1136 = vmatmul.bf16.gmra.mxu3 %v5591_v54 }
  0xc6   :  { %v782_v55 = vpop.f32.mrf.mxu2  ;;  %v6199_v56 = vpop.f32.mrf.mxu0 }
  0xc7   :  { %v6201_v57 = vpop.f32.mrf.mxu1  ;;  %v1097_v58 = vpop.f32.mrf.mxu3 }
  0xce   :  { %v784_v60 = vpop.f32.mrf.mxu2  ;;  %v6212_v63 = vpop.f32.mrf.mxu0 }
  0xcf   :  { %v499_v0 = vpop.f32.mrf.mxu1  ;;  %v1099_v3 = vpop.f32.mrf.mxu3 }
  0xd0   :  { %v500_v2 = vadd.f32 %v499_v0, %v266_v23  ;;  %v5648_v0 = vld [vmem:[%s7316_s1 + $0x148] sm:$0xff] }
  0xd1   :  { %538 = vmatmul.bf16.gmra.mxu1 %v5519_v61  ;;  %1421 = vmatmul.bf16.gmra.mxu0 %v5609_v62  ;;  %v5696_v62 = vld [vmem:[%s7316_s1 + $0x1c8] sm:$0xff] }
  0xd2   :  { %v862_v5 = vadd.f32 %v782_v55, %v500_v2  ;;  %v5570_v55 = vld [vmem:[%s7317_s0 + $0x2b8] sm:$0xff]  ;;  %1724 = vmatpush.bf16.msra.mxu1 %v5648_v0  ;;  %2352 = vmatpush.bf16.msra.mxu3 %v5696_v62 }
  0xd3   :  { %826 = vmatmul.bf16.gmra.mxu2 %v5568_v1 }
  0xd4   :  { %1141 = vmatmul.bf16.gmra.mxu3 %v5592_v4  ;;  %v6229_v9 = vadd.f32 %v1097_v58, %v862_v5 }
  0xd6   :  { %v787_v10 = vpop.f32.mrf.mxu2  ;;  %v6231_v11 = vpop.f32.mrf.mxu0 }
  0xd7   :  { %v501_v12 = vpop.f32.mrf.mxu1  ;;  %v1102_v14 = vpop.f32.mrf.mxu3 }
  0xd8   :  { %v502_v13 = vadd.f32 %v501_v12, %v6133_v28  ;;  %v5522_v12 = vld [vmem:[%s7317_s0 + $0x58] sm:$0xff] }
  0xda   :  { %v863_v15 = vadd.f32 %v784_v60, %v502_v13  ;;  %v5594_v60 = vld [vmem:[%s7317_s0 + $0x188] sm:$0xff]  ;;  %v5612_v13 = vld [vmem:[%s7317_s0 + $0x1f0] sm:$0xff] }
  0xdc   :  { %v6234_v16 = vadd.f32 %v1099_v3, %v863_v15 }
  0xde   :  { %v789_v17 = vpop.f32.mrf.mxu2  ;;  %v6242_v20 = vpop.f32.mrf.mxu0 }
  0xdf   :  { %v504_v21 = vpop.f32.mrf.mxu1  ;;  %v1104_v25 = vpop.f32.mrf.mxu3 }
  0xe0   :  { %v505_v23 = vadd.f32 %v504_v21, %v6150_v35 }
  0xe1   :  { %543 = vmatmul.bf16.gmra.mxu1 %v5520_v18  ;;  %1426 = vmatmul.bf16.gmra.mxu0 %v5610_v19  ;;  %v5595_v19 = vld [vmem:[%s7317_s0 + $0x190] sm:$0xff] }
  0xe2   :  { %v864_v28 = vadd.f32 %v787_v10, %v505_v23 }
  0xe3   :  { %831 = vmatmul.bf16.gmra.mxu2 %v5569_v22 }
  0xe4   :  { %1146 = vmatmul.bf16.gmra.mxu3 %v5593_v26  ;;  %v6251_v31 = vadd.f32 %v1102_v14, %v864_v28 }
  0xe6   :  { %v792_v33 = vpop.f32.mrf.mxu2  ;;  %v6253_v34 = vpop.f32.mrf.mxu0 }
  0xe7   :  { %v506_v37 = vpop.f32.mrf.mxu1  ;;  %v1107_v40 = vpop.f32.mrf.mxu3 }
  0xe8   :  { %v507_v39 = vadd.f32 %v506_v37, %v6173_v44  ;;  %v5671_v37 = vld [vmem:[%s7316_s1 + $0x180] sm:$0xff] }
  0xe9   :  { %2039 = vmatpush.bf16.msra.mxu2 %v5671_v37  ;;  %v5736_v37 = vld [vmem:[%s7316_s1 + $0x38] sm:$0xff] }
  0xea   :  { %v865_v35 = vadd.f32 %v789_v17, %v507_v39 }
  0xec   :  { %v6259_v42 = vadd.f32 %v1104_v25, %v865_v35  ;;  %v5523_v35 = vld [vmem:[%s7317_s0 + $0x60] sm:$0xff] }
  0xed   :  { %3027 = vmatpush.bf16.msrb.mxu2 %v5736_v37 }
  0xee   :  { %v794_v48 = vpop.f32.mrf.mxu2  ;;  %v6267_v54 = vpop.f32.mrf.mxu0 }
  0xef   :  { %v509_v44 = vpop.f32.mrf.mxu1  ;;  %v1109_v59 = vpop.f32.mrf.mxu3 }
  0xf0   :  { %v510_v58 = vadd.f32 %v509_v44, %v6187_v50  ;;  %v5723_v50 = vld [vmem:[%s7316_s1 + $0x220] sm:$0xff] }
  0xf1   :  { %548 = vmatmul.bf16.gmra.mxu1 %v5521_v49  ;;  %1431 = vmatmul.bf16.gmra.mxu0 %v5611_v52  ;;  %v5572_v49 = vld [vmem:[%s7317_s0 + $0x2c8] sm:$0xff] }
  0xf2   :  { %v866_v61 = vadd.f32 %v792_v33, %v510_v58  ;;  %2663 = vmatpush.bf16.msra.mxu0 %v5723_v50 }
  0xf3   :  { %836 = vmatmul.bf16.gmra.mxu2 %v5570_v55  ;;  %v5596_v55 = vld [vmem:[%s7317_s0 + $0x198] sm:$0xff] }
  0xf4   :  { %1151 = vmatmul.bf16.gmra.mxu3 %v5594_v60  ;;  %v6285_v1 = vadd.f32 %v1107_v40, %v866_v61  ;;  %v5647_v60 = vld [vmem:[%s7316_s1 + $0x140] sm:$0xff] }
  0xf5   :  { %1725 = vmatpush.bf16.msra.mxu1 %v5647_v60 }
  0xf6   :  { %v797_v2 = vpop.f32.mrf.mxu2  ;;  %v6287_v3 = vpop.f32.mrf.mxu0 }
  0xf7   :  { %v511_v4 = vpop.f32.mrf.mxu1  ;;  %v1112_v6 = vpop.f32.mrf.mxu3 }
  0xf8   :  { %v512_v5 = vadd.f32 %v511_v4, %v6199_v56  ;;  %v5571_v56 = vld [vmem:[%s7317_s0 + $0x2c0] sm:$0xff] }
  0xfa   :  { %v867_v7 = vadd.f32 %v794_v48, %v512_v5 }
  0xfc   :  { %v6290_v8 = vadd.f32 %v1109_v59, %v867_v7  ;;  %v5695_v59 = vld [vmem:[%s7316_s1 + $0x1c0] sm:$0xff] }
  0xfd   :  { %2353 = vmatpush.bf16.msra.mxu3 %v5695_v59  ;;  %v5598_v59 = vld [vmem:[%s7317_s0 + $0x1a8] sm:$0xff] }
  0xfe   :  { %v799_v10 = vpop.f32.mrf.mxu2  ;;  %v6298_v14 = vpop.f32.mrf.mxu0 }
  0xff   :  { %v514_v15 = vpop.f32.mrf.mxu1  ;;  %v1114_v18 = vpop.f32.mrf.mxu3 }
 0x100   :  { %v515_v17 = vadd.f32 %v514_v15, %v6212_v63 }
 0x101   :  { %553 = vmatmul.bf16.gmra.mxu1 %v5522_v12  ;;  %1436 = vmatmul.bf16.gmra.mxu0 %v5612_v13  ;;  %v5614_v12 = vld [vmem:[%s7317_s0 + $0x200] sm:$0xff] }
 0x102   :  { %v868_v21 = vadd.f32 %v797_v2, %v515_v17 }
 0x103   :  { %841 = vmatmul.bf16.gmra.mxu2 %v5571_v56 }
 0x104   :  { %1156 = vmatmul.bf16.gmra.mxu3 %v5595_v19  ;;  %v6307_v22 = vadd.f32 %v1112_v6, %v868_v21 }
 0x106   :  { %v802_v23 = vpop.f32.mrf.mxu2  ;;  %v6309_v25 = vpop.f32.mrf.mxu0 }
 0x107   :  { %v516_v26 = vpop.f32.mrf.mxu1  ;;  %v1117_v33 = vpop.f32.mrf.mxu3 }
 0x108   :  { %v517_v28 = vadd.f32 %v516_v26, %v6231_v11 }
 0x10a   :  { %v869_v63 = vadd.f32 %v799_v10, %v517_v28  ;;  %v5524_v10 = vld [vmem:[%s7317_s0 + $0x68] sm:$0xff] }
 0x10c   :  { %v6315_v39 = vadd.f32 %v1114_v18, %v869_v63  ;;  %v5597_v18 = vld [vmem:[%s7317_s0 + $0x1a0] sm:$0xff] }
 0x10e   :  { %v804_v40 = vpop.f32.mrf.mxu2  ;;  %v6323_v48 = vpop.f32.mrf.mxu0 }
 0x10f   :  { %v519_v11 = vpop.f32.mrf.mxu1  ;;  %v1119_v44 = vpop.f32.mrf.mxu3 }
 0x110   :  { %v520_v52 = vadd.f32 %v519_v11, %v6242_v20  ;;  %v5722_v20 = vld [vmem:[%s7316_s1 + $0x218] sm:$0xff]  ;;  %v5615_v11 = vld [vmem:[%s7317_s0 + $0x208] sm:$0xff] }
 0x111   :  { %558 = vmatmul.bf16.gmra.mxu1 %v5523_v35  ;;  %1441 = vmatmul.bf16.gmra.mxu0 %v5613_v41  ;;  %v5525_v41 = vld [vmem:[%s7317_s0 + $0x70] sm:$0xff] }
 0x112   :  { %v870_v58 = vadd.f32 %v802_v23, %v520_v52  ;;  %2664 = vmatpush.bf16.msra.mxu0 %v5722_v20  ;;  %v5574_v52 = vld [vmem:[%s7317_s0 + $0x2d8] sm:$0xff] }
 0x113   :  { %846 = vmatmul.bf16.gmra.mxu2 %v5572_v49  ;;  %v5756_v20 = vld [vmem:[%s7316_s1 + $0xb8] sm:$0xff] }
 0x114   :  { %1161 = vmatmul.bf16.gmra.mxu3 %v5596_v55  ;;  %v6341_v61 = vadd.f32 %v1117_v33, %v870_v58 }
 0x115   :  { %3126 = vmatpush.bf16.msrb.mxu3 %v5756_v20 }
 0x116   :  { %v807_v62 = vpop.f32.mrf.mxu2  ;;  %v6343_v0 = vpop.f32.mrf.mxu0 }
 0x117   :  { %v521_v50 = vpop.f32.mrf.mxu1  ;;  %v1122_v4 = vpop.f32.mrf.mxu3 }
 0x118   :  { %v522_v2 = vadd.f32 %v521_v50, %v6253_v34  ;;  %v5573_v34 = vld [vmem:[%s7317_s0 + $0x2d0] sm:$0xff] }
 0x11a   :  { %v871_v5 = vadd.f32 %v804_v40, %v522_v2 }
 0x11c   :  { %v6346_v6 = vadd.f32 %v1119_v44, %v871_v5 }
 0x11e   :  { %v809_v7 = vpop.f32.mrf.mxu2  ;;  %v6354_v13 = vpop.f32.mrf.mxu0 }
 0x11f   :  { %v524_v15 = vpop.f32.mrf.mxu1  ;;  %v1124_v17 = vpop.f32.mrf.mxu3 }
 0x120   :  { %v525_v56 = vadd.f32 %v524_v15, %v6267_v54 }
 0x121   :  { %563 = vmatmul.bf16.gmra.mxu1 %v5524_v10  ;;  %1446 = vmatmul.bf16.gmra.mxu0 %v5614_v12 }
 0x122   :  { %v872_v19 = vadd.f32 %v807_v62, %v525_v56  ;;  %v5746_v62 = vld [vmem:[%s7316_s1 + $0x78] sm:$0xff] }
 0x123   :  { %851 = vmatmul.bf16.gmra.mxu2 %v5573_v34  ;;  %2948 = vmatpush.bf16.msrb.mxu1 %v5746_v62  ;;  %v5526_v56 = vld [vmem:[%s7317_s0 + $0x78] sm:$0xff] }
 0x124   :  { %1166 = vmatmul.bf16.gmra.mxu3 %v5597_v18  ;;  %v6363_v21 = vadd.f32 %v1122_v4, %v872_v19 }
 0x126   :  { %v812_v23 = vpop.f32.mrf.mxu2  ;;  %v6365_v26 = vpop.f32.mrf.mxu0 }
 0x127   :  { %v526_v28 = vpop.f32.mrf.mxu1  ;;  %v1127_v63 = vpop.f32.mrf.mxu3 }
 0x128   :  { %v527_v33 = vadd.f32 %v526_v28, %v6287_v3 }
 0x12a   :  { %v873_v54 = vadd.f32 %v809_v7, %v527_v33  ;;  %v5679_v33 = vld [vmem:[%s7317_s0 + $0xa0] sm:$0xff] }
 0x12c   :  { %v6371_v40 = vadd.f32 %v1124_v17, %v873_v54  ;;  %v5616_v17 = vld [vmem:[%s7317_s0 + $0x210] sm:$0xff] }
 0x12e   :  { %v814_v35 = vpop.f32.mrf.mxu2  ;;  %v1412_v3 = vpop.f32.mrf.mxu0 }
 0x12f   :  { %v529_v49 = vpop.f32.mrf.mxu1  ;;  %v6384_v55 = vadd.f32 %v1412_v3, %v6229_v9  ;;  %v1129_v58 = vpop.f32.mrf.mxu3  ;;  %v5721_v9 = vld [vmem:[%s7316_s1 + $0x210] sm:$0xff] }
 0x130   :  { %v530_v44 = vadd.f32 %v529_v49, %v6298_v14  ;;  %2665 = vmatpush.bf16.msra.mxu0 %v5721_v9  ;;  %v5735_v3 = vld [vmem:[%s7316_s1 + $0x30] sm:$0xff] }
 0x131   :  { %568 = vmatmul.bf16.gmra.mxu1 %v5525_v41  ;;  %1451 = vmatmul.bf16.gmra.mxu0 %v5615_v11 }
 0x132   :  { %v874_v60 = vadd.f32 %v812_v23, %v530_v44  ;;  %3028 = vmatpush.bf16.msrb.mxu2 %v5735_v3 }
 0x133   :  { %856 = vmatmul.bf16.gmra.mxu2 %v5574_v52 }
 0x134   :  { %1171 = vmatmul.bf16.gmra.mxu3 %v5598_v59  ;;  %v6398_v14 = vadd.f32 %v1127_v63, %v874_v60  ;;  %v5656_v60 = vld [vmem:[%s7317_s0 + $0x10] sm:$0xff] }
 0x136   :  { %v817_v50 = vpop.f32.mrf.mxu2  ;;  %v1414_v4 = vpop.f32.mrf.mxu0 }
 0x137   :  { %v531_v2 = vpop.f32.mrf.mxu1  ;;  %v6402_v7 = vadd.f32 %v1414_v4, %v6234_v16  ;;  %v1132_v10 = vpop.f32.mrf.mxu3  ;;  %v5655_v16 = vld [vmem:[%s7317_s0 + $0x8] sm:$0xff]  ;;  %v5755_v4 = vld [vmem:[%s7316_s1 + $0xb0] sm:$0xff] }
 0x138   :  { %v532_v5 = vadd.f32 %v531_v2, %v6309_v25  ;;  %3127 = vmatpush.bf16.msrb.mxu3 %v5755_v4 }
 0x13a   :  { %v875_v12 = vadd.f32 %v814_v35, %v532_v5  ;;  %v5745_v5 = vld [vmem:[%s7316_s1 + $0x70] sm:$0xff] }
 0x13b   :  { %2949 = vmatpush.bf16.msrb.mxu1 %v5745_v5 }
 0x13c   :  { %v6404_v15 = vadd.f32 %v1129_v58, %v875_v12  ;;  %v5617_v58 = vld [vmem:[%s7317_s0 + $0x218] sm:$0xff] }
 0x13e   :  { %v819_v34 = vpop.f32.mrf.mxu2  ;;  %v1417_v19 = vpop.f32.mrf.mxu0 }
 0x13f   :  { %v534_v18 = vpop.f32.mrf.mxu1  ;;  %v6417_v23 = vadd.f32 %v1417_v19, %v6251_v31  ;;  %v1134_v28 = vpop.f32.mrf.mxu3 }
 0x140   :  { %v535_v25 = vadd.f32 %v534_v18, %v6323_v48 }
 0x141   :  { %573 = vmatmul.bf16.gmra.mxu1 %v5526_v56  ;;  %1456 = vmatmul.bf16.gmra.mxu0 %v5616_v17 }
 0x142   :  { %v876_v63 = vadd.f32 %v817_v50, %v535_v25  ;;  %v5680_v50 = vld [vmem:[%s7317_s0 + $0xa8] sm:$0xff] }
 0x143   :  { %2040 = vmatmul.bf16.vlgmr.msra.gmra.mxu2 %v5655_v16 }
 0x144   :  { %2354 = vmatmul.bf16.vlgmr.msra.gmra.mxu3 %v5679_v33  ;;  %v6422_v54 = vadd.f32 %v1132_v10, %v876_v63  ;;  %v5632_v33 = vld [vmem:[%s7317_s0 + $0x300] sm:$0xff] }
 0x146   :  { %v822_v37 = vpop.f32.mrf.mxu2  ;;  %v1419_v41 = vpop.f32.mrf.mxu0 }
 0x147   :  { %v536_v35 = vpop.f32.mrf.mxu1  ;;  %v6426_v31 = vadd.f32 %v1419_v41, %v6259_v42  ;;  %v1137_v11 = vpop.f32.mrf.mxu3 }
 0x148   :  { %v537_v48 = vadd.f32 %v536_v35, %v6343_v0  ;;  %v5631_v0 = vld [vmem:[%s7317_s0 + $0x2f8] sm:$0xff] }
 0x14a   :  { %v877_v49 = vadd.f32 %v819_v34, %v537_v48  ;;  %v5681_v48 = vld [vmem:[%s7317_s0 + $0xb0] sm:$0xff] }
 0x14c   :  { %v6431_v52 = vadd.f32 %v1134_v28, %v877_v49  ;;  %v5618_v28 = vld [vmem:[%s7317_s0 + $0x220] sm:$0xff] }
 0x14e   :  { %v824_v44 = vpop.f32.mrf.mxu2  ;;  %v1422_v59 = vpop.f32.mrf.mxu0 }
 0x14f   :  { %v539_v42 = vpop.f32.mrf.mxu1  ;;  %v6444_v62 = vadd.f32 %v1422_v59, %v6285_v1  ;;  %v1139_v9 = vpop.f32.mrf.mxu3  ;;  %v5720_v1 = vld [vmem:[%s7316_s1 + $0x208] sm:$0xff] }
 0x150   :  { %v540_v20 = vadd.f32 %v539_v42, %v6354_v13  ;;  %2666 = vmatpush.bf16.msra.mxu0 %v5720_v1  ;;  %v5734_v59 = vld [vmem:[%s7316_s1 + $0x28] sm:$0xff] }
 0x151   :  { %1461 = vmatmul.bf16.gmra.mxu0 %v5617_v58  ;;  %1726 = vmatmul.bf16.vlgmr.msra.gmra.mxu1 %v5631_v0 }
 0x152   :  { %v878_v2 = vadd.f32 %v822_v37, %v540_v20  ;;  %3029 = vmatpush.bf16.msrb.mxu2 %v5734_v59 }
 0x153   :  { %2045 = vmatmul.bf16.gmra.mxu2 %v5656_v60 }
 0x154   :  { %2359 = vmatmul.bf16.gmra.mxu3 %v5680_v50  ;;  %v6458_v13 = vadd.f32 %v1137_v11, %v878_v2  ;;  %v5658_v2 = vld [vmem:[%s7317_s0 + $0x20] sm:$0xff] }
 0x156   :  { %v827_v10 = vpop.f32.mrf.mxu2  ;;  %v1424_v34 = vpop.f32.mrf.mxu0 }
 0x157   :  { %v541_v12 = vpop.f32.mrf.mxu1  ;;  %v6462_v17 = vadd.f32 %v1424_v34, %v6290_v8  ;;  %v1142_v18 = vpop.f32.mrf.mxu3  ;;  %v5657_v8 = vld [vmem:[%s7317_s0 + $0x18] sm:$0xff]  ;;  %v5754_v34 = vld [vmem:[%s7316_s1 + $0xa8] sm:$0xff] }
 0x158   :  { %v542_v56 = vadd.f32 %v541_v12, %v6365_v26  ;;  %3128 = vmatpush.bf16.msrb.mxu3 %v5754_v34 }
 0x15a   :  { %v879_v19 = vadd.f32 %v824_v44, %v542_v56  ;;  %v5744_v56 = vld [vmem:[%s7316_s1 + $0x68] sm:$0xff] }
 0x15b   :  { %2950 = vmatpush.bf16.msrb.mxu1 %v5744_v56 }
 0x15c   :  { %v6464_v16 = vadd.f32 %v1139_v9, %v879_v19  ;;  %v5619_v9 = vld [vmem:[%s7317_s0 + $0x228] sm:$0xff] }
 0x15e   :  { %v829_v25 = vpop.f32.mrf.mxu2  ;;  %v1427_v37 = vpop.f32.mrf.mxu0 }
 0x15f   :  { %v544_v63 = vpop.f32.mrf.mxu1  ;;  %v6477_v35 = vadd.f32 %v1427_v37, %v6307_v22  ;;  %v1144_v41 = vpop.f32.mrf.mxu3 }
 0x160   :  { %v545_v26 = vadd.f32 %v544_v63, %v6123_v24 }
 0x161   :  { %1466 = vmatmul.bf16.gmra.mxu0 %v5618_v28  ;;  %1731 = vmatmul.bf16.gmra.mxu1 %v5632_v33 }
 0x162   :  { %v880_v11 = vadd.f32 %v827_v10, %v545_v26  ;;  %v5682_v10 = vld [vmem:[%s7317_s0 + $0xb8] sm:$0xff] }
 0x163   :  { %2050 = vmatmul.bf16.gmra.mxu2 %v5657_v8 }
 0x164   :  { %2364 = vmatmul.bf16.gmra.mxu3 %v5681_v48  ;;  %v6482_v49 = vadd.f32 %v1142_v18, %v880_v11  ;;  %v5634_v48 = vld [vmem:[%s7317_s0 + $0x310] sm:$0xff] }
 0x166   :  { %v832_v3 = vpop.f32.mrf.mxu2  ;;  %v1429_v58 = vpop.f32.mrf.mxu0 }
 0x167   :  { %v546_v44 = vpop.f32.mrf.mxu1  ;;  %v6486_v22 = vadd.f32 %v1429_v58, %v6315_v39  ;;  %v1147_v0 = vpop.f32.mrf.mxu3 }
 0x168   :  { %v547_v24 = vadd.f32 %v546_v44, %v6135_v29  ;;  %v5633_v29 = vld [vmem:[%s7317_s0 + $0x308] sm:$0xff] }
 0x16a   :  { %v881_v42 = vadd.f32 %v829_v25, %v547_v24  ;;  %v5683_v24 = vld [vmem:[%s7317_s0 + $0xc0] sm:$0xff] }
 0x16c   :  { %v6491_v60 = vadd.f32 %v1144_v41, %v881_v42  ;;  %v5620_v41 = vld [vmem:[%s7317_s0 + $0x230] sm:$0xff] }
 0x16e   :  { %v834_v20 = vpop.f32.mrf.mxu2  ;;  %v1432_v50 = vpop.f32.mrf.mxu0 }
 0x16f   :  { %v549_v39 = vpop.f32.mrf.mxu1  ;;  %v6504_v5 = vadd.f32 %v1432_v50, %v6341_v61  ;;  %v1149_v1 = vpop.f32.mrf.mxu3  ;;  %v5733_v50 = vld [vmem:[%s7316_s1 + $0x20] sm:$0xff] }
 0x170   :  { %v550_v4 = vadd.f32 %v549_v39, %v6152_v36  ;;  %v5719_v36 = vld [vmem:[%s7316_s1 + $0x200] sm:$0xff]  ;;  %3030 = vmatpush.bf16.msrb.mxu2 %v5733_v50 }
 0x171   :  { %1471 = vmatmul.bf16.gmra.mxu0 %v5619_v9  ;;  %1736 = vmatmul.bf16.gmra.mxu1 %v5633_v29 }
 0x172   :  { %v882_v12 = vadd.f32 %v832_v3, %v550_v4  ;;  %2667 = vmatpush.bf16.msra.mxu0 %v5719_v36 }
 0x173   :  { %2055 = vmatmul.bf16.gmra.mxu2 %v5658_v2 }
 0x174   :  { %2369 = vmatmul.bf16.gmra.mxu3 %v5682_v10  ;;  %v6518_v61 = vadd.f32 %v1147_v0, %v882_v12  ;;  %v5660_v12 = vld [vmem:[%s7317_s0 + $0x30] sm:$0xff] }
 0x176   :  { %v837_v18 = vpop.f32.mrf.mxu2  ;;  %v1434_v25 = vpop.f32.mrf.mxu0 }
 0x177   :  { %v551_v19 = vpop.f32.mrf.mxu1  ;;  %v6522_v33 = vadd.f32 %v1434_v25, %v6346_v6  ;;  %v1152_v63 = vpop.f32.mrf.mxu3  ;;  %v5753_v25 = vld [vmem:[%s7316_s1 + $0xa0] sm:$0xff] }
 0x178   :  { %v552_v28 = vadd.f32 %v551_v19, %v6175_v45  ;;  %v5659_v45 = vld [vmem:[%s7317_s0 + $0x28] sm:$0xff]  ;;  %3129 = vmatpush.bf16.msrb.mxu3 %v5753_v25 }
 0x17a   :  { %v883_v37 = vadd.f32 %v834_v20, %v552_v28  ;;  %v5743_v28 = vld [vmem:[%s7316_s1 + $0x60] sm:$0xff] }
 0x17b   :  { %2951 = vmatpush.bf16.msrb.mxu1 %v5743_v28 }
 0x17c   :  { %v6524_v8 = vadd.f32 %v1149_v1, %v883_v37  ;;  %v5621_v1 = vld [vmem:[%s7317_s0 + $0x238] sm:$0xff] }
 0x17e   :  { %v839_v26 = vpop.f32.mrf.mxu2  ;;  %v1437_v3 = vpop.f32.mrf.mxu0 }
 0x17f   :  { %v554_v11 = vpop.f32.mrf.mxu1  ;;  %v6537_v44 = vadd.f32 %v1437_v3, %v6363_v21  ;;  %v1154_v58 = vpop.f32.mrf.mxu3 }
 0x180   :  { %v555_v6 = vadd.f32 %v554_v11, %v6189_v51 }
 0x181   :  { %1476 = vmatmul.bf16.gmra.mxu0 %v5620_v41  ;;  %1741 = vmatmul.bf16.gmra.mxu1 %v5634_v48 }
 0x182   :  { %v884_v0 = vadd.f32 %v837_v18, %v555_v6  ;;  %v5684_v18 = vld [vmem:[%s7317_s0 + $0xc8] sm:$0xff]  ;;  %v5622_v6 = vld [vmem:[%s7317_s0 + $0x240] sm:$0xff] }
 0x183   :  { %2060 = vmatmul.bf16.gmra.mxu2 %v5659_v45 }
 0x184   :  { %2374 = vmatmul.bf16.gmra.mxu3 %v5683_v24  ;;  %v6542_v42 = vadd.f32 %v1152_v63, %v884_v0 }
 0x186   :  { %v842_v59 = vpop.f32.mrf.mxu2  ;;  %v1439_v9 = vpop.f32.mrf.mxu0 }
 0x187   :  { %v556_v20 = vpop.f32.mrf.mxu1  ;;  %v6546_v21 = vadd.f32 %v1439_v9, %v6371_v40  ;;  %v1157_v29 = vpop.f32.mrf.mxu3  ;;  %v5685_v9 = vld [vmem:[%s7317_s0 + $0xd0] sm:$0xff] }
 0x188   :  { %v557_v51 = vadd.f32 %v556_v20, %v6201_v57  ;;  %v5635_v57 = vld [vmem:[%s7317_s0 + $0x318] sm:$0xff] }
 0x18a   :  { %v885_v39 = vadd.f32 %v839_v26, %v557_v51 }
 0x18c   :  { %v6551_v2 = vadd.f32 %v1154_v58, %v885_v39  ;;  %v5636_v58 = vld [vmem:[%s7317_s0 + $0x320] sm:$0xff] }
 0x18e   :  { %v844_v4 = vpop.f32.mrf.mxu2  ;;  %v1442_v10 = vpop.f32.mrf.mxu0 }
 0x18f   :  { %v559_v40 = vpop.f32.mrf.mxu1  ;;  %v6564_v56 = vadd.f32 %v1442_v10, %v6398_v14  ;;  %v1159_v36 = vpop.f32.mrf.mxu3 }
 0x190   :  { %v560_v34 = vadd.f32 %v559_v40, %v6131_v27  ;;  %v5732_v40 = vld [vmem:[%s7316_s1 + $0x18] sm:$0xff] }
 0x191   :  { %1481 = vmatmul.bf16.gmra.mxu0 %v5621_v1  ;;  %1746 = vmatmul.bf16.gmra.mxu1 %v5635_v57 }
 0x192   :  { %v886_v19 = vadd.f32 %v842_v59, %v560_v34  ;;  %3031 = vmatpush.bf16.msrb.mxu2 %v5732_v40  ;;  %v5637_v34 = vld [vmem:[%s7317_s0 + $0x328] sm:$0xff] }
 0x193   :  { %2065 = vmatmul.bf16.gmra.mxu2 %v5660_v12 }
 0x194   :  { %2379 = vmatmul.bf16.gmra.mxu3 %v5684_v18  ;;  %v6575_v27 = vadd.f32 %v1157_v29, %v886_v19  ;;  %v5662_v18 = vld [vmem:[%s7317_s0 + $0x40] sm:$0xff] }
 0x196   :  { %v847_v14 = vpop.f32.mrf.mxu2  ;;  %v1444_v37 = vpop.f32.mrf.mxu0 }
 0x197   :  { %v561_v63 = vpop.f32.mrf.mxu1  ;;  %v6579_v41 = vadd.f32 %v1444_v37, %v6404_v15  ;;  %v1162_v48 = vpop.f32.mrf.mxu3  ;;  %v5752_v37 = vld [vmem:[%s7316_s1 + $0x98] sm:$0xff] }
 0x198   :  { %v562_v26 = vadd.f32 %v561_v63, %v6142_v32  ;;  %v5661_v32 = vld [vmem:[%s7317_s0 + $0x38] sm:$0xff]  ;;  %3130 = vmatpush.bf16.msrb.mxu3 %v5752_v37 }
 0x19a   :  { %v887_v11 = vadd.f32 %v844_v4, %v562_v26  ;;  %v5742_v26 = vld [vmem:[%s7316_s1 + $0x58] sm:$0xff] }
 0x19b   :  { %2952 = vmatpush.bf16.msrb.mxu1 %v5742_v26 }
 0x19c   :  { %v6581_v3 = vadd.f32 %v1159_v36, %v887_v11 }
 0x19e   :  { %v849_v45 = vpop.f32.mrf.mxu2  ;;  %v1447_v0 = vpop.f32.mrf.mxu0 }
 0x19f   :  { %v564_v24 = vpop.f32.mrf.mxu1  ;;  %v6594_v59 = vadd.f32 %v1447_v0, %v6422_v54  ;;  %v1164_v20 = vpop.f32.mrf.mxu3 }
 0x1a0   :  { %v565_v15 = vadd.f32 %v564_v24, %v6171_v43 }
 0x1a1   :  { %1486 = vmatmul.bf16.gmra.mxu0 %v5622_v6  ;;  %1751 = vmatmul.bf16.gmra.mxu1 %v5636_v58 }
 0x1a2   :  { %v888_v51 = vadd.f32 %v847_v14, %v565_v15  ;;  %v5686_v14 = vld [vmem:[%s7317_s0 + $0xd8] sm:$0xff]  ;;  %v5638_v15 = vld [vmem:[%s7317_s0 + $0x330] sm:$0xff] }
 0x1a3   :  { %2070 = vmatmul.bf16.gmra.mxu2 %v5661_v32 }
 0x1a4   :  { %2384 = vmatmul.bf16.gmra.mxu3 %v5685_v9  ;;  %v6599_v29 = vadd.f32 %v1162_v48, %v888_v51 }
 0x1a6   :  { %v852_v39 = vpop.f32.mrf.mxu2  ;;  %v1449_v4 = vpop.f32.mrf.mxu0 }
 0x1a7   :  { %v566_v50 = vpop.f32.mrf.mxu1  ;;  %v6603_v54 = vadd.f32 %v1449_v4, %v6431_v52  ;;  %v1167_v1 = vpop.f32.mrf.mxu3  ;;  %v5687_v4 = vld [vmem:[%s7317_s0 + $0xe0] sm:$0xff] }
 0x1a8   :  { %v567_v43 = vadd.f32 %v566_v50, %v6179_v47  ;;  %v5703_v47 = vld [vmem:[%s7317_s0 + $0x268] sm:$0xff] }
 0x1aa   :  { %v889_v57 = vadd.f32 %v849_v45, %v567_v43 }
 0x1ac   :  { %v6608_v10 = vadd.f32 %v1164_v20, %v889_v57  ;;  %v5704_v20 = vld [vmem:[%s7317_s0 + $0x270] sm:$0xff] }
 0x1ae   :  { %v854_v12 = vpop.f32.mrf.mxu2  ;;  %v1452_v36 = vpop.f32.mrf.mxu0 }
 0x1af   :  { %v569_v52 = vpop.f32.mrf.mxu1  ;;  %v6621_v25 = vadd.f32 %v1452_v36, %v6458_v13  ;;  %v1169_v28 = vpop.f32.mrf.mxu3 }
 0x1b0   :  { %v570_v19 = vadd.f32 %v569_v52, %v6137_v30  ;;  %v5731_v52 = vld [vmem:[%s7316_s1 + $0x10] sm:$0xff] }
 0x1b1   :  { %1756 = vmatmul.bf16.gmra.mxu1 %v5637_v34  ;;  %2668 = vmatmul.bf16.vlgmr.msra.gmra.mxu0 %v5703_v47 }
 0x1b2   :  { %v890_v63 = vadd.f32 %v852_v39, %v570_v19  ;;  %3032 = vmatpush.bf16.msrb.mxu2 %v5731_v52  ;;  %v5639_v19 = vld [vmem:[%s7317_s0 + $0x338] sm:$0xff] }
 0x1b3   :  { %2075 = vmatmul.bf16.gmra.mxu2 %v5662_v18 }
 0x1b4   :  { %2389 = vmatmul.bf16.gmra.mxu3 %v5686_v14  ;;  %v6632_v30 = vadd.f32 %v1167_v1, %v890_v63  ;;  %v5664_v14 = vld [vmem:[%s7317_s0 + $0x50] sm:$0xff] }
 0x1b6   :  { %v857_v13 = vpop.f32.mrf.mxu2  ;;  %v1454_v11 = vpop.f32.mrf.mxu0 }
 0x1b7   :  { %v571_v48 = vpop.f32.mrf.mxu1  ;;  %v6636_v6 = vadd.f32 %v1454_v11, %v6464_v16  ;;  %v1172_v58 = vpop.f32.mrf.mxu3  ;;  %v5751_v11 = vld [vmem:[%s7316_s1 + $0x90] sm:$0xff] }
 0x1b8   :  { %v572_v45 = vadd.f32 %v571_v48, %v6157_v38  ;;  %v5663_v38 = vld [vmem:[%s7317_s0 + $0x48] sm:$0xff]  ;;  %3131 = vmatpush.bf16.msrb.mxu3 %v5751_v11 }
 0x1ba   :  { %v891_v24 = vadd.f32 %v854_v12, %v572_v45  ;;  %v5741_v45 = vld [vmem:[%s7316_s1 + $0x50] sm:$0xff] }
 0x1bb   :  { %2953 = vmatpush.bf16.msrb.mxu1 %v5741_v45 }
 0x1bc   :  { %v6638_v0 = vadd.f32 %v1169_v28, %v891_v24 }
 0x1be   :  { %v859_v32 = vpop.f32.mrf.mxu2  ;;  %v1457_v51 = vpop.f32.mrf.mxu0 }
 0x1bf   :  { %v574_v9 = vpop.f32.mrf.mxu1  ;;  %v6651_v39 = vadd.f32 %v1457_v51, %v6482_v49  ;;  %v1174_v50 = vpop.f32.mrf.mxu3 }
 0x1c0   :  { %v575_v16 = vadd.f32 %v574_v9, %v6177_v46 }
 0x1c1   :  { %1761 = vmatmul.bf16.gmra.mxu1 %v5638_v15  ;;  %2673 = vmatmul.bf16.gmra.mxu0 %v5704_v20 }
 0x1c2   :  { %v892_v43 = vadd.f32 %v857_v13, %v575_v16  ;;  %v5688_v13 = vld [vmem:[%s7317_s0 + $0xe8] sm:$0xff]  ;;  %v5640_v16 = vld [vmem:[%s7317_s0 + $0x340] sm:$0xff] }
 0x1c3   :  { %2080 = vmatmul.bf16.gmra.mxu2 %v5663_v38 }
 0x1c4   :  { %2394 = vmatmul.bf16.gmra.mxu3 %v5687_v4  ;;  %v6656_v1 = vadd.f32 %v1172_v58, %v892_v43 }
 0x1c6   :  { %v2041_v57 = vpop.f32.mrf.mxu2  ;;  %v1459_v12 = vpop.f32.mrf.mxu0 }
 0x1c7   :  { %v576_v40 = vpop.f32.mrf.mxu1  ;;  %v6660_v49 = vadd.f32 %v1459_v12, %v6491_v60  ;;  %v2355_v34 = vpop.f32.mrf.mxu3  ;;  %v5689_v12 = vld [vmem:[%s7317_s0 + $0xf0] sm:$0xff] }
 0x1c8   :  { %v577_v46 = vadd.f32 %v576_v40, %v6194_v53  ;;  %v5705_v53 = vld [vmem:[%s7317_s0 + $0x278] sm:$0xff] }
 0x1ca   :  { %v893_v47 = vadd.f32 %v859_v32, %v577_v46 }
 0x1cc   :  { %v6665_v36 = vadd.f32 %v1174_v50, %v893_v47  ;;  %v5706_v50 = vld [vmem:[%s7317_s0 + $0x280] sm:$0xff] }
 0x1ce   :  { %v2043_v18 = vpop.f32.mrf.mxu2  ;;  %v1462_v60 = vpop.f32.mrf.mxu0 }
 0x1cf   :  { %v1727_v28 = vpop.f32.mrf.mxu1  ;;  %v6677_v63 = vadd.f32 %v1462_v60, %v6518_v61  ;;  %v2357_v26 = vpop.f32.mrf.mxu3  ;;  %v5730_v60 = vld [vmem:[%s7316_s1 + $0x8] sm:$0xff] }
 0x1d0   :  { %v1807_v37 = vadd.f32 %v1727_v28, %v6384_v55  ;;  %3033 = vmatpush.bf16.msrb.mxu2 %v5730_v60 }
 0x1d1   :  { %1766 = vmatmul.bf16.gmra.mxu1 %v5639_v19  ;;  %2678 = vmatmul.bf16.gmra.mxu0 %v5705_v53 }
 0x1d2   :  { %v2121_v48 = vadd.f32 %v2041_v57, %v1807_v37  ;;  %v5641_v37 = vld [vmem:[%s7317_s0 + $0x348] sm:$0xff] }
 0x1d3   :  { %2085 = vmatmul.bf16.gmra.mxu2 %v5664_v14 }
 0x1d4   :  { %2399 = vmatmul.bf16.gmra.mxu3 %v5688_v13  ;;  %v6689_v55 = vadd.f32 %v2355_v34, %v2121_v48  ;;  %v5666_v13 = vld [vmem:[%s7317_s0 + $0x60] sm:$0xff] }
 0x1d6   :  { %v2046_v61 = vpop.f32.mrf.mxu2  ;;  %v1464_v58 = vpop.f32.mrf.mxu0 }
 0x1d7   :  { %v1729_v24 = vpop.f32.mrf.mxu1  ;;  %v6692_v32 = vadd.f32 %v1464_v58, %v6524_v8  ;;  %v2360_v20 = vpop.f32.mrf.mxu3  ;;  %v5665_v8 = vld [vmem:[%s7317_s0 + $0x58] sm:$0xff] }
 0x1d8   :  { %v1808_v15 = vadd.f32 %v1729_v24, %v6402_v7  ;;  %v5750_v24 = vld [vmem:[%s7316_s1 + $0x88] sm:$0xff] }
 0x1d9   :  { %3132 = vmatpush.bf16.msrb.mxu3 %v5750_v24 }
 0x1da   :  { %v2122_v9 = vadd.f32 %v2043_v18, %v1808_v15  ;;  %v5740_v15 = vld [vmem:[%s7316_s1 + $0x48] sm:$0xff] }
 0x1db   :  { %2954 = vmatpush.bf16.msrb.mxu1 %v5740_v15 }
 0x1dc   :  { %v6695_v51 = vadd.f32 %v2357_v26, %v2122_v9 }
 0x1de   :  { %v2048_v38 = vpop.f32.mrf.mxu2  ;;  %v1467_v4 = vpop.f32.mrf.mxu0 }
 0x1df   :  { %v1732_v43 = vpop.f32.mrf.mxu1  ;;  %v6707_v7 = vadd.f32 %v1467_v4, %v6542_v42  ;;  %v2362_v40 = vpop.f32.mrf.mxu3 }
 0x1e0   :  { %v1809_v57 = vadd.f32 %v1732_v43, %v6417_v23 }
 0x1e1   :  { %1771 = vmatmul.bf16.gmra.mxu1 %v5640_v16  ;;  %2683 = vmatmul.bf16.gmra.mxu0 %v5706_v50 }
 0x1e2   :  { %v2123_v46 = vadd.f32 %v2046_v61, %v1809_v57  ;;  %v5690_v61 = vld [vmem:[%s7317_s0 + $0xf8] sm:$0xff]  ;;  %v5642_v57 = vld [vmem:[%s7317_s0 + $0x350] sm:$0xff] }
 0x1e3   :  { %2090 = vmatmul.bf16.gmra.mxu2 %v5665_v8 }
 0x1e4   :  { %2404 = vmatmul.bf16.gmra.mxu3 %v5689_v12  ;;  %v6713_v34 = vadd.f32 %v2360_v20, %v2123_v46 }
 0x1e6   :  { %v2051_v47 = vpop.f32.mrf.mxu2  ;;  %v1469_v52 = vpop.f32.mrf.mxu0 }
 0x1e7   :  { %v1734_v18 = vpop.f32.mrf.mxu1  ;;  %v6716_v42 = vadd.f32 %v1469_v52, %v6551_v2  ;;  %v2365_v19 = vpop.f32.mrf.mxu3  ;;  %v5707_v2 = vld [vmem:[%s7317_s0 + $0x288] sm:$0xff] }
 0x1e8   :  { %v1810_v23 = vadd.f32 %v1734_v18, %v6426_v31  ;;  %v5691_v18 = vld [vmem:[%s7317_s0 + $0x100] sm:$0xff] }
 0x1ea   :  { %v2124_v53 = vadd.f32 %v2048_v38, %v1810_v23 }
 0x1ec   :  { %v6722_v28 = vadd.f32 %v2362_v40, %v2124_v53  ;;  %v5708_v40 = vld [vmem:[%s7317_s0 + $0x290] sm:$0xff] }
 0x1ee   :  { %v2053_v14 = vpop.f32.mrf.mxu2  ;;  %v1472_v26 = vpop.f32.mrf.mxu0 }
 0x1ef   :  { %v1737_v31 = vpop.f32.mrf.mxu1  ;;  %v6734_v48 = vadd.f32 %v1472_v26, %v6575_v27  ;;  %v2367_v45 = vpop.f32.mrf.mxu3  ;;  %v5729_v26 = vld [vmem:[%s7316_s1] sm:$0xff] }
 0x1f0   :  { %v1811_v11 = vadd.f32 %v1737_v31, %v6444_v62  ;;  %3034 = vmatpush.bf16.msrb.mxu2 %v5729_v26 }
 0x1f1   :  { %1776 = vmatmul.bf16.gmra.mxu1 %v5641_v37  ;;  %2688 = vmatmul.bf16.gmra.mxu0 %v5707_v2 }
 0x1f2   :  { %v2125_v58 = vadd.f32 %v2051_v47, %v1811_v11  ;;  %v5643_v11 = vld [vmem:[%s7317_s0 + $0x358] sm:$0xff] }
 0x1f3   :  { %2095 = vmatmul.bf16.gmra.mxu2 %v5666_v13 }
 0x1f4   :  { %2409 = vmatmul.bf16.gmra.mxu3 %v5690_v61  ;;  %v6746_v62 = vadd.f32 %v2365_v19, %v2125_v58  ;;  %v5668_v61 = vld [vmem:[%s7317_s0 + $0x70] sm:$0xff] }
 0x1f6   :  { %v2056_v27 = vpop.f32.mrf.mxu2  ;;  %v1474_v20 = vpop.f32.mrf.mxu0 }
 0x1f7   :  { %v1739_v9 = vpop.f32.mrf.mxu1  ;;  %v6749_v38 = vadd.f32 %v1474_v20, %v6581_v3  ;;  %v2370_v50 = vpop.f32.mrf.mxu3  ;;  %v5667_v3 = vld [vmem:[%s7317_s0 + $0x68] sm:$0xff] }
 0x1f8   :  { %v1812_v16 = vadd.f32 %v1739_v9, %v6462_v17  ;;  %v5749_v9 = vld [vmem:[%s7316_s1 + $0x80] sm:$0xff] }
 0x1f9   :  { %3133 = vmatpush.bf16.msrb.mxu3 %v5749_v9  ;;  %v5711_v9 = vld [vmem:[%s7317_s0 + $0x2a8] sm:$0xff] }
 0x1fa   :  { %v2126_v4 = vadd.f32 %v2053_v14, %v1812_v16 }
 0x1fc   :  { %v6752_v43 = vadd.f32 %v2367_v45, %v2126_v4 }
 0x1fe   :  { %v2058_v8 = vpop.f32.mrf.mxu2  ;;  %v1477_v12 = vpop.f32.mrf.mxu0 }
 0x1ff   :  { %v1742_v46 = vpop.f32.mrf.mxu1  ;;  %v6764_v17 = vadd.f32 %v1477_v12, %v6599_v29  ;;  %v2372_v52 = vpop.f32.mrf.mxu3 }
 0x200   :  { %v1813_v47 = vadd.f32 %v1742_v46, %v6477_v35 }
 0x201   :  { %1781 = vmatmul.bf16.gmra.mxu1 %v5642_v57  ;;  %2693 = vmatmul.bf16.gmra.mxu0 %v5708_v40 }
 0x202   :  { %v2127_v23 = vadd.f32 %v2056_v27, %v1813_v47  ;;  %v5692_v27 = vld [vmem:[%s7317_s0 + $0x108] sm:$0xff]  ;;  %v5644_v47 = vld [vmem:[%s7317_s0 + $0x360] sm:$0xff] }
 0x203   :  { %2100 = vmatmul.bf16.gmra.mxu2 %v5667_v3 }
 0x204   :  { %2414 = vmatmul.bf16.gmra.mxu3 %v5691_v18  ;;  %v6770_v19 = vadd.f32 %v2370_v50, %v2127_v23 }
 0x206   :  { %v2061_v53 = vpop.f32.mrf.mxu2  ;;  %v1479_v60 = vpop.f32.mrf.mxu0 }
 0x207   :  { %v1744_v14 = vpop.f32.mrf.mxu1  ;;  %v6773_v29 = vadd.f32 %v1479_v60, %v6608_v10  ;;  %v2375_v37 = vpop.f32.mrf.mxu3  ;;  %v5709_v10 = vld [vmem:[%s7317_s0 + $0x298] sm:$0xff] }
 0x208   :  { %v1814_v35 = vadd.f32 %v1744_v14, %v6486_v22  ;;  %v5693_v14 = vld [vmem:[%s7317_s0 + $0x110] sm:$0xff] }
 0x20a   :  { %v2128_v2 = vadd.f32 %v2058_v8, %v1814_v35 }
 0x20c   :  { %v6779_v31 = vadd.f32 %v2372_v52, %v2128_v2  ;;  %v5710_v52 = vld [vmem:[%s7317_s0 + $0x2a0] sm:$0xff]  ;;  %v5776_v2 = vld [vmem:[%s7316_s1 + $0x138] sm:$0xff] }
 0x20d   :  { %3332 = vmatpush.bf16.msra.mxu2 %v5776_v2  ;;  %v5782_v2 = vld [vmem:[%s7316_s1 + $0x158] sm:$0xff] }
 0x20e   :  { %v2063_v13 = vpop.f32.mrf.mxu2  ;;  %v1482_v45 = vpop.f32.mrf.mxu0 }
 0x20f   :  { %v1747_v22 = vpop.f32.mrf.mxu1  ;;  %v6791_v58 = vadd.f32 %v1482_v45, %v6632_v30  ;;  %v2377_v15 = vpop.f32.mrf.mxu3  ;;  %v5739_v30 = vld [vmem:[%s7316_s1 + $0x40] sm:$0xff] }
 0x210   :  { %v1815_v24 = vadd.f32 %v1747_v22, %v6504_v5  ;;  %2955 = vmatpush.bf16.msrb.mxu1 %v5739_v30  ;;  %v5775_v22 = vld [vmem:[%s7316_s1 + $0x130] sm:$0xff] }
 0x211   :  { %1786 = vmatmul.bf16.gmra.mxu1 %v5643_v11  ;;  %2698 = vmatmul.bf16.gmra.mxu0 %v5709_v10 }
 0x212   :  { %v2129_v20 = vadd.f32 %v2061_v53, %v1815_v24  ;;  %3333 = vmatpush.bf16.msra.mxu2 %v5775_v22  ;;  %v5785_v24 = vld [vmem:[%s7316_s1 + $0x170] sm:$0xff] }
 0x213   :  { %2105 = vmatmul.bf16.gmra.mxu2 %v5668_v61 }
 0x214   :  { %2419 = vmatmul.bf16.gmra.mxu3 %v5692_v27  ;;  %v6803_v16 = vadd.f32 %v2375_v37, %v2129_v20  ;;  %v5645_v20 = vld [vmem:[%s7317_s0 + $0x368] sm:$0xff] }
 0x216   :  { %v2066_v5 = vpop.f32.mrf.mxu2  ;;  %v1484_v50 = vpop.f32.mrf.mxu0 }
 0x217   :  { %v1749_v4 = vpop.f32.mrf.mxu1  ;;  %v6806_v8 = vadd.f32 %v1484_v50, %v6638_v0  ;;  %v2380_v40 = vpop.f32.mrf.mxu3  ;;  %v5669_v0 = vld [vmem:[%s7317_s0 + $0x78] sm:$0xff]  ;;  %v5670_v50 = vld [vmem:[%s7317_s0 + $0x80] sm:$0xff] }
 0x218   :  { %v1816_v57 = vadd.f32 %v1749_v4, %v6522_v33  ;;  %v5784_v4 = vld [vmem:[%s7316_s1 + $0x168] sm:$0xff] }
 0x21a   :  { %v2130_v12 = vadd.f32 %v2063_v13, %v1816_v57 }
 0x21c   :  { %v6809_v46 = vadd.f32 %v2377_v15, %v2130_v12 }
 0x21e   :  { %v2068_v3 = vpop.f32.mrf.mxu2  ;;  %v1487_v18 = vpop.f32.mrf.mxu0 }
 0x21f   :  { %v1752_v23 = vpop.f32.mrf.mxu1  ;;  %v6821_v33 = vadd.f32 %v1487_v18, %v6656_v1  ;;  %v2382_v60 = vpop.f32.mrf.mxu3 }
 0x220   :  { %v1817_v53 = vadd.f32 %v1752_v23, %v6537_v44  ;;  %v5786_v44 = vld [vmem:[%s7316_s1 + $0x178] sm:$0xff] }
 0x221   :  { %1791 = vmatmul.bf16.gmra.mxu1 %v5644_v47  ;;  %2703 = vmatmul.bf16.gmra.mxu0 %v5710_v52  ;;  %v5766_v47 = vld [vmem:[%s7316_s1 + $0xf8] sm:$0xff]  ;;  %v5773_v52 = vld [vmem:[%s7316_s1 + $0x120] sm:$0xff] }
 0x222   :  { %v2131_v35 = vadd.f32 %v2066_v5, %v1817_v53  ;;  %3435 = vmatpush.bf16.msra.mxu3 %v5786_v44  ;;  %3229 = vmatpush.bf16.msra.mxu1 %v5766_v47  ;;  %v5772_v53 = vld [vmem:[%s7316_s1 + $0x118] sm:$0xff]  ;;  %v5764_v44 = vld [vmem:[%s7316_s1 + $0xe8] sm:$0xff]  ;;  %v5769_v47 = vld [vmem:[%s7316_s1 + $0x100] sm:$0xff] }
 0x223   :  { %2110 = vmatmul.bf16.gmra.mxu2 %v5669_v0 }
 0x224   :  { %2424 = vmatmul.bf16.gmra.mxu3 %v5693_v14  ;;  %v6827_v37 = vadd.f32 %v2380_v40, %v2131_v35 }
 0x226   :  { %v2071_v1 = vpop.f32.mrf.mxu2  ;;  %v1489_v26 = vpop.f32.mrf.mxu0  ;;  %3436 = vmatpush.bf16.msra.mxu3 %v5785_v24  ;;  %v5770_v24 = vld [vmem:[%s7316_s1 + $0x108] sm:$0xff] }
 0x227   :  { %v1754_v13 = vpop.f32.mrf.mxu1  ;;  %v6836_v11 = vadd.f32 %v1489_v26, %v6665_v36  ;;  %v2385_v45 = vpop.f32.mrf.mxu3  ;;  %v5774_v36 = vld [vmem:[%s7316_s1 + $0x128] sm:$0xff] }
 0x228   :  { %v1818_v10 = vadd.f32 %v1754_v13, %v6546_v21  ;;  %v6853_v21 = vld [vmem:[%s7318_s2] ss:$0 sm:$0xff]  ;;  %3334 = vmatpush.bf16.msra.mxu2 %v5774_v36 }
 0x22a   :  { %v2132_v61 = vadd.f32 %v2068_v3, %v1818_v10  ;;  %v5694_v3 = vld [vmem:[%s7317_s0 + $0x118] sm:$0xff]  ;;  %3437 = vmatpush.bf16.msra.mxu3 %v5784_v4  ;;  %v5771_v10 = vld [vmem:[%s7316_s1 + $0x110] sm:$0xff] }
 0x22c   :  { %v6845_v15 = vadd.f32 %v2382_v60, %v2132_v61  ;;  %3335 = vmatpush.bf16.msra.mxu2 %v5773_v52 }
 0x22e   :  { %v2073_v27 = vpop.f32.mrf.mxu2  ;;  %v2669_v5 = vpop.f32.mrf.mxu0 }
 0x22f   :  { %v1757_v30 = vpop.f32.mrf.mxu1  ;;  %v2749_v40 = vadd.f32 %v2669_v5, %v6689_v55  ;;  %v2387_v12 = vpop.f32.mrf.mxu3  ;;  %v5765_v55 = vld [vmem:[%s7316_s1 + $0xf0] sm:$0xff]  ;;  %v5727_v5 = vld [vmem:[%s7317_s0 + $0x80] sm:$0xff] }
 0x230   :  { %v1819_v57 = vadd.f32 %v1757_v30, %v6564_v56  ;;  %v5783_v56 = vld [vmem:[%s7316_s1 + $0x160] sm:$0xff]  ;;  %3230 = vmatpush.bf16.msra.mxu1 %v5765_v55  ;;  %3336 = vmatpush.bf16.msra.mxu2 %v5772_v53 }
 0x231   :  { %v2784_v23 = vadd.f32 %v6853_v21, %v2749_v40  ;;  %1796 = vmatmul.bf16.gmra.mxu1 %v5645_v20  ;;  %2708 = vmatmul.bf16.gmra.mxu0 %v5711_v9  ;;  %v5712_v20 = vld [vmem:[%s7317_s0 + $0x2b0] sm:$0xff] }
 0x232   :  { %v2133_v18 = vadd.f32 %v2071_v1, %v1819_v57  ;;  %3438 = vmatpush.bf16.msra.mxu3 %v5783_v56  ;;  %v5806_v56 = vld [vmem:[%s7316_s1 + $0x1f8] sm:$0xff] }
 0x233   :  { %2115 = vmatmul.bf16.gmra.mxu2 %v5670_v50  ;;  %2816 = vst [vmem:[%s7319_s3] sm:$0xff] %v2784_v23  ;;  %v5780_v50 = vld [vmem:[%s7316_s1 + $0x148] sm:$0xff] }
 0x234   :  { %2429 = vmatmul.bf16.gmra.mxu3 %v5694_v3  ;;  %v6888_v0 = vadd.f32 %v2385_v45, %v2133_v18  ;;  %3231 = vmatpush.bf16.msra.mxu1 %v5764_v44  ;;  %v5762_v3 = vld [vmem:[%s7316_s1 + $0xd8] sm:$0xff]  ;;  %v5761_v18 = vld [vmem:[%s7316_s1 + $0xd0] sm:$0xff] }
 0x235   :  { %3337 = vmatpush.bf16.msra.mxu2 %v5771_v10 }
 0x236   :  { %v2076_v60 = vpop.f32.mrf.mxu2  ;;  %v2671_v35 = vpop.f32.mrf.mxu0  ;;  %3439 = vmatpush.bf16.msra.mxu3 %v5782_v2 }
 0x237   :  { %v1759_v14 = vpop.f32.mrf.mxu1  ;;  %v2750_v26 = vadd.f32 %v2671_v35, %v6695_v51  ;;  %v2390_v13 = vpop.f32.mrf.mxu3  ;;  %v5763_v51 = vld [vmem:[%s7316_s1 + $0xe0] sm:$0xff] }
 0x238   :  { %v1820_v1 = vadd.f32 %v1759_v14, %v6579_v41  ;;  %v5781_v41 = vld [vmem:[%s7316_s1 + $0x150] sm:$0xff]  ;;  %3232 = vmatpush.bf16.msra.mxu1 %v5763_v51  ;;  %v5816_v14 = vld [vmem:[%s7316_s1 + $0x238] sm:$0xff] }
 0x239   :  { %v2785_v22 = vadd.f32 %v6853_v21, %v2750_v26  ;;  %3338 = vmatpush.bf16.msra.mxu2 %v5770_v24  ;;  %v5760_v26 = vld [vmem:[%s7316_s1 + $0xc8] sm:$0xff]  ;;  %v5713_v51 = vld [vmem:[%s7317_s0 + $0x2b8] sm:$0xff] }
 0x23a   :  { %v2134_v45 = vadd.f32 %v2073_v27, %v1820_v1  ;;  %3440 = vmatpush.bf16.msra.mxu3 %v5781_v41  ;;  %v5646_v27 = vld [vmem:[%s7317_s0 + $0x370] sm:$0xff]  ;;  %v5737_v24 = vld [vmem:[%s7317_s0 + $0x118] sm:$0xff] }
 0x23b   :  { %2817 = vst [vmem:[%s7319_s3 + $0x8] sm:$0xff] %v2785_v22  ;;  %v5804_v22 = vld [vmem:[%s7316_s1 + $0x1e8] sm:$0xff] }
 0x23c   :  { %v6914_v61 = vadd.f32 %v2387_v12, %v2134_v45  ;;  %v5747_v12 = vld [vmem:[%s7317_s0 + $0x2e0] sm:$0xff]  ;;  %3233 = vmatpush.bf16.msra.mxu1 %v5762_v3 }
 0x23d   :  { %3339 = vmatpush.bf16.msra.mxu2 %v5769_v47 }
 0x23e   :  { %v2078_v36 = vpop.f32.mrf.mxu2  ;;  %v2674_v30 = vpop.f32.mrf.mxu0  ;;  %3441 = vmatpush.bf16.msra.mxu3 %v5780_v50 }
 0x23f   :  { %v1762_v9 = vpop.f32.mrf.mxu1  ;;  %v2751_v57 = vadd.f32 %v2674_v30, %v6713_v34  ;;  %v2392_v40 = vpop.f32.mrf.mxu3  ;;  %v5779_v34 = vld [vmem:[%s7316_s1 + $0x140] sm:$0xff] }
 0x240   :  { %v1821_v4 = vadd.f32 %v1762_v9, %v6594_v59  ;;  %3234 = vmatpush.bf16.msra.mxu1 %v5761_v18  ;;  %v5814_v9 = vld [vmem:[%s7316_s1 + $0x228] sm:$0xff] }
 0x241   :  { %v2786_v59 = vadd.f32 %v6853_v21, %v2751_v57  ;;  %1801 = vmatmul.bf16.gmra.mxu1 %v5646_v27  ;;  %2713 = vmatmul.bf16.gmra.mxu0 %v5712_v20  ;;  %v5728_v20 = vld [vmem:[%s7317_s0 + $0x88] sm:$0xff]  ;;  %v5796_v57 = vld [vmem:[%s7316_s1 + $0x1b8] sm:$0xff] }
 0x242   :  { %v2135_v52 = vadd.f32 %v2076_v60, %v1821_v4  ;;  %3442 = vmatpush.bf16.msra.mxu3 %v5779_v34  ;;  %v5748_v4 = vld [vmem:[%s7317_s0 + $0x2e8] sm:$0xff] }
 0x243   :  { %3035 = vmatmul.bf16.vlgmr.msrb.gmra.mxu2 %v5727_v5  ;;  %2818 = vst [vmem:[%s7319_s3 + $0x10] sm:$0xff] %v2786_v59 }
 0x244   :  { %3134 = vmatmul.bf16.vlgmr.msrb.gmra.mxu3 %v5747_v12  ;;  %v6952_v23 = vadd.f32 %v2390_v13, %v2135_v52  ;;  %3641 = vmatpush.bf16.msrb.mxu2 %v5806_v56  ;;  %v5805_v13 = vld [vmem:[%s7316_s1 + $0x1f0] sm:$0xff]  ;;  %v5802_v52 = vld [vmem:[%s7316_s1 + $0x1d8] sm:$0xff] }
 0x245   :  { %3235 = vmatpush.bf16.msra.mxu1 %v5760_v26  ;;  %v5812_v56 = vld [vmem:[%s7316_s1 + $0x218] sm:$0xff] }
 0x246   :  { %v2081_v55 = vpop.f32.mrf.mxu2  ;;  %v2676_v60 = vpop.f32.mrf.mxu0  ;;  %3744 = vmatpush.bf16.msrb.mxu3 %v5816_v14  ;;  %v5794_v14 = vld [vmem:[%s7316_s1 + $0x1a8] sm:$0xff] }
 0x247   :  { %v1764_v53 = vpop.f32.mrf.mxu1  ;;  %v2752_v2 = vadd.f32 %v2676_v60, %v6722_v28  ;;  %v2395_v1 = vpop.f32.mrf.mxu3  ;;  %v5759_v28 = vld [vmem:[%s7316_s1 + $0xc0] sm:$0xff] }
 0x248   :  { %v1822_v35 = vadd.f32 %v1764_v53, %v6603_v54  ;;  %3642 = vmatpush.bf16.msrb.mxu2 %v5805_v13  ;;  %v5815_v54 = vld [vmem:[%s7316_s1 + $0x230] sm:$0xff]  ;;  %v5800_v13 = vld [vmem:[%s7316_s1 + $0x1c8] sm:$0xff] }
 0x249   :  { %v2787_v10 = vadd.f32 %v6853_v21, %v2752_v2  ;;  %3236 = vmatpush.bf16.msra.mxu1 %v5759_v28 }
 0x24a   :  { %v2136_v44 = vadd.f32 %v2078_v36, %v1822_v35  ;;  %3745 = vmatpush.bf16.msrb.mxu3 %v5815_v54  ;;  %v5801_v35 = vld [vmem:[%s7316_s1 + $0x1d0] sm:$0xff]  ;;  %v5738_v54 = vld [vmem:[%s7317_s0 + $0x120] sm:$0xff] }
 0x24b   :  { %2819 = vst [vmem:[%s7319_s3 + $0x18] sm:$0xff] %v2787_v10  ;;  %v5714_v10 = vld [vmem:[%s7317_s0 + $0x2c0] sm:$0xff] }
 0x24c   :  { %v6978_v45 = vadd.f32 %v2392_v40, %v2136_v44  ;;  %3643 = vmatpush.bf16.msrb.mxu2 %v5804_v22  ;;  %v5803_v40 = vld [vmem:[%s7316_s1 + $0x1e0] sm:$0xff] }
 0x24e   :  { %v2083_v41 = vpop.f32.mrf.mxu2  ;;  %v2679_v27 = vpop.f32.mrf.mxu0  ;;  %3746 = vmatpush.bf16.msrb.mxu3 %v5814_v9  ;;  %v5792_v9 = vld [vmem:[%s7316_s1 + $0x198] sm:$0xff] }
 0x24f   :  { %v1767_v36 = vpop.f32.mrf.mxu1  ;;  %v2753_v5 = vadd.f32 %v2679_v27, %v6746_v62  ;;  %v2397_v50 = vpop.f32.mrf.mxu3  ;;  %v5795_v62 = vld [vmem:[%s7316_s1 + $0x1b0] sm:$0xff] }
 0x250   :  { %v1823_v30 = vadd.f32 %v1767_v36, %v6621_v25  ;;  %v5813_v25 = vld [vmem:[%s7316_s1 + $0x220] sm:$0xff]  ;;  %3644 = vmatpush.bf16.msrb.mxu2 %v5803_v40 }
 0x251   :  { %v2788_v3 = vadd.f32 %v6853_v21, %v2753_v5  ;;  %2718 = vmatmul.bf16.gmra.mxu0 %v5713_v51  ;;  %2956 = vmatmul.bf16.vlgmr.msrb.gmra.mxu1 %v5737_v24  ;;  %v5810_v51 = vld [vmem:[%s7316_s1 + $0x208] sm:$0xff] }
 0x252   :  { %v2137_v12 = vadd.f32 %v2081_v55, %v1823_v30  ;;  %3538 = vmatpush.bf16.msrb.mxu1 %v5796_v57  ;;  %3747 = vmatpush.bf16.msrb.mxu3 %v5813_v25  ;;  %v5799_v30 = vld [vmem:[%s7316_s1 + $0x1c0] sm:$0xff] }
 0x253   :  { %3040 = vmatmul.bf16.gmra.mxu2 %v5728_v20  ;;  %2820 = vst [vmem:[%s7319_s3 + $0x20] sm:$0xff] %v2788_v3  ;;  %v5777_v20 = vld [vmem:[%s7317_s0 + $0x378] sm:$0xff] }
 0x254   :  { %3139 = vmatmul.bf16.gmra.mxu3 %v5748_v4  ;;  %v7016_v47 = vadd.f32 %v2395_v1, %v2137_v12  ;;  %3645 = vmatpush.bf16.msrb.mxu2 %v5802_v52  ;;  %v5790_v52 = vld [vmem:[%s7316_s1 + $0x188] sm:$0xff] }
 0x256   :  { %v2086_v59 = vpop.f32.mrf.mxu2  ;;  %v2681_v18 = vpop.f32.mrf.mxu0  ;;  %3539 = vmatpush.bf16.msrb.mxu1 %v5795_v62  ;;  %3748 = vmatpush.bf16.msrb.mxu3 %v5812_v56  ;;  %v5715_v56 = vld [vmem:[%s7317_s0 + $0x2c8] sm:$0xff] }
 0x257   :  { %v1769_v34 = vpop.f32.mrf.mxu1  ;;  %v2754_v53 = vadd.f32 %v2681_v18, %v6752_v43  ;;  %v2400_v60 = vpop.f32.mrf.mxu3  ;;  %v5793_v43 = vld [vmem:[%s7316_s1 + $0x1a0] sm:$0xff] }
 0x258   :  { %v1824_v55 = vadd.f32 %v1769_v34, %v6636_v6  ;;  %v5811_v6 = vld [vmem:[%s7316_s1 + $0x210] sm:$0xff]  ;;  %3646 = vmatpush.bf16.msrb.mxu2 %v5801_v35  ;;  %v5789_v18 = vld [vmem:[%s7316_s1 + $0x180] sm:$0xff] }
 0x259   :  { %v2789_v1 = vadd.f32 %v6853_v21, %v2754_v53 }
 0x25a   :  { %v2138_v2 = vadd.f32 %v2083_v41, %v1824_v55  ;;  %3540 = vmatpush.bf16.msrb.mxu1 %v5794_v14  ;;  %3749 = vmatpush.bf16.msrb.mxu3 %v5811_v6  ;;  %v5767_v41 = vld [vmem:[%s7317_s0 + $0x248] sm:$0xff]  ;;  %v5757_v55 = vld [vmem:[%s7317_s0 + $0x1b0] sm:$0xff]  ;;  %v5778_v6 = vld [vmem:[%s7317_s0 + $0x380] sm:$0xff] }
 0x25b   :  { %2821 = vst [vmem:[%s7319_s3 + $0x28] sm:$0xff] %v2789_v1  ;;  %v5768_v14 = vld [vmem:[%s7317_s0 + $0x250] sm:$0xff] }
 0x25c   :  { %v7042_v26 = vadd.f32 %v2397_v50, %v2138_v2  ;;  %3647 = vmatpush.bf16.msrb.mxu2 %v5800_v13  ;;  %v5791_v50 = vld [vmem:[%s7316_s1 + $0x190] sm:$0xff] }
 0x25e   :  { %v2088_v44 = vpop.f32.mrf.mxu2  ;;  %v2684_v22 = vpop.f32.mrf.mxu0  ;;  %3541 = vmatpush.bf16.msrb.mxu1 %v5793_v43  ;;  %3750 = vmatpush.bf16.msrb.mxu3 %v5810_v51 }
 0x25f   :  { %v1772_v28 = vpop.f32.mrf.mxu1  ;;  %v2755_v36 = vadd.f32 %v2684_v22, %v6770_v19  ;;  %v2402_v27 = vpop.f32.mrf.mxu3  ;;  %v5809_v19 = vld [vmem:[%s7316_s1 + $0x200] sm:$0xff] }
 0x260   :  { %v1825_v24 = vadd.f32 %v1772_v28, %v6651_v39  ;;  %3648 = vmatpush.bf16.msrb.mxu2 %v5799_v30 }
 0x261   :  { %v2790_v39 = vadd.f32 %v6853_v21, %v2755_v36  ;;  %2723 = vmatmul.bf16.gmra.mxu0 %v5714_v10  ;;  %2961 = vmatmul.bf16.gmra.mxu1 %v5738_v54 }
 0x262   :  { %v2139_v5 = vadd.f32 %v2086_v59, %v1825_v24  ;;  %3542 = vmatpush.bf16.msrb.mxu1 %v5792_v9  ;;  %3751 = vmatpush.bf16.msrb.mxu3 %v5809_v19  ;;  %v5797_v9 = vld [vmem:[%s7317_s0 + $0x120] sm:$0xff]  ;;  %v5807_v19 = vld [vmem:[%s7317_s0 + $0x2e8] sm:$0xff] }
 0x263   :  { %3340 = vmatmul.bf16.vlgmr.msra.gmra.mxu2 %v5767_v41  ;;  %2822 = vst [vmem:[%s7319_s3 + $0x30] sm:$0xff] %v2790_v39 }
 0x264   :  { %3443 = vmatmul.bf16.vlgmr.msra.gmra.mxu3 %v5777_v20  ;;  %v7080_v4 = vadd.f32 %v2400_v60, %v2139_v5 }
 0x266   :  { %v2091_v57 = vpop.f32.mrf.mxu2  ;;  %v2686_v12 = vpop.f32.mrf.mxu0  ;;  %3543 = vmatpush.bf16.msrb.mxu1 %v5791_v50 }
 0x267   :  { %v1774_v40 = vpop.f32.mrf.mxu1  ;;  %v2756_v25 = vadd.f32 %v2686_v12, %v6779_v31  ;;  %v2405_v62 = vpop.f32.mrf.mxu3 }
 0x268   :  { %v1826_v3 = vadd.f32 %v1774_v40, %v6660_v49 }
 0x269   :  { %v2791_v34 = vadd.f32 %v6853_v21, %v2756_v25 }
 0x26a   :  { %v2140_v59 = vadd.f32 %v2088_v44, %v1826_v3  ;;  %3544 = vmatpush.bf16.msrb.mxu1 %v5790_v52 }
 0x26b   :  { %2823 = vst [vmem:[%s7319_s3 + $0x38] sm:$0xff] %v2791_v34 }
 0x26c   :  { %v7094_v49 = vadd.f32 %v2402_v27, %v2140_v59  ;;  %v5716_v27 = vld [vmem:[%s7317_s0 + $0x2d0] sm:$0xff] }
 0x26e   :  { %v2093_v31 = vpop.f32.mrf.mxu2  ;;  %v2689_v60 = vpop.f32.mrf.mxu0  ;;  %3545 = vmatpush.bf16.msrb.mxu1 %v5789_v18 }
 0x26f   :  { %v1777_v53 = vpop.f32.mrf.mxu1  ;;  %v2757_v2 = vadd.f32 %v2689_v60, %v6803_v16  ;;  %v2407_v1 = vpop.f32.mrf.mxu3 }
 0x270   :  { %v1827_v35 = vadd.f32 %v1777_v53, %v6677_v63 }
 0x271   :  { %v2792_v13 = vadd.f32 %v6853_v21, %v2757_v2  ;;  %2728 = vmatmul.bf16.gmra.mxu0 %v5715_v56  ;;  %3237 = vmatmul.bf16.vlgmr.msra.gmra.mxu1 %v5757_v55  ;;  %v5798_v55 = vld [vmem:[%s7317_s0 + $0x128] sm:$0xff] }
 0x272   :  { %v2141_v43 = vadd.f32 %v2091_v57, %v1827_v35  ;;  %v5808_v35 = vld [vmem:[%s7317_s0 + $0x2f0] sm:$0xff] }
 0x273   :  { %3345 = vmatmul.bf16.gmra.mxu2 %v5768_v14  ;;  %2824 = vst [vmem:[%s7319_s3 + $0x40] sm:$0xff] %v2792_v13 }
 0x274   :  { %3448 = vmatmul.bf16.gmra.mxu3 %v5778_v6  ;;  %v7114_v44 = vadd.f32 %v2405_v62, %v2141_v43 }
 0x276   :  { %v2096_v63 = vpop.f32.mrf.mxu2  ;;  %v2691_v10 = vpop.f32.mrf.mxu0 }
 0x277   :  { %v1779_v16 = vpop.f32.mrf.mxu1  ;;  %v2758_v28 = vadd.f32 %v2691_v10, %v6809_v46  ;;  %v2410_v22 = vpop.f32.mrf.mxu3 }
 0x278   :  { %v1828_v54 = vadd.f32 %v1779_v16, %v6692_v32  ;;  %v5758_v32 = vld [vmem:[%s7317_s0 + $0x1b8] sm:$0xff] }
 0x279   :  { %v2793_v51 = vadd.f32 %v6853_v21, %v2758_v28 }
 0x27a   :  { %v2142_v41 = vadd.f32 %v2093_v31, %v1828_v54  ;;  %v5717_v31 = vld [vmem:[%s7317_s0 + $0x2d8] sm:$0xff] }
 0x27b   :  { %2825 = vst [vmem:[%s7319_s3 + $0x48] sm:$0xff] %v2793_v51 }
 0x27c   :  { %v7122_v24 = vadd.f32 %v2407_v1, %v2142_v41  ;;  %v5718_v41 = vld [vmem:[%s7317_s0 + $0x2e0] sm:$0xff] }
 0x27e   :  { %v2098_v36 = vpop.f32.mrf.mxu2  ;;  %v2694_v20 = vpop.f32.mrf.mxu0 }
 0x27f   :  { %v1782_v46 = vpop.f32.mrf.mxu1  ;;  %v2759_v5 = vadd.f32 %v2694_v20, %v6827_v37  ;;  %v2412_v39 = vpop.f32.mrf.mxu3 }
 0x280   :  { %v1829_v30 = vadd.f32 %v1782_v46, %v6707_v7 }
 0x281   :  { %v2794_v57 = vadd.f32 %v6853_v21, %v2759_v5  ;;  %2733 = vmatmul.bf16.gmra.mxu0 %v5716_v27  ;;  %3242 = vmatmul.bf16.gmra.mxu1 %v5758_v32 }
 0x282   :  { %v2143_v50 = vadd.f32 %v2096_v63, %v1829_v30 }
 0x283   :  { %3649 = vmatmul.bf16.vlgmr.msrb.gmra.mxu2 %v5797_v9  ;;  %2826 = vst [vmem:[%s7319_s3 + $0x50] sm:$0xff] %v2794_v57 }
 0x284   :  { %3752 = vmatmul.bf16.vlgmr.msrb.gmra.mxu3 %v5807_v19  ;;  %v7142_v40 = vadd.f32 %v2410_v22, %v2143_v50 }
 0x286   :  { %v2101_v7 = vpop.f32.mrf.mxu2  ;;  %v2696_v12 = vpop.f32.mrf.mxu0 }
 0x287   :  { %v1784_v37 = vpop.f32.mrf.mxu1  ;;  %v2760_v25 = vadd.f32 %v2696_v12, %v6845_v15  ;;  %v2415_v62 = vpop.f32.mrf.mxu3 }
 0x288   :  { %v1830_v3 = vadd.f32 %v1784_v37, %v6716_v42  ;;  %v5787_v42 = vld [vmem:[%s7317_s0 + $0x88] sm:$0xff] }
 0x289   :  { %v2795_v59 = vadd.f32 %v6853_v21, %v2760_v25 }
 0x28a   :  { %v2144_v52 = vadd.f32 %v2098_v36, %v1830_v3 }
 0x28b   :  { %2827 = vst [vmem:[%s7319_s3 + $0x58] sm:$0xff] %v2795_v59 }
 0x28c   :  { %v7150_v34 = vadd.f32 %v2412_v39, %v2144_v52 }
 0x28e   :  { %v2103_v18 = vpop.f32.mrf.mxu2  ;;  %v2699_v56 = vpop.f32.mrf.mxu0 }
 0x28f   :  { %v1787_v15 = vpop.f32.mrf.mxu1  ;;  %v2761_v60 = vadd.f32 %v2699_v56, %v6888_v0  ;;  %v2417_v14 = vpop.f32.mrf.mxu3 }
 0x290   :  { %v1831_v53 = vadd.f32 %v1787_v15, %v6734_v48 }
 0x291   :  { %v2796_v1 = vadd.f32 %v6853_v21, %v2761_v60  ;;  %2738 = vmatmul.bf16.gmra.mxu0 %v5717_v31  ;;  %3546 = vmatmul.bf16.vlgmr.msrb.gmra.mxu1 %v5787_v42 }
 0x292   :  { %v2145_v2 = vadd.f32 %v2101_v7, %v1831_v53 }
 0x293   :  { %3654 = vmatmul.bf16.gmra.mxu2 %v5798_v55  ;;  %2828 = vst [vmem:[%s7319_s3 + $0x60] sm:$0xff] %v2796_v1 }
 0x294   :  { %3757 = vmatmul.bf16.gmra.mxu3 %v5808_v35  ;;  %v7170_v6 = vadd.f32 %v2415_v62, %v2145_v2 }
 0x296   :  { %v2106_v48 = vpop.f32.mrf.mxu2  ;;  %v2701_v43 = vpop.f32.mrf.mxu0 }
 0x297   :  { %v1789_v0 = vpop.f32.mrf.mxu1  ;;  %v2762_v63 = vadd.f32 %v2701_v43, %v6914_v61  ;;  %v2420_v16 = vpop.f32.mrf.mxu3 }
 0x298   :  { %v1832_v13 = vadd.f32 %v1789_v0, %v6749_v38  ;;  %v5788_v38 = vld [vmem:[%s7317_s0 + $0x90] sm:$0xff] }
 0x299   :  { %v2797_v54 = vadd.f32 %v6853_v21, %v2762_v63 }
 0x29a   :  { %v2146_v10 = vadd.f32 %v2103_v18, %v1832_v13 }
 0x29b   :  { %2829 = vst [vmem:[%s7319_s3 + $0x68] sm:$0xff] %v2797_v54 }
 0x29c   :  { %v7178_v28 = vadd.f32 %v2417_v14, %v2146_v10 }
 0x29e   :  { %v2108_v22 = vpop.f32.mrf.mxu2  ;;  %v2704_v51 = vpop.f32.mrf.mxu0 }
 0x29f   :  { %v1792_v61 = vpop.f32.mrf.mxu1  ;;  %v2763_v27 = vadd.f32 %v2704_v51, %v6952_v23  ;;  %v2422_v32 = vpop.f32.mrf.mxu3 }
 0x2a0   :  { %v1833_v36 = vadd.f32 %v1792_v61, %v6764_v17 }
 0x2a1   :  { %v2798_v20 = vadd.f32 %v6853_v21, %v2763_v27  ;;  %2743 = vmatmul.bf16.gmra.mxu0 %v5718_v41  ;;  %3551 = vmatmul.bf16.gmra.mxu1 %v5788_v38 }
 0x2a2   :  { %v2147_v46 = vadd.f32 %v2106_v48, %v1833_v36 }
 0x2a3   :  { %2830 = vst [vmem:[%s7319_s3 + $0x70] sm:$0xff] %v2798_v20 }
 0x2a4   :  { %v7192_v9 = vadd.f32 %v2420_v16, %v2147_v46 }
 0x2a6   :  { %v2111_v30 = vpop.f32.mrf.mxu2  ;;  %v2706_v39 = vpop.f32.mrf.mxu0 }
 0x2a7   :  { %v1794_v5 = vpop.f32.mrf.mxu1  ;;  %v2764_v17 = vadd.f32 %v2706_v39, %v6978_v45  ;;  %v2425_v23 = vpop.f32.mrf.mxu3 }
 0x2a8   :  { %v1834_v19 = vadd.f32 %v1794_v5, %v6773_v29 }
 0x2a9   :  { %v2799_v57 = vadd.f32 %v6853_v21, %v2764_v17 }
 0x2aa   :  { %v2148_v50 = vadd.f32 %v2108_v22, %v1834_v19 }
 0x2ab   :  { %2831 = vst [vmem:[%s7319_s3 + $0x78] sm:$0xff] %v2799_v57 }
 0x2ac   :  { %v7200_v7 = vadd.f32 %v2422_v32, %v2148_v50 }
 0x2ae   :  { %v2113_v37 = vpop.f32.mrf.mxu2  ;;  %v2709_v3 = vpop.f32.mrf.mxu0 }
 0x2af   :  { %v1797_v12 = vpop.f32.mrf.mxu1  ;;  %v2765_v62 = vadd.f32 %v2709_v3, %v7016_v47  ;;  %v2427_v29 = vpop.f32.mrf.mxu3 }
 0x2b0   :  { %v1835_v25 = vadd.f32 %v1797_v12, %v6791_v58 }
 0x2b1   :  { %v2800_v45 = vadd.f32 %v6853_v21, %v2765_v62 }
 0x2b2   :  { %v2149_v52 = vadd.f32 %v2111_v30, %v1835_v25 }
 0x2b3   :  { %2832 = vst [vmem:[%s7319_s3 + $0x80] sm:$0xff] %v2800_v45 }
 0x2b4   :  { %v7208_v59 = vadd.f32 %v2425_v23, %v2149_v52 }
 0x2b6   :  { %v2116_v18 = vpop.f32.mrf.mxu2  ;;  %v2711_v42 = vpop.f32.mrf.mxu0 }
 0x2b7   :  { %v1799_v31 = vpop.f32.mrf.mxu1  ;;  %v2766_v56 = vadd.f32 %v2711_v42, %v7042_v26  ;;  %v2430_v58 = vpop.f32.mrf.mxu3 }
 0x2b8   :  { %v1836_v15 = vadd.f32 %v1799_v31, %v6806_v8 }
 0x2b9   :  { %v2801_v47 = vadd.f32 %v6853_v21, %v2766_v56 }
 0x2ba   :  { %v2150_v55 = vadd.f32 %v2113_v37, %v1836_v15 }
 0x2bb   :  { %2833 = vst [vmem:[%s7319_s3 + $0x88] sm:$0xff] %v2801_v47 }
 0x2bc   :  { %v7216_v53 = vadd.f32 %v2427_v29, %v2150_v55 }
 0x2be   :  { %v2118_v60 = vpop.f32.mrf.mxu2  ;;  %v2714_v35 = vpop.f32.mrf.mxu0 }
 0x2bf   :  { %v1802_v14 = vpop.f32.mrf.mxu1  ;;  %v2767_v1 = vadd.f32 %v2714_v35, %v7080_v4  ;;  %v2432_v8 = vpop.f32.mrf.mxu3 }
 0x2c0   :  { %v1837_v2 = vadd.f32 %v1802_v14, %v6821_v33 }
 0x2c1   :  { %v2802_v26 = vadd.f32 %v6853_v21, %v2767_v1 }
 0x2c2   :  { %v2151_v48 = vadd.f32 %v2116_v18, %v1837_v2 }
 0x2c3   :  { %2834 = vst [vmem:[%s7319_s3 + $0x90] sm:$0xff] %v2802_v26 }
 0x2c4   :  { %v7224_v0 = vadd.f32 %v2430_v58, %v2151_v48 }
 0x2c6   :  { %v3036_v43 = vpop.f32.mrf.mxu2  ;;  %v2716_v63 = vpop.f32.mrf.mxu0 }
 0x2c7   :  { %v1804_v13 = vpop.f32.mrf.mxu1  ;;  %v2768_v10 = vadd.f32 %v2716_v63, %v7094_v49  ;;  %v3135_v33 = vpop.f32.mrf.mxu3 }
 0x2c8   :  { %v1838_v16 = vadd.f32 %v1804_v13, %v6836_v11 }
 0x2c9   :  { %v2803_v4 = vadd.f32 %v6853_v21, %v2768_v10 }
 0x2ca   :  { %v2152_v54 = vadd.f32 %v2118_v60, %v1838_v16 }
 0x2cb   :  { %2835 = vst [vmem:[%s7319_s3 + $0x98] sm:$0xff] %v2803_v4 }
 0x2cc   :  { %v7232_v22 = vadd.f32 %v2432_v8, %v2152_v54 }
 0x2ce   :  { %v3038_v41 = vpop.f32.mrf.mxu2  ;;  %v2719_v38 = vpop.f32.mrf.mxu0 }
 0x2cf   :  { %v2957_v61 = vpop.f32.mrf.mxu1  ;;  %v2769_v51 = vadd.f32 %v2719_v38, %v7114_v44  ;;  %v3137_v36 = vpop.f32.mrf.mxu3 }
 0x2d0   :  { %v3037_v55 = vadd.f32 %v3036_v43, %v2957_v61 }
 0x2d1   :  { %v2804_v11 = vadd.f32 %v6853_v21, %v2769_v51 }
 0x2d2   :  { %v3145_v2 = vadd.f32 %v3135_v33, %v3037_v55 }
 0x2d3   :  { %2836 = vst [vmem:[%s7319_s3 + $0xa0] sm:$0xff] %v2804_v11 }
 0x2d6   :  { %v3041_v49 = vpop.f32.mrf.mxu2  ;;  %v2721_v27 = vpop.f32.mrf.mxu0 }
 0x2d7   :  { %v2959_v32 = vpop.f32.mrf.mxu1  ;;  %v2770_v46 = vadd.f32 %v2721_v27, %v7122_v24  ;;  %v3140_v20 = vpop.f32.mrf.mxu3 }
 0x2d8   :  { %v3039_v48 = vadd.f32 %v3038_v41, %v2959_v32 }
 0x2d9   :  { %v2805_v30 = vadd.f32 %v6853_v21, %v2770_v46 }
 0x2db   :  { %2837 = vst [vmem:[%s7319_s3 + $0xa8] sm:$0xff] %v2805_v30 }
 0x2de   :  { %v7244_v44 = vpop.f32.mrf.mxu2  ;;  %v2724_v5 = vpop.f32.mrf.mxu0 }
 0x2df   :  { %v2962_v39 = vpop.f32.mrf.mxu1  ;;  %v2771_v19 = vadd.f32 %v2724_v5, %v7142_v40  ;;  %v7247_v17 = vpop.f32.mrf.mxu3 }
 0x2e0   :  { %v3042_v38 = vadd.f32 %v3041_v49, %v2962_v39 }
 0x2e1   :  { %v2806_v23 = vadd.f32 %v6853_v21, %v2771_v19 }
 0x2e2   :  { %v3147_v27 = vadd.f32 %v3140_v20, %v3042_v38 }
 0x2e3   :  { %2838 = vst [vmem:[%s7319_s3 + $0xb0] sm:$0xff] %v2806_v23 }
 0x2e6   :  { %v3341_v24 = vpop.f32.mrf.mxu2  ;;  %v2726_v50 = vpop.f32.mrf.mxu0 }
 0x2e7   :  { %v2964_v57 = vpop.f32.mrf.mxu1  ;;  %v2772_v37 = vadd.f32 %v2726_v50, %v7150_v34  ;;  %v3444_v12 = vpop.f32.mrf.mxu3 }
 0x2e9   :  { %v2807_v3 = vadd.f32 %v6853_v21, %v2772_v37 }
 0x2eb   :  { %2839 = vst [vmem:[%s7319_s3 + $0xb8] sm:$0xff] %v2807_v3 }
 0x2ee   :  { %v3343_v40 = vpop.f32.mrf.mxu2  ;;  %v2729_v25 = vpop.f32.mrf.mxu0 }
 0x2ef   :  { %v3238_v62 = vpop.f32.mrf.mxu1  ;;  %v2773_v29 = vadd.f32 %v2729_v25, %v7170_v6  ;;  %v3446_v52 = vpop.f32.mrf.mxu3 }
 0x2f1   :  { %v2808_v45 = vadd.f32 %v6853_v21, %v2773_v29 }
 0x2f3   :  { %2840 = vst [vmem:[%s7319_s3 + $0xc0] sm:$0xff] %v2808_v45 }
 0x2f6   :  { %v3346_v34 = vpop.f32.mrf.mxu2  ;;  %v2731_v18 = vpop.f32.mrf.mxu0 }
 0x2f7   :  { %v3240_v31 = vpop.f32.mrf.mxu1  ;;  %v2774_v42 = vadd.f32 %v2731_v18, %v7178_v28  ;;  %v3449_v15 = vpop.f32.mrf.mxu3  ;;  %v3248_v28 = vadd.f32 %v3238_v62, %v3145_v2 }
 0x2f9   :  { %v2809_v56 = vadd.f32 %v6853_v21, %v2774_v42  ;;  %v3351_v13 = vadd.f32 %v3341_v24, %v3248_v28 }
 0x2fb   :  { %2841 = vst [vmem:[%s7319_s3 + $0xc8] sm:$0xff] %v2809_v56  ;;  %v3454_v33 = vadd.f32 %v3444_v12, %v3351_v13 }
 0x2fe   :  { %v2734_v6 = vpop.f32.mrf.mxu0  ;;  %v3348_v60 = vpop.f32.mrf.mxu2 }
 0x2ff   :  { %v3243_v58 = vpop.f32.mrf.mxu1  ;;  %v2775_v47 = vadd.f32 %v2734_v6, %v7192_v9  ;;  %v3451_v35 = vpop.f32.mrf.mxu3  ;;  %v3146_v9 = vadd.f32 %v3137_v36, %v3039_v48 }
 0x300   :  { %v3250_v46 = vadd.f32 %v3243_v58, %v3147_v27 }
 0x301   :  { %v2810_v14 = vadd.f32 %v6853_v21, %v2775_v47  ;;  %v3249_v10 = vadd.f32 %v3240_v31, %v3146_v9 }
 0x302   :  { %v3353_v24 = vadd.f32 %v3346_v34, %v3250_v46 }
 0x303   :  { %2842 = vst [vmem:[%s7319_s3 + $0xd0] sm:$0xff] %v2810_v14  ;;  %v3352_v51 = vadd.f32 %v3343_v40, %v3249_v10 }
 0x304   :  { %v3456_v25 = vadd.f32 %v3449_v15, %v3353_v24 }
 0x305   :  { %v3455_v19 = vadd.f32 %v3446_v52, %v3352_v51 }
 0x306   :  { %v2736_v1 = vpop.f32.mrf.mxu0  ;;  %v3650_v63 = vpop.f32.mrf.mxu2 }
 0x307   :  { %v3245_v8 = vpop.f32.mrf.mxu1  ;;  %v2776_v26 = vadd.f32 %v2736_v1, %v7200_v7  ;;  %v3753_v16 = vpop.f32.mrf.mxu3 }
 0x309   :  { %v2811_v43 = vadd.f32 %v6853_v21, %v2776_v26 }
 0x30b   :  { %2843 = vst [vmem:[%s7319_s3 + $0xd8] sm:$0xff] %v2811_v43 }
 0x30e   :  { %v2739_v54 = vpop.f32.mrf.mxu0  ;;  %v3652_v32 = vpop.f32.mrf.mxu2 }
 0x30f   :  { %v3547_v4 = vpop.f32.mrf.mxu1  ;;  %v2777_v61 = vadd.f32 %v2739_v54, %v7208_v59  ;;  %v3755_v5 = vpop.f32.mrf.mxu3  ;;  %v3044_v59 = vadd.f32 %v7244_v44, %v2964_v57 }
 0x310   :  { %v3557_v41 = vadd.f32 %v3547_v4, %v3454_v33 }
 0x311   :  { %v2812_v7 = vadd.f32 %v6853_v21, %v2777_v61  ;;  %v3148_v12 = vadd.f32 %v7247_v17, %v3044_v59 }
 0x312   :  { %v3660_v11 = vadd.f32 %v3650_v63, %v3557_v41 }
 0x313   :  { %2844 = vst [vmem:[%s7319_s3 + $0xe0] sm:$0xff] %v2812_v7  ;;  %v3251_v40 = vadd.f32 %v3245_v8, %v3148_v12 }
 0x314   :  { %v3763_v36 = vadd.f32 %v3753_v16, %v3660_v11 }
 0x315   :  { %v3354_v45 = vadd.f32 %v3348_v60, %v3251_v40 }
 0x316   :  { %v3767_v30 = vadd.f32 %v6853_v21, %v3763_v36  ;;  %v2741_v49 = vpop.f32.mrf.mxu0  ;;  %v3655_v57 = vpop.f32.mrf.mxu2 }
 0x317   :  { %v3549_v39 = vpop.f32.mrf.mxu1  ;;  %v2778_v20 = vadd.f32 %v2741_v49, %v7216_v53  ;;  %v3758_v17 = vpop.f32.mrf.mxu3  ;;  %v3457_v15 = vadd.f32 %v3451_v35, %v3354_v45 }
 0x318   :  { %3771 = vst [vmem:[%s7319_s3 + $0x100] sm:$0xff] %v3767_v30  ;;  %v3558_v23 = vadd.f32 %v3549_v39, %v3455_v19 }
 0x319   :  { %v2813_v50 = vadd.f32 %v6853_v21, %v2778_v20 }
 0x31a   :  { %v3661_v37 = vadd.f32 %v3652_v32, %v3558_v23 }
 0x31b   :  { %2845 = vst [vmem:[%s7319_s3 + $0xe8] sm:$0xff] %v2813_v50 }
 0x31c   :  { %v3764_v3 = vadd.f32 %v3755_v5, %v3661_v37 }
 0x31e   :  { %v3768_v44 = vadd.f32 %v6853_v21, %v3764_v3  ;;  %v2744_v62 = vpop.f32.mrf.mxu0  ;;  %v3657_v55 = vpop.f32.mrf.mxu2 }
 0x31f   :  { %v3552_v29 = vpop.f32.mrf.mxu1  ;;  %v2779_v53 = vadd.f32 %v2744_v62, %v7224_v0  ;;  %v3760_v14 = vpop.f32.mrf.mxu3 }
 0x320   :  { %3772 = vst [vmem:[%s7319_s3 + $0x108] sm:$0xff] %v3768_v44  ;;  %v3559_v52 = vadd.f32 %v3552_v29, %v3456_v25 }
 0x321   :  { %v2814_v34 = vadd.f32 %v6853_v21, %v2779_v53 }
 0x322   :  { %v3662_v18 = vadd.f32 %v3655_v57, %v3559_v52 }
 0x323   :  { %2846 = vst [vmem:[%s7319_s3 + $0xf0] sm:$0xff] %v2814_v34 }
 0x324   :  { %v3765_v31 = vadd.f32 %v3758_v17, %v3662_v18 }
 0x326   :  { %v3769_v42 = vadd.f32 %v6853_v21, %v3765_v31  ;;  %v2746_v56 = vpop.f32.mrf.mxu0 }
 0x327   :  { %v3554_v6 = vpop.f32.mrf.mxu1  ;;  %v2780_v0 = vadd.f32 %v2746_v56, %v7232_v22 }
 0x328   :  { %3773 = vst [vmem:[%s7319_s3 + $0x110] sm:$0xff] %v3769_v42  ;;  %v3560_v58 = vadd.f32 %v3554_v6, %v3457_v15 }
 0x329   :  { %v2815_v47 = vadd.f32 %v6853_v21, %v2780_v0 }
 0x32a   :  { %v3663_v60 = vadd.f32 %v3657_v55, %v3560_v58 }
 0x32b   :  { %2847 = vst [vmem:[%s7319_s3 + $0xf8] sm:$0xff] %v2815_v47 }
 0x32c   :  { %v3766_v2 = vadd.f32 %v3760_v14, %v3663_v60 }
 0x32e   :  { %v3770_v35 = vadd.f32 %v6853_v21, %v3766_v2 }
 0x330   :  { %3774 = vst [vmem:[%s7319_s3 + $0x118] sm:$0xff] %v3770_v35 }

</bundles_post_ra>
